<compile_context>
chip_gen: v5e
topology: v5e:2x2
jax: 0.10.0
libtpu: 0.0.40
codegen_flags: <defaults>
</compile_context>

<pallas_src>
import jax
import jax.numpy as jnp
from jax import lax
from jax.experimental import pallas as pl
from jax.experimental.pallas import tpu as pltpu


# ----------------------------------- kernel -----------------------------------

def d_model_kernel(xg0_ref, label_ref,
                   whh0_ref, w1c_ref, b1_ref,
                   fc1w_ref, fc1b_ref,
                   fc2wa_ref, fc2wb_ref, fc2b_ref,
                   fc3v_ref, fc3b_ref,
                   out_ref):
    TB, G = xg0_ref.shape               # (T*B, 4*Hp), time-major flattened
    B = label_ref.shape[0]
    T = TB // B
    Hp = G // 4                         # gate-padded hidden width (128)
    HALF = Hp // 2                      # where h1's live lanes sit in the packed LHS

    def sigm(x):
        # sigmoid(x) == 0.5*(tanh(x/2)+1): one EUP op instead of exp + reciprocal.
        return 0.5 * (jnp.tanh(0.5 * x) + 1.0)

    def gates(g, c):
        i = sigm(g[:, 0 * Hp:1 * Hp])
        f = sigm(g[:, 1 * Hp:2 * Hp])
        gg = jnp.tanh(g[:, 2 * Hp:3 * Hp])
        o = sigm(g[:, 3 * Hp:4 * Hp])
        cn = f * c + i * gg
        hn = o * jnp.tanh(cn)
        return hn, cn

    zeros = jnp.zeros((B, Hp), jnp.float32)

    def layer1_gate(h0, h1):
        # Pack layer-1 LHS into a single 128-lane vreg:
        #   lanes 0:H   <- h0 (live lanes),  lanes HALF:HALF+H <- h1 (via XLU roll).
        lhs1 = h0 + pltpu.roll(h1, HALF, 1)
        return (jnp.dot(lhs1, w1c_ref[...], preferred_element_type=jnp.float32)
                + b1_ref[...])

    # Peel layer-0 step 0 (h0_prev == 0, so the recurrent matmul vanishes).
    h0, c0 = gates(xg0_ref[pl.ds(0, B), :], zeros)

    def step(t, carry):
        h0, c0, h1, c1 = carry          # h0/c0: after step t-1; h1/c1: after step t-2
        row = pl.multiple_of(t * B, B)
        # Skewed layers: both matmuls depend only on the carry -> independent
        # MXU pushes that overlap on the serial recurrence path.
        g0 = xg0_ref[pl.ds(row, B), :] + jnp.dot(
            h0, whh0_ref[...], preferred_element_type=jnp.float32)
        g1 = layer1_gate(h0, h1)        # layer-1 step t-1
        h0n, c0n = gates(g0, c0)        # layer-0 step t
        h1n, c1n = gates(g1, c1)
        return h0n, c0n, h1n, c1n

    h0, c0, h1, c1 = lax.fori_loop(1, T, step, (h0, c0, zeros, zeros),
                                   unroll=True)

    # Drain: layer-1 step T-1.
    h1, _ = gates(layer1_gate(h0, h1), c1)

    # fc1 + sigmoid on the last-timestep top-layer hidden state.
    out1 = sigm(jnp.dot(h1, fc1w_ref[...], preferred_element_type=jnp.float32)
                + fc1b_ref[...])

    # cat((out1, label), 1) -> fc2 expressed as a split matmul (lane-dense 128 out).
    h2 = (jnp.dot(out1, fc2wa_ref[...], preferred_element_type=jnp.float32)
          + jnp.dot(label_ref[...], fc2wb_ref[...],
                    preferred_element_type=jnp.float32)
          + fc2b_ref[...])
    h2 = jnp.maximum(h2, 0.0)

    # fc3 (output width 1): VPU multiply + lane reduction instead of an N=1 matmul.
    logits = (jnp.sum(h2 * fc3v_ref[...], axis=-1, keepdims=True)
              + fc3b_ref[...])
    out_ref[...] = sigm(logits)


# ------------------- one-time parameter preparation (at init) -------------------

def _round_up(x, m):
    return ((x + m - 1) // m) * m


def _pad_gate_cols(w, H, Hp):
    """(in, 4H) -> (in, 4Hp): each gate block of width H placed at offset k*Hp."""
    pad = Hp - H
    return jnp.concatenate(
        [jnp.pad(w[:, k * H:(k + 1) * H], ((0, 0), (0, pad))) for k in range(4)],
        axis=1)


def _pad_rows(w, rows_to):
    return jnp.pad(w, ((0, rows_to - w.shape[0]), (0, 0)))


def prepare_params(params):
    """Pad / fold / stack weights ONCE; never in the per-call forward path."""
    H = params["whh0"].shape[0]
    K = params["fc1w"].shape[1]          # num_keys
    N2 = params["fc2w"].shape[1]         # 100
    Hp = _round_up(H, 128)               # one full 128-lane vreg per gate
    NP = _round_up(N2, 128)              # lane-dense fc2 output width
    assert 2 * H <= Hp, "compact layer-1 packing needs 2*H <= Hp"

    # Embedding folded into the layer-0 input projection:
    #   xg_table[key] = emb[key] @ W_ih0 + (b_ih0 + b_hh0), gate-padded.
    wih0 = _pad_gate_cols(params["wih0"], H, Hp)                       # (E, 4Hp)
    b0 = _pad_gate_cols(params["b0"], H, Hp)                           # (1, 4Hp)
    xg_table = params["emb"].astype(jnp.float32) @ wih0 + b0           # (NK, 4Hp)

    whh0 = _pad_rows(_pad_gate_cols(params["whh0"], H, Hp), Hp)        # (Hp, 4Hp)

    # Compact layer-1 weight: rows 0:H <- W_ih1, rows Hp/2:Hp/2+H <- W_hh1, rest 0.
    wih1 = _pad_gate_cols(params["wih1"], H, Hp)                       # (H, 4Hp)
    whh1 = _pad_gate_cols(params["whh1"], H, Hp)                       # (H, 4Hp)
    w1c = jnp.zeros((Hp, 4 * Hp), jnp.float32)
    w1c = w1c.at[0:H].set(wih1)
    w1c = w1c.at[Hp // 2:Hp // 2 + H].set(whh1)                        # (Hp, 4Hp)
    b1 = _pad_gate_cols(params["b1"], H, Hp)                           # (1, 4Hp)

    fc1w = _pad_rows(params["fc1w"], Hp)                               # (Hp, K)
    fc1b = params["fc1b"]                                              # (1, K)

    fc2w = params["fc2w"]                                              # (2K, 100)
    fc2wa = jnp.pad(fc2w[:K, :], ((0, 0), (0, NP - N2)))               # (K, 128)
    fc2wb = jnp.pad(fc2w[K:, :], ((0, 0), (0, NP - N2)))               # (K, 128)
    fc2b = jnp.pad(params["fc2b"], ((0, 0), (0, NP - N2)))             # (1, 128)

    fc3v = jnp.pad(params["fc3w"][:, 0][None, :], ((0, 0), (0, NP - N2)))  # (1, 128)
    fc3b = params["fc3b"]                                              # (1, 1)

    return dict(xg_table=xg_table, whh0=whh0, w1c=w1c, b1=b1,
                fc1w=fc1w, fc1b=fc1b,
                fc2wa=fc2wa, fc2wb=fc2wb, fc2b=fc2b,
                fc3v=fc3v, fc3b=fc3b)


def init_params(key, input_size, hidden_size, num_keys, emb_dimension):
    ks = jax.random.split(key, 13)
    scale = 0.1

    def n(k, shape):
        return jax.random.normal(k, shape, jnp.float32) * scale

    return {
        "emb":  n(ks[0], (num_keys, emb_dimension)),
        # LSTM layer 0: W_ih^T (E, 4H), W_hh^T (H, 4H), combined bias b_ih+b_hh (1, 4H)
        "wih0": n(ks[1], (input_size, 4 * hidden_size)),
        "whh0": n(ks[2], (hidden_size, 4 * hidden_size)),
        "b0":   n(ks[3], (1, 4 * hidden_size)),
        # LSTM layer 1
        "wih1": n(ks[4], (hidden_size, 4 * hidden_size)),
        "whh1": n(ks[5], (hidden_size, 4 * hidden_size)),
        "b1":   n(ks[6], (1, 4 * hidden_size)),
        # fc heads (stored transposed as (in, out))
        "fc1w": n(ks[7], (hidden_size, num_keys)),
        "fc1b": n(ks[8], (1, num_keys)),
        "fc2w": n(ks[9], (2 * num_keys, 100)),
        "fc2b": n(ks[10], (1, 100)),
        "fc3w": n(ks[11], (100, 1)),
        "fc3b": n(ks[12], (1, 1)),
    }


# ----------------------------------- forward -----------------------------------

@jax.jit
def d_model_forward(kparams, input_tensor, label):
    """Per-call path: one small gather from the folded embedding table + one
    grid-free Pallas kernel; all padding/stacking happened once in prepare_params."""
    xg_table = kparams["xg_table"]                        # (num_keys, 4Hp)
    B, T = input_tensor.shape
    G = xg_table.shape[1]

    # Time-major flattened per-step gate pre-activations (row t*B + b <- x[b, t]).
    ids = jnp.transpose(input_tensor, (1, 0)).reshape(T * B)
    xg0 = jnp.take(xg_table, ids, axis=0)                 # (T*B, 4Hp)

    args = (
        xg0, label.astype(jnp.float32),
        kparams["whh0"], kparams["w1c"], kparams["b1"],
        kparams["fc1w"], kparams["fc1b"],
        kparams["fc2wa"], kparams["fc2wb"], kparams["fc2b"],
        kparams["fc3v"], kparams["fc3b"],
    )
    return pl.pallas_call(
        d_model_kernel,
        out_shape=jax.ShapeDtypeStruct((B, 1), jnp.float32),
        in_specs=[pl.BlockSpec(memory_space=pltpu.MemorySpace.VMEM)] * len(args),
        out_specs=pl.BlockSpec(memory_space=pltpu.MemorySpace.VMEM),
    )(*args)


# ------------------------------ pure-JAX reference ------------------------------

def d_model_reference(params, input_tensor, label):
    """Pure-JAX reference (same math, unpadded), used only for a sanity check."""
    x = params["emb"][input_tensor].astype(jnp.float32)   # (B, T, E)
    B, T, _ = x.shape
    H = params["whh0"].shape[0]

    def cell(x_t, h, c, wih, whh, b):
        g = x_t @ wih + h @ whh + b
        i = jax.nn.sigmoid(g[:, 0 * H:1 * H])
        f = jax.nn.sigmoid(g[:, 1 * H:2 * H])
        gg = jnp.tanh(g[:, 2 * H:3 * H])
        o = jax.nn.sigmoid(g[:, 3 * H:4 * H])
        c = f * c + i * gg
        return o * jnp.tanh(c), c

    h0 = c0 = h1 = c1 = jnp.zeros((B, H), jnp.float32)
    for t in range(T):
        h0, c0 = cell(x[:, t, :], h0, c0, params["wih0"], params["whh0"], params["b0"])
        h1, c1 = cell(h0, h1, c1, params["wih1"], params["whh1"], params["b1"])

    out1 = jax.nn.sigmoid(h1 @ params["fc1w"] + params["fc1b"])
    cat = jnp.concatenate([out1, label.astype(jnp.float32)], axis=1)
    h2 = jnp.maximum(cat @ params["fc2w"] + params["fc2b"], 0.0)
    return jax.nn.sigmoid(h2 @ params["fc3w"] + params["fc3b"])


if __name__ == "__main__":
    # Small shapes consistent with the module's forward.
    B, T = 8, 8
    num_keys = 16
    hidden_size = 32
    emb_dimension = 32          # == input_size (required by the module's forward)
    input_size = emb_dimension

    key = jax.random.PRNGKey(0)
    kparam_key, ki, kl = jax.random.split(key, 3)

    params = init_params(kparam_key, input_size, hidden_size, num_keys, emb_dimension)
    input_tensor = jax.random.randint(ki, (B, T), 0, num_keys, dtype=jnp.int32)
    label = jax.random.uniform(kl, (B, num_keys), dtype=jnp.float32)

    kparams = prepare_params(params)          # one-time padding / folding, off the call path

    out = jax.block_until_ready(d_model_forward(kparams, input_tensor, label))
    ref = jax.block_until_ready(d_model_reference(params, input_tensor, label))

    assert out.shape == (B, 1), out.shape
    assert bool(jnp.all(jnp.isfinite(out)))
    assert bool(jnp.allclose(out, ref, atol=1e-3, rtol=1e-3))

    print("KERNEL_OK")
</pallas_src>

<mosaic_0001>
module attributes {stable_mosaic.version = 11 : i64} {
  func.func @d_model_kernel(%arg0: memref<64x512xf32, #tpu.memory_space<vmem>>, %arg1: memref<8x16xf32, #tpu.memory_space<vmem>>, %arg2: memref<128x512xf32, #tpu.memory_space<vmem>>, %arg3: memref<128x512xf32, #tpu.memory_space<vmem>>, %arg4: memref<1x512xf32, #tpu.memory_space<vmem>>, %arg5: memref<128x16xf32, #tpu.memory_space<vmem>>, %arg6: memref<1x16xf32, #tpu.memory_space<vmem>>, %arg7: memref<16x128xf32, #tpu.memory_space<vmem>>, %arg8: memref<16x128xf32, #tpu.memory_space<vmem>>, %arg9: memref<1x128xf32, #tpu.memory_space<vmem>>, %arg10: memref<1x128xf32, #tpu.memory_space<vmem>>, %arg11: memref<1x1xf32, #tpu.memory_space<vmem>>, %arg12: memref<8x1xf32, #tpu.memory_space<vmem>>) attributes {dimension_semantics = [], scalar_prefetch = 0 : i64, scratch_operands = 0 : i64, tpu.core_type = #tpu.core_type<tc>} {
    %cst = arith.constant 0.000000e+00 : f32
    %0 = vector.broadcast %cst : f32 to vector<8x128xf32>
    %c0 = arith.constant 0 : index
    %c0_0 = arith.constant 0 : index
    %1 = vector.load %arg0[%c0, %c0_0] : memref<64x512xf32, #tpu.memory_space<vmem>>, vector<8x512xf32>
    %2 = vector.extract_strided_slice %1 {offsets = [0, 0], sizes = [8, 128], strides = [1, 1]} : vector<8x512xf32> to vector<8x128xf32>
    %cst_1 = arith.constant 5.000000e-01 : f32
    %3 = vector.broadcast %cst_1 : f32 to vector<8x128xf32>
    %4 = arith.mulf %3, %2 : vector<8x128xf32>
    %5 = math.tanh %4 : vector<8x128xf32>
    %cst_2 = arith.constant 1.000000e+00 : f32
    %6 = vector.broadcast %cst_2 : f32 to vector<8x128xf32>
    %7 = arith.addf %5, %6 : vector<8x128xf32>
    %cst_3 = arith.constant 5.000000e-01 : f32
    %8 = vector.broadcast %cst_3 : f32 to vector<8x128xf32>
    %9 = arith.mulf %8, %7 : vector<8x128xf32>
    %10 = vector.extract_strided_slice %1 {offsets = [0, 128], sizes = [8, 128], strides = [1, 1]} : vector<8x512xf32> to vector<8x128xf32>
    %cst_4 = arith.constant 5.000000e-01 : f32
    %11 = vector.broadcast %cst_4 : f32 to vector<8x128xf32>
    %12 = arith.mulf %11, %10 : vector<8x128xf32>
    %13 = math.tanh %12 : vector<8x128xf32>
    %cst_5 = arith.constant 1.000000e+00 : f32
    %14 = vector.broadcast %cst_5 : f32 to vector<8x128xf32>
    %15 = arith.addf %13, %14 : vector<8x128xf32>
    %cst_6 = arith.constant 5.000000e-01 : f32
    %16 = vector.broadcast %cst_6 : f32 to vector<8x128xf32>
    %17 = arith.mulf %16, %15 : vector<8x128xf32>
    %18 = vector.extract_strided_slice %1 {offsets = [0, 256], sizes = [8, 128], strides = [1, 1]} : vector<8x512xf32> to vector<8x128xf32>
    %19 = math.tanh %18 : vector<8x128xf32>
    %20 = vector.extract_strided_slice %1 {offsets = [0, 384], sizes = [8, 128], strides = [1, 1]} : vector<8x512xf32> to vector<8x128xf32>
    %cst_7 = arith.constant 5.000000e-01 : f32
    %21 = vector.broadcast %cst_7 : f32 to vector<8x128xf32>
    %22 = arith.mulf %21, %20 : vector<8x128xf32>
    %23 = math.tanh %22 : vector<8x128xf32>
    %cst_8 = arith.constant 1.000000e+00 : f32
    %24 = vector.broadcast %cst_8 : f32 to vector<8x128xf32>
    %25 = arith.addf %23, %24 : vector<8x128xf32>
    %cst_9 = arith.constant 5.000000e-01 : f32
    %26 = vector.broadcast %cst_9 : f32 to vector<8x128xf32>
    %27 = arith.mulf %26, %25 : vector<8x128xf32>
    %28 = arith.mulf %17, %0 : vector<8x128xf32>
    %29 = arith.mulf %9, %19 : vector<8x128xf32>
    %30 = arith.addf %28, %29 : vector<8x128xf32>
    %31 = math.tanh %30 : vector<8x128xf32>
    %32 = arith.mulf %27, %31 : vector<8x128xf32>
    %c1_i32 = arith.constant 1 : i32
    %c8_i32 = arith.constant 8 : i32
    %33 = arith.muli %c1_i32, %c8_i32 : i32
    %34 = tpu.assume_multiple %33, 8 : i32
    %35 = arith.index_cast %34 : i32 to index
    %c0_10 = arith.constant 0 : index
    %36 = vector.load %arg0[%35, %c0_10] : memref<64x512xf32, #tpu.memory_space<vmem>>, vector<8x512xf32>
    %c0_11 = arith.constant 0 : index
    %c0_12 = arith.constant 0 : index
    %37 = vector.load %arg2[%c0_11, %c0_12] : memref<128x512xf32, #tpu.memory_space<vmem>>, vector<128x512xf32>
    %cst_13 = arith.constant dense<0.000000e+00> : vector<8x512xf32>
    %38 = tpu.matmul %32, %37, %cst_13 {dimension_numbers = #tpu.dot_dimension_numbers<[1], [0], [0], [1], [0, 0, 1, 1], [], []>} : vector<8x128xf32>, vector<128x512xf32>, vector<8x512xf32> -> vector<8x512xf32>
    %39 = arith.addf %36, %38 : vector<8x512xf32>
    %c64_i32 = arith.constant 64 : i32
    %40 = tpu.dynamic_rotate %0 by %c64_i32 dim 1 : vector<8x128xf32>, i32 -> vector<8x128xf32>
    %41 = arith.addf %32, %40 : vector<8x128xf32>
    %c0_14 = arith.constant 0 : index
    %c0_15 = arith.constant 0 : index
    %42 = vector.load %arg3[%c0_14, %c0_15] : memref<128x512xf32, #tpu.memory_space<vmem>>, vector<128x512xf32>
    %cst_16 = arith.constant dense<0.000000e+00> : vector<8x512xf32>
    %43 = tpu.matmul %41, %42, %cst_16 {dimension_numbers = #tpu.dot_dimension_numbers<[1], [0], [0], [1], [0, 0, 1, 1], [], []>} : vector<8x128xf32>, vector<128x512xf32>, vector<8x512xf32> -> vector<8x512xf32>
    %c0_17 = arith.constant 0 : index
    %c0_18 = arith.constant 0 : index
    %44 = vector.load %arg4[%c0_17, %c0_18] : memref<1x512xf32, #tpu.memory_space<vmem>>, vector<1x512xf32>
    %45 = vector.broadcast %44 : vector<1x512xf32> to vector<8x512xf32>
    %46 = arith.addf %43, %45 : vector<8x512xf32>
    %47 = vector.extract_strided_slice %39 {offsets = [0, 0], sizes = [8, 128], strides = [1, 1]} : vector<8x512xf32> to vector<8x128xf32>
    %cst_19 = arith.constant 5.000000e-01 : f32
    %48 = vector.broadcast %cst_19 : f32 to vector<8x128xf32>
    %49 = arith.mulf %48, %47 : vector<8x128xf32>
    %50 = math.tanh %49 : vector<8x128xf32>
    %cst_20 = arith.constant 1.000000e+00 : f32
    %51 = vector.broadcast %cst_20 : f32 to vector<8x128xf32>
    %52 = arith.addf %50, %51 : vector<8x128xf32>
    %cst_21 = arith.constant 5.000000e-01 : f32
    %53 = vector.broadcast %cst_21 : f32 to vector<8x128xf32>
    %54 = arith.mulf %53, %52 : vector<8x128xf32>
    %55 = vector.extract_strided_slice %39 {offsets = [0, 128], sizes = [8, 128], strides = [1, 1]} : vector<8x512xf32> to vector<8x128xf32>
    %cst_22 = arith.constant 5.000000e-01 : f32
    %56 = vector.broadcast %cst_22 : f32 to vector<8x128xf32>
    %57 = arith.mulf %56, %55 : vector<8x128xf32>
    %58 = math.tanh %57 : vector<8x128xf32>
    %cst_23 = arith.constant 1.000000e+00 : f32
    %59 = vector.broadcast %cst_23 : f32 to vector<8x128xf32>
    %60 = arith.addf %58, %59 : vector<8x128xf32>
    %cst_24 = arith.constant 5.000000e-01 : f32
    %61 = vector.broadcast %cst_24 : f32 to vector<8x128xf32>
    %62 = arith.mulf %61, %60 : vector<8x128xf32>
    %63 = vector.extract_strided_slice %39 {offsets = [0, 256], sizes = [8, 128], strides = [1, 1]} : vector<8x512xf32> to vector<8x128xf32>
    %64 = math.tanh %63 : vector<8x128xf32>
    %65 = vector.extract_strided_slice %39 {offsets = [0, 384], sizes = [8, 128], strides = [1, 1]} : vector<8x512xf32> to vector<8x128xf32>
    %cst_25 = arith.constant 5.000000e-01 : f32
    %66 = vector.broadcast %cst_25 : f32 to vector<8x128xf32>
    %67 = arith.mulf %66, %65 : vector<8x128xf32>
    %68 = math.tanh %67 : vector<8x128xf32>
    %cst_26 = arith.constant 1.000000e+00 : f32
    %69 = vector.broadcast %cst_26 : f32 to vector<8x128xf32>
    %70 = arith.addf %68, %69 : vector<8x128xf32>
    %cst_27 = arith.constant 5.000000e-01 : f32
    %71 = vector.broadcast %cst_27 : f32 to vector<8x128xf32>
    %72 = arith.mulf %71, %70 : vector<8x128xf32>
    %73 = arith.mulf %62, %30 : vector<8x128xf32>
    %74 = arith.mulf %54, %64 : vector<8x128xf32>
    %75 = arith.addf %73, %74 : vector<8x128xf32>
    %76 = math.tanh %75 : vector<8x128xf32>
    %77 = arith.mulf %72, %76 : vector<8x128xf32>
    %78 = vector.extract_strided_slice %46 {offsets = [0, 0], sizes = [8, 128], strides = [1, 1]} : vector<8x512xf32> to vector<8x128xf32>
    %cst_28 = arith.constant 5.000000e-01 : f32
    %79 = vector.broadcast %cst_28 : f32 to vector<8x128xf32>
    %80 = arith.mulf %79, %78 : vector<8x128xf32>
    %81 = math.tanh %80 : vector<8x128xf32>
    %cst_29 = arith.constant 1.000000e+00 : f32
    %82 = vector.broadcast %cst_29 : f32 to vector<8x128xf32>
    %83 = arith.addf %81, %82 : vector<8x128xf32>
    %cst_30 = arith.constant 5.000000e-01 : f32
    %84 = vector.broadcast %cst_30 : f32 to vector<8x128xf32>
    %85 = arith.mulf %84, %83 : vector<8x128xf32>
    %86 = vector.extract_strided_slice %46 {offsets = [0, 128], sizes = [8, 128], strides = [1, 1]} : vector<8x512xf32> to vector<8x128xf32>
    %cst_31 = arith.constant 5.000000e-01 : f32
    %87 = vector.broadcast %cst_31 : f32 to vector<8x128xf32>
    %88 = arith.mulf %87, %86 : vector<8x128xf32>
    %89 = math.tanh %88 : vector<8x128xf32>
    %cst_32 = arith.constant 1.000000e+00 : f32
    %90 = vector.broadcast %cst_32 : f32 to vector<8x128xf32>
    %91 = arith.addf %89, %90 : vector<8x128xf32>
    %cst_33 = arith.constant 5.000000e-01 : f32
    %92 = vector.broadcast %cst_33 : f32 to vector<8x128xf32>
    %93 = arith.mulf %92, %91 : vector<8x128xf32>
    %94 = vector.extract_strided_slice %46 {offsets = [0, 256], sizes = [8, 128], strides = [1, 1]} : vector<8x512xf32> to vector<8x128xf32>
    %95 = math.tanh %94 : vector<8x128xf32>
    %96 = vector.extract_strided_slice %46 {offsets = [0, 384], sizes = [8, 128], strides = [1, 1]} : vector<8x512xf32> to vector<8x128xf32>
    %cst_34 = arith.constant 5.000000e-01 : f32
    %97 = vector.broadcast %cst_34 : f32 to vector<8x128xf32>
    %98 = arith.mulf %97, %96 : vector<8x128xf32>
    %99 = math.tanh %98 : vector<8x128xf32>
    %cst_35 = arith.constant 1.000000e+00 : f32
    %100 = vector.broadcast %cst_35 : f32 to vector<8x128xf32>
    %101 = arith.addf %99, %100 : vector<8x128xf32>
    %cst_36 = arith.constant 5.000000e-01 : f32
    %102 = vector.broadcast %cst_36 : f32 to vector<8x128xf32>
    %103 = arith.mulf %102, %101 : vector<8x128xf32>
    %104 = arith.mulf %93, %0 : vector<8x128xf32>
    %105 = arith.mulf %85, %95 : vector<8x128xf32>
    %106 = arith.addf %104, %105 : vector<8x128xf32>
    %107 = math.tanh %106 : vector<8x128xf32>
    %108 = arith.mulf %103, %107 : vector<8x128xf32>
    %c2_i32 = arith.constant 2 : i32
    %c8_i32_37 = arith.constant 8 : i32
    %109 = arith.muli %c2_i32, %c8_i32_37 : i32
    %110 = tpu.assume_multiple %109, 8 : i32
    %111 = arith.index_cast %110 : i32 to index
    %c0_38 = arith.constant 0 : index
    %112 = vector.load %arg0[%111, %c0_38] : memref<64x512xf32, #tpu.memory_space<vmem>>, vector<8x512xf32>
    %c0_39 = arith.constant 0 : index
    %c0_40 = arith.constant 0 : index
    %113 = vector.load %arg2[%c0_39, %c0_40] : memref<128x512xf32, #tpu.memory_space<vmem>>, vector<128x512xf32>
    %cst_41 = arith.constant dense<0.000000e+00> : vector<8x512xf32>
    %114 = tpu.matmul %77, %113, %cst_41 {dimension_numbers = #tpu.dot_dimension_numbers<[1], [0], [0], [1], [0, 0, 1, 1], [], []>} : vector<8x128xf32>, vector<128x512xf32>, vector<8x512xf32> -> vector<8x512xf32>
    %115 = arith.addf %112, %114 : vector<8x512xf32>
    %c64_i32_42 = arith.constant 64 : i32
    %116 = tpu.dynamic_rotate %108 by %c64_i32_42 dim 1 : vector<8x128xf32>, i32 -> vector<8x128xf32>
    %117 = arith.addf %77, %116 : vector<8x128xf32>
    %c0_43 = arith.constant 0 : index
    %c0_44 = arith.constant 0 : index
    %118 = vector.load %arg3[%c0_43, %c0_44] : memref<128x512xf32, #tpu.memory_space<vmem>>, vector<128x512xf32>
    %cst_45 = arith.constant dense<0.000000e+00> : vector<8x512xf32>
    %119 = tpu.matmul %117, %118, %cst_45 {dimension_numbers = #tpu.dot_dimension_numbers<[1], [0], [0], [1], [0, 0, 1, 1], [], []>} : vector<8x128xf32>, vector<128x512xf32>, vector<8x512xf32> -> vector<8x512xf32>
    %c0_46 = arith.constant 0 : index
    %c0_47 = arith.constant 0 : index
    %120 = vector.load %arg4[%c0_46, %c0_47] : memref<1x512xf32, #tpu.memory_space<vmem>>, vector<1x512xf32>
    %121 = vector.broadcast %120 : vector<1x512xf32> to vector<8x512xf32>
    %122 = arith.addf %119, %121 : vector<8x512xf32>
    %123 = vector.extract_strided_slice %115 {offsets = [0, 0], sizes = [8, 128], strides = [1, 1]} : vector<8x512xf32> to vector<8x128xf32>
    %cst_48 = arith.constant 5.000000e-01 : f32
    %124 = vector.broadcast %cst_48 : f32 to vector<8x128xf32>
    %125 = arith.mulf %124, %123 : vector<8x128xf32>
    %126 = math.tanh %125 : vector<8x128xf32>
    %cst_49 = arith.constant 1.000000e+00 : f32
    %127 = vector.broadcast %cst_49 : f32 to vector<8x128xf32>
    %128 = arith.addf %126, %127 : vector<8x128xf32>
    %cst_50 = arith.constant 5.000000e-01 : f32
    %129 = vector.broadcast %cst_50 : f32 to vector<8x128xf32>
    %130 = arith.mulf %129, %128 : vector<8x128xf32>
    %131 = vector.extract_strided_slice %115 {offsets = [0, 128], sizes = [8, 128], strides = [1, 1]} : vector<8x512xf32> to vector<8x128xf32>
    %cst_51 = arith.constant 5.000000e-01 : f32
    %132 = vector.broadcast %cst_51 : f32 to vector<8x128xf32>
    %133 = arith.mulf %132, %131 : vector<8x128xf32>
    %134 = math.tanh %133 : vector<8x128xf32>
    %cst_52 = arith.constant 1.000000e+00 : f32
    %135 = vector.broadcast %cst_52 : f32 to vector<8x128xf32>
    %136 = arith.addf %134, %135 : vector<8x128xf32>
    %cst_53 = arith.constant 5.000000e-01 : f32
    %137 = vector.broadcast %cst_53 : f32 to vector<8x128xf32>
    %138 = arith.mulf %137, %136 : vector<8x128xf32>
    %139 = vector.extract_strided_slice %115 {offsets = [0, 256], sizes = [8, 128], strides = [1, 1]} : vector<8x512xf32> to vector<8x128xf32>
    %140 = math.tanh %139 : vector<8x128xf32>
    %141 = vector.extract_strided_slice %115 {offsets = [0, 384], sizes = [8, 128], strides = [1, 1]} : vector<8x512xf32> to vector<8x128xf32>
    %cst_54 = arith.constant 5.000000e-01 : f32
    %142 = vector.broadcast %cst_54 : f32 to vector<8x128xf32>
    %143 = arith.mulf %142, %141 : vector<8x128xf32>
    %144 = math.tanh %143 : vector<8x128xf32>
    %cst_55 = arith.constant 1.000000e+00 : f32
    %145 = vector.broadcast %cst_55 : f32 to vector<8x128xf32>
    %146 = arith.addf %144, %145 : vector<8x128xf32>
    %cst_56 = arith.constant 5.000000e-01 : f32
    %147 = vector.broadcast %cst_56 : f32 to vector<8x128xf32>
    %148 = arith.mulf %147, %146 : vector<8x128xf32>
    %149 = arith.mulf %138, %75 : vector<8x128xf32>
    %150 = arith.mulf %130, %140 : vector<8x128xf32>
    %151 = arith.addf %149, %150 : vector<8x128xf32>
    %152 = math.tanh %151 : vector<8x128xf32>
    %153 = arith.mulf %148, %152 : vector<8x128xf32>
    %154 = vector.extract_strided_slice %122 {offsets = [0, 0], sizes = [8, 128], strides = [1, 1]} : vector<8x512xf32> to vector<8x128xf32>
    %cst_57 = arith.constant 5.000000e-01 : f32
    %155 = vector.broadcast %cst_57 : f32 to vector<8x128xf32>
    %156 = arith.mulf %155, %154 : vector<8x128xf32>
    %157 = math.tanh %156 : vector<8x128xf32>
    %cst_58 = arith.constant 1.000000e+00 : f32
    %158 = vector.broadcast %cst_58 : f32 to vector<8x128xf32>
    %159 = arith.addf %157, %158 : vector<8x128xf32>
    %cst_59 = arith.constant 5.000000e-01 : f32
    %160 = vector.broadcast %cst_59 : f32 to vector<8x128xf32>
    %161 = arith.mulf %160, %159 : vector<8x128xf32>
    %162 = vector.extract_strided_slice %122 {offsets = [0, 128], sizes = [8, 128], strides = [1, 1]} : vector<8x512xf32> to vector<8x128xf32>
    %cst_60 = arith.constant 5.000000e-01 : f32
    %163 = vector.broadcast %cst_60 : f32 to vector<8x128xf32>
    %164 = arith.mulf %163, %162 : vector<8x128xf32>
    %165 = math.tanh %164 : vector<8x128xf32>
    %cst_61 = arith.constant 1.000000e+00 : f32
    %166 = vector.broadcast %cst_61 : f32 to vector<8x128xf32>
    %167 = arith.addf %165, %166 : vector<8x128xf32>
    %cst_62 = arith.constant 5.000000e-01 : f32
    %168 = vector.broadcast %cst_62 : f32 to vector<8x128xf32>
    %169 = arith.mulf %168, %167 : vector<8x128xf32>
    %170 = vector.extract_strided_slice %122 {offsets = [0, 256], sizes = [8, 128], strides = [1, 1]} : vector<8x512xf32> to vector<8x128xf32>
    %171 = math.tanh %170 : vector<8x128xf32>
    %172 = vector.extract_strided_slice %122 {offsets = [0, 384], sizes = [8, 128], strides = [1, 1]} : vector<8x512xf32> to vector<8x128xf32>
    %cst_63 = arith.constant 5.000000e-01 : f32
    %173 = vector.broadcast %cst_63 : f32 to vector<8x128xf32>
    %174 = arith.mulf %173, %172 : vector<8x128xf32>
    %175 = math.tanh %174 : vector<8x128xf32>
    %cst_64 = arith.constant 1.000000e+00 : f32
    %176 = vector.broadcast %cst_64 : f32 to vector<8x128xf32>
    %177 = arith.addf %175, %176 : vector<8x128xf32>
    %cst_65 = arith.constant 5.000000e-01 : f32
    %178 = vector.broadcast %cst_65 : f32 to vector<8x128xf32>
    %179 = arith.mulf %178, %177 : vector<8x128xf32>
    %180 = arith.mulf %169, %106 : vector<8x128xf32>
    %181 = arith.mulf %161, %171 : vector<8x128xf32>
    %182 = arith.addf %180, %181 : vector<8x128xf32>
    %183 = math.tanh %182 : vector<8x128xf32>
    %184 = arith.mulf %179, %183 : vector<8x128xf32>
    %c3_i32 = arith.constant 3 : i32
    %c8_i32_66 = arith.constant 8 : i32
    %185 = arith.muli %c3_i32, %c8_i32_66 : i32
    %186 = tpu.assume_multiple %185, 8 : i32
    %187 = arith.index_cast %186 : i32 to index
    %c0_67 = arith.constant 0 : index
    %188 = vector.load %arg0[%187, %c0_67] : memref<64x512xf32, #tpu.memory_space<vmem>>, vector<8x512xf32>
    %c0_68 = arith.constant 0 : index
    %c0_69 = arith.constant 0 : index
    %189 = vector.load %arg2[%c0_68, %c0_69] : memref<128x512xf32, #tpu.memory_space<vmem>>, vector<128x512xf32>
    %cst_70 = arith.constant dense<0.000000e+00> : vector<8x512xf32>
    %190 = tpu.matmul %153, %189, %cst_70 {dimension_numbers = #tpu.dot_dimension_numbers<[1], [0], [0], [1], [0, 0, 1, 1], [], []>} : vector<8x128xf32>, vector<128x512xf32>, vector<8x512xf32> -> vector<8x512xf32>
    %191 = arith.addf %188, %190 : vector<8x512xf32>
    %c64_i32_71 = arith.constant 64 : i32
    %192 = tpu.dynamic_rotate %184 by %c64_i32_71 dim 1 : vector<8x128xf32>, i32 -> vector<8x128xf32>
    %193 = arith.addf %153, %192 : vector<8x128xf32>
    %c0_72 = arith.constant 0 : index
    %c0_73 = arith.constant 0 : index
    %194 = vector.load %arg3[%c0_72, %c0_73] : memref<128x512xf32, #tpu.memory_space<vmem>>, vector<128x512xf32>
    %cst_74 = arith.constant dense<0.000000e+00> : vector<8x512xf32>
    %195 = tpu.matmul %193, %194, %cst_74 {dimension_numbers = #tpu.dot_dimension_numbers<[1], [0], [0], [1], [0, 0, 1, 1], [], []>} : vector<8x128xf32>, vector<128x512xf32>, vector<8x512xf32> -> vector<8x512xf32>
    %c0_75 = arith.constant 0 : index
    %c0_76 = arith.constant 0 : index
    %196 = vector.load %arg4[%c0_75, %c0_76] : memref<1x512xf32, #tpu.memory_space<vmem>>, vector<1x512xf32>
    %197 = vector.broadcast %196 : vector<1x512xf32> to vector<8x512xf32>
    %198 = arith.addf %195, %197 : vector<8x512xf32>
    %199 = vector.extract_strided_slice %191 {offsets = [0, 0], sizes = [8, 128], strides = [1, 1]} : vector<8x512xf32> to vector<8x128xf32>
    %cst_77 = arith.constant 5.000000e-01 : f32
    %200 = vector.broadcast %cst_77 : f32 to vector<8x128xf32>
    %201 = arith.mulf %200, %199 : vector<8x128xf32>
    %202 = math.tanh %201 : vector<8x128xf32>
    %cst_78 = arith.constant 1.000000e+00 : f32
    %203 = vector.broadcast %cst_78 : f32 to vector<8x128xf32>
    %204 = arith.addf %202, %203 : vector<8x128xf32>
    %cst_79 = arith.constant 5.000000e-01 : f32
    %205 = vector.broadcast %cst_79 : f32 to vector<8x128xf32>
    %206 = arith.mulf %205, %204 : vector<8x128xf32>
    %207 = vector.extract_strided_slice %191 {offsets = [0, 128], sizes = [8, 128], strides = [1, 1]} : vector<8x512xf32> to vector<8x128xf32>
    %cst_80 = arith.constant 5.000000e-01 : f32
    %208 = vector.broadcast %cst_80 : f32 to vector<8x128xf32>
    %209 = arith.mulf %208, %207 : vector<8x128xf32>
    %210 = math.tanh %209 : vector<8x128xf32>
    %cst_81 = arith.constant 1.000000e+00 : f32
    %211 = vector.broadcast %cst_81 : f32 to vector<8x128xf32>
    %212 = arith.addf %210, %211 : vector<8x128xf32>
    %cst_82 = arith.constant 5.000000e-01 : f32
    %213 = vector.broadcast %cst_82 : f32 to vector<8x128xf32>
    %214 = arith.mulf %213, %212 : vector<8x128xf32>
    %215 = vector.extract_strided_slice %191 {offsets = [0, 256], sizes = [8, 128], strides = [1, 1]} : vector<8x512xf32> to vector<8x128xf32>
    %216 = math.tanh %215 : vector<8x128xf32>
    %217 = vector.extract_strided_slice %191 {offsets = [0, 384], sizes = [8, 128], strides = [1, 1]} : vector<8x512xf32> to vector<8x128xf32>
    %cst_83 = arith.constant 5.000000e-01 : f32
    %218 = vector.broadcast %cst_83 : f32 to vector<8x128xf32>
    %219 = arith.mulf %218, %217 : vector<8x128xf32>
    %220 = math.tanh %219 : vector<8x128xf32>
    %cst_84 = arith.constant 1.000000e+00 : f32
    %221 = vector.broadcast %cst_84 : f32 to vector<8x128xf32>
    %222 = arith.addf %220, %221 : vector<8x128xf32>
    %cst_85 = arith.constant 5.000000e-01 : f32
    %223 = vector.broadcast %cst_85 : f32 to vector<8x128xf32>
    %224 = arith.mulf %223, %222 : vector<8x128xf32>
    %225 = arith.mulf %214, %151 : vector<8x128xf32>
    %226 = arith.mulf %206, %216 : vector<8x128xf32>
    %227 = arith.addf %225, %226 : vector<8x128xf32>
    %228 = math.tanh %227 : vector<8x128xf32>
    %229 = arith.mulf %224, %228 : vector<8x128xf32>
    %230 = vector.extract_strided_slice %198 {offsets = [0, 0], sizes = [8, 128], strides = [1, 1]} : vector<8x512xf32> to vector<8x128xf32>
    %cst_86 = arith.constant 5.000000e-01 : f32
    %231 = vector.broadcast %cst_86 : f32 to vector<8x128xf32>
    %232 = arith.mulf %231, %230 : vector<8x128xf32>
    %233 = math.tanh %232 : vector<8x128xf32>
    %cst_87 = arith.constant 1.000000e+00 : f32
    %234 = vector.broadcast %cst_87 : f32 to vector<8x128xf32>
    %235 = arith.addf %233, %234 : vector<8x128xf32>
    %cst_88 = arith.constant 5.000000e-01 : f32
    %236 = vector.broadcast %cst_88 : f32 to vector<8x128xf32>
    %237 = arith.mulf %236, %235 : vector<8x128xf32>
    %238 = vector.extract_strided_slice %198 {offsets = [0, 128], sizes = [8, 128], strides = [1, 1]} : vector<8x512xf32> to vector<8x128xf32>
    %cst_89 = arith.constant 5.000000e-01 : f32
    %239 = vector.broadcast %cst_89 : f32 to vector<8x128xf32>
    %240 = arith.mulf %239, %238 : vector<8x128xf32>
    %241 = math.tanh %240 : vector<8x128xf32>
    %cst_90 = arith.constant 1.000000e+00 : f32
    %242 = vector.broadcast %cst_90 : f32 to vector<8x128xf32>
    %243 = arith.addf %241, %242 : vector<8x128xf32>
    %cst_91 = arith.constant 5.000000e-01 : f32
    %244 = vector.broadcast %cst_91 : f32 to vector<8x128xf32>
    %245 = arith.mulf %244, %243 : vector<8x128xf32>
    %246 = vector.extract_strided_slice %198 {offsets = [0, 256], sizes = [8, 128], strides = [1, 1]} : vector<8x512xf32> to vector<8x128xf32>
    %247 = math.tanh %246 : vector<8x128xf32>
    %248 = vector.extract_strided_slice %198 {offsets = [0, 384], sizes = [8, 128], strides = [1, 1]} : vector<8x512xf32> to vector<8x128xf32>
    %cst_92 = arith.constant 5.000000e-01 : f32
    %249 = vector.broadcast %cst_92 : f32 to vector<8x128xf32>
    %250 = arith.mulf %249, %248 : vector<8x128xf32>
    %251 = math.tanh %250 : vector<8x128xf32>
    %cst_93 = arith.constant 1.000000e+00 : f32
    %252 = vector.broadcast %cst_93 : f32 to vector<8x128xf32>
    %253 = arith.addf %251, %252 : vector<8x128xf32>
    %cst_94 = arith.constant 5.000000e-01 : f32
    %254 = vector.broadcast %cst_94 : f32 to vector<8x128xf32>
    %255 = arith.mulf %254, %253 : vector<8x128xf32>
    %256 = arith.mulf %245, %182 : vector<8x128xf32>
    %257 = arith.mulf %237, %247 : vector<8x128xf32>
    %258 = arith.addf %256, %257 : vector<8x128xf32>
    %259 = math.tanh %258 : vector<8x128xf32>
    %260 = arith.mulf %255, %259 : vector<8x128xf32>
    %c4_i32 = arith.constant 4 : i32
    %c8_i32_95 = arith.constant 8 : i32
    %261 = arith.muli %c4_i32, %c8_i32_95 : i32
    %262 = tpu.assume_multiple %261, 8 : i32
    %263 = arith.index_cast %262 : i32 to index
    %c0_96 = arith.constant 0 : index
    %264 = vector.load %arg0[%263, %c0_96] : memref<64x512xf32, #tpu.memory_space<vmem>>, vector<8x512xf32>
    %c0_97 = arith.constant 0 : index
    %c0_98 = arith.constant 0 : index
    %265 = vector.load %arg2[%c0_97, %c0_98] : memref<128x512xf32, #tpu.memory_space<vmem>>, vector<128x512xf32>
    %cst_99 = arith.constant dense<0.000000e+00> : vector<8x512xf32>
    %266 = tpu.matmul %229, %265, %cst_99 {dimension_numbers = #tpu.dot_dimension_numbers<[1], [0], [0], [1], [0, 0, 1, 1], [], []>} : vector<8x128xf32>, vector<128x512xf32>, vector<8x512xf32> -> vector<8x512xf32>
    %267 = arith.addf %264, %266 : vector<8x512xf32>
    %c64_i32_100 = arith.constant 64 : i32
    %268 = tpu.dynamic_rotate %260 by %c64_i32_100 dim 1 : vector<8x128xf32>, i32 -> vector<8x128xf32>
    %269 = arith.addf %229, %268 : vector<8x128xf32>
    %c0_101 = arith.constant 0 : index
    %c0_102 = arith.constant 0 : index
    %270 = vector.load %arg3[%c0_101, %c0_102] : memref<128x512xf32, #tpu.memory_space<vmem>>, vector<128x512xf32>
    %cst_103 = arith.constant dense<0.000000e+00> : vector<8x512xf32>
    %271 = tpu.matmul %269, %270, %cst_103 {dimension_numbers = #tpu.dot_dimension_numbers<[1], [0], [0], [1], [0, 0, 1, 1], [], []>} : vector<8x128xf32>, vector<128x512xf32>, vector<8x512xf32> -> vector<8x512xf32>
    %c0_104 = arith.constant 0 : index
    %c0_105 = arith.constant 0 : index
    %272 = vector.load %arg4[%c0_104, %c0_105] : memref<1x512xf32, #tpu.memory_space<vmem>>, vector<1x512xf32>
    %273 = vector.broadcast %272 : vector<1x512xf32> to vector<8x512xf32>
    %274 = arith.addf %271, %273 : vector<8x512xf32>
    %275 = vector.extract_strided_slice %267 {offsets = [0, 0], sizes = [8, 128], strides = [1, 1]} : vector<8x512xf32> to vector<8x128xf32>
    %cst_106 = arith.constant 5.000000e-01 : f32
    %276 = vector.broadcast %cst_106 : f32 to vector<8x128xf32>
    %277 = arith.mulf %276, %275 : vector<8x128xf32>
    %278 = math.tanh %277 : vector<8x128xf32>
    %cst_107 = arith.constant 1.000000e+00 : f32
    %279 = vector.broadcast %cst_107 : f32 to vector<8x128xf32>
    %280 = arith.addf %278, %279 : vector<8x128xf32>
    %cst_108 = arith.constant 5.000000e-01 : f32
    %281 = vector.broadcast %cst_108 : f32 to vector<8x128xf32>
    %282 = arith.mulf %281, %280 : vector<8x128xf32>
    %283 = vector.extract_strided_slice %267 {offsets = [0, 128], sizes = [8, 128], strides = [1, 1]} : vector<8x512xf32> to vector<8x128xf32>
    %cst_109 = arith.constant 5.000000e-01 : f32
    %284 = vector.broadcast %cst_109 : f32 to vector<8x128xf32>
    %285 = arith.mulf %284, %283 : vector<8x128xf32>
    %286 = math.tanh %285 : vector<8x128xf32>
    %cst_110 = arith.constant 1.000000e+00 : f32
    %287 = vector.broadcast %cst_110 : f32 to vector<8x128xf32>
    %288 = arith.addf %286, %287 : vector<8x128xf32>
    %cst_111 = arith.constant 5.000000e-01 : f32
    %289 = vector.broadcast %cst_111 : f32 to vector<8x128xf32>
    %290 = arith.mulf %289, %288 : vector<8x128xf32>
    %291 = vector.extract_strided_slice %267 {offsets = [0, 256], sizes = [8, 128], strides = [1, 1]} : vector<8x512xf32> to vector<8x128xf32>
    %292 = math.tanh %291 : vector<8x128xf32>
    %293 = vector.extract_strided_slice %267 {offsets = [0, 384], sizes = [8, 128], strides = [1, 1]} : vector<8x512xf32> to vector<8x128xf32>
    %cst_112 = arith.constant 5.000000e-01 : f32
    %294 = vector.broadcast %cst_112 : f32 to vector<8x128xf32>
    %295 = arith.mulf %294, %293 : vector<8x128xf32>
    %296 = math.tanh %295 : vector<8x128xf32>
    %cst_113 = arith.constant 1.000000e+00 : f32
    %297 = vector.broadcast %cst_113 : f32 to vector<8x128xf32>
    %298 = arith.addf %296, %297 : vector<8x128xf32>
    %cst_114 = arith.constant 5.000000e-01 : f32
    %299 = vector.broadcast %cst_114 : f32 to vector<8x128xf32>
    %300 = arith.mulf %299, %298 : vector<8x128xf32>
    %301 = arith.mulf %290, %227 : vector<8x128xf32>
    %302 = arith.mulf %282, %292 : vector<8x128xf32>
    %303 = arith.addf %301, %302 : vector<8x128xf32>
    %304 = math.tanh %303 : vector<8x128xf32>
    %305 = arith.mulf %300, %304 : vector<8x128xf32>
    %306 = vector.extract_strided_slice %274 {offsets = [0, 0], sizes = [8, 128], strides = [1, 1]} : vector<8x512xf32> to vector<8x128xf32>
    %cst_115 = arith.constant 5.000000e-01 : f32
    %307 = vector.broadcast %cst_115 : f32 to vector<8x128xf32>
    %308 = arith.mulf %307, %306 : vector<8x128xf32>
    %309 = math.tanh %308 : vector<8x128xf32>
    %cst_116 = arith.constant 1.000000e+00 : f32
    %310 = vector.broadcast %cst_116 : f32 to vector<8x128xf32>
    %311 = arith.addf %309, %310 : vector<8x128xf32>
    %cst_117 = arith.constant 5.000000e-01 : f32
    %312 = vector.broadcast %cst_117 : f32 to vector<8x128xf32>
    %313 = arith.mulf %312, %311 : vector<8x128xf32>
    %314 = vector.extract_strided_slice %274 {offsets = [0, 128], sizes = [8, 128], strides = [1, 1]} : vector<8x512xf32> to vector<8x128xf32>
    %cst_118 = arith.constant 5.000000e-01 : f32
    %315 = vector.broadcast %cst_118 : f32 to vector<8x128xf32>
    %316 = arith.mulf %315, %314 : vector<8x128xf32>
    %317 = math.tanh %316 : vector<8x128xf32>
    %cst_119 = arith.constant 1.000000e+00 : f32
    %318 = vector.broadcast %cst_119 : f32 to vector<8x128xf32>
    %319 = arith.addf %317, %318 : vector<8x128xf32>
    %cst_120 = arith.constant 5.000000e-01 : f32
    %320 = vector.broadcast %cst_120 : f32 to vector<8x128xf32>
    %321 = arith.mulf %320, %319 : vector<8x128xf32>
    %322 = vector.extract_strided_slice %274 {offsets = [0, 256], sizes = [8, 128], strides = [1, 1]} : vector<8x512xf32> to vector<8x128xf32>
    %323 = math.tanh %322 : vector<8x128xf32>
    %324 = vector.extract_strided_slice %274 {offsets = [0, 384], sizes = [8, 128], strides = [1, 1]} : vector<8x512xf32> to vector<8x128xf32>
    %cst_121 = arith.constant 5.000000e-01 : f32
    %325 = vector.broadcast %cst_121 : f32 to vector<8x128xf32>
    %326 = arith.mulf %325, %324 : vector<8x128xf32>
    %327 = math.tanh %326 : vector<8x128xf32>
    %cst_122 = arith.constant 1.000000e+00 : f32
    %328 = vector.broadcast %cst_122 : f32 to vector<8x128xf32>
    %329 = arith.addf %327, %328 : vector<8x128xf32>
    %cst_123 = arith.constant 5.000000e-01 : f32
    %330 = vector.broadcast %cst_123 : f32 to vector<8x128xf32>
    %331 = arith.mulf %330, %329 : vector<8x128xf32>
    %332 = arith.mulf %321, %258 : vector<8x128xf32>
    %333 = arith.mulf %313, %323 : vector<8x128xf32>
    %334 = arith.addf %332, %333 : vector<8x128xf32>
    %335 = math.tanh %334 : vector<8x128xf32>
    %336 = arith.mulf %331, %335 : vector<8x128xf32>
    %c5_i32 = arith.constant 5 : i32
    %c8_i32_124 = arith.constant 8 : i32
    %337 = arith.muli %c5_i32, %c8_i32_124 : i32
    %338 = tpu.assume_multiple %337, 8 : i32
    %339 = arith.index_cast %338 : i32 to index
    %c0_125 = arith.constant 0 : index
    %340 = vector.load %arg0[%339, %c0_125] : memref<64x512xf32, #tpu.memory_space<vmem>>, vector<8x512xf32>
    %c0_126 = arith.constant 0 : index
    %c0_127 = arith.constant 0 : index
    %341 = vector.load %arg2[%c0_126, %c0_127] : memref<128x512xf32, #tpu.memory_space<vmem>>, vector<128x512xf32>
    %cst_128 = arith.constant dense<0.000000e+00> : vector<8x512xf32>
    %342 = tpu.matmul %305, %341, %cst_128 {dimension_numbers = #tpu.dot_dimension_numbers<[1], [0], [0], [1], [0, 0, 1, 1], [], []>} : vector<8x128xf32>, vector<128x512xf32>, vector<8x512xf32> -> vector<8x512xf32>
    %343 = arith.addf %340, %342 : vector<8x512xf32>
    %c64_i32_129 = arith.constant 64 : i32
    %344 = tpu.dynamic_rotate %336 by %c64_i32_129 dim 1 : vector<8x128xf32>, i32 -> vector<8x128xf32>
    %345 = arith.addf %305, %344 : vector<8x128xf32>
    %c0_130 = arith.constant 0 : index
    %c0_131 = arith.constant 0 : index
    %346 = vector.load %arg3[%c0_130, %c0_131] : memref<128x512xf32, #tpu.memory_space<vmem>>, vector<128x512xf32>
    %cst_132 = arith.constant dense<0.000000e+00> : vector<8x512xf32>
    %347 = tpu.matmul %345, %346, %cst_132 {dimension_numbers = #tpu.dot_dimension_numbers<[1], [0], [0], [1], [0, 0, 1, 1], [], []>} : vector<8x128xf32>, vector<128x512xf32>, vector<8x512xf32> -> vector<8x512xf32>
    %c0_133 = arith.constant 0 : index
    %c0_134 = arith.constant 0 : index
    %348 = vector.load %arg4[%c0_133, %c0_134] : memref<1x512xf32, #tpu.memory_space<vmem>>, vector<1x512xf32>
    %349 = vector.broadcast %348 : vector<1x512xf32> to vector<8x512xf32>
    %350 = arith.addf %347, %349 : vector<8x512xf32>
    %351 = vector.extract_strided_slice %343 {offsets = [0, 0], sizes = [8, 128], strides = [1, 1]} : vector<8x512xf32> to vector<8x128xf32>
    %cst_135 = arith.constant 5.000000e-01 : f32
    %352 = vector.broadcast %cst_135 : f32 to vector<8x128xf32>
    %353 = arith.mulf %352, %351 : vector<8x128xf32>
    %354 = math.tanh %353 : vector<8x128xf32>
    %cst_136 = arith.constant 1.000000e+00 : f32
    %355 = vector.broadcast %cst_136 : f32 to vector<8x128xf32>
    %356 = arith.addf %354, %355 : vector<8x128xf32>
    %cst_137 = arith.constant 5.000000e-01 : f32
    %357 = vector.broadcast %cst_137 : f32 to vector<8x128xf32>
    %358 = arith.mulf %357, %356 : vector<8x128xf32>
    %359 = vector.extract_strided_slice %343 {offsets = [0, 128], sizes = [8, 128], strides = [1, 1]} : vector<8x512xf32> to vector<8x128xf32>
    %cst_138 = arith.constant 5.000000e-01 : f32
    %360 = vector.broadcast %cst_138 : f32 to vector<8x128xf32>
    %361 = arith.mulf %360, %359 : vector<8x128xf32>
    %362 = math.tanh %361 : vector<8x128xf32>
    %cst_139 = arith.constant 1.000000e+00 : f32
    %363 = vector.broadcast %cst_139 : f32 to vector<8x128xf32>
    %364 = arith.addf %362, %363 : vector<8x128xf32>
    %cst_140 = arith.constant 5.000000e-01 : f32
    %365 = vector.broadcast %cst_140 : f32 to vector<8x128xf32>
    %366 = arith.mulf %365, %364 : vector<8x128xf32>
    %367 = vector.extract_strided_slice %343 {offsets = [0, 256], sizes = [8, 128], strides = [1, 1]} : vector<8x512xf32> to vector<8x128xf32>
    %368 = math.tanh %367 : vector<8x128xf32>
    %369 = vector.extract_strided_slice %343 {offsets = [0, 384], sizes = [8, 128], strides = [1, 1]} : vector<8x512xf32> to vector<8x128xf32>
    %cst_141 = arith.constant 5.000000e-01 : f32
    %370 = vector.broadcast %cst_141 : f32 to vector<8x128xf32>
    %371 = arith.mulf %370, %369 : vector<8x128xf32>
    %372 = math.tanh %371 : vector<8x128xf32>
    %cst_142 = arith.constant 1.000000e+00 : f32
    %373 = vector.broadcast %cst_142 : f32 to vector<8x128xf32>
    %374 = arith.addf %372, %373 : vector<8x128xf32>
    %cst_143 = arith.constant 5.000000e-01 : f32
    %375 = vector.broadcast %cst_143 : f32 to vector<8x128xf32>
    %376 = arith.mulf %375, %374 : vector<8x128xf32>
    %377 = arith.mulf %366, %303 : vector<8x128xf32>
    %378 = arith.mulf %358, %368 : vector<8x128xf32>
    %379 = arith.addf %377, %378 : vector<8x128xf32>
    %380 = math.tanh %379 : vector<8x128xf32>
    %381 = arith.mulf %376, %380 : vector<8x128xf32>
    %382 = vector.extract_strided_slice %350 {offsets = [0, 0], sizes = [8, 128], strides = [1, 1]} : vector<8x512xf32> to vector<8x128xf32>
    %cst_144 = arith.constant 5.000000e-01 : f32
    %383 = vector.broadcast %cst_144 : f32 to vector<8x128xf32>
    %384 = arith.mulf %383, %382 : vector<8x128xf32>
    %385 = math.tanh %384 : vector<8x128xf32>
    %cst_145 = arith.constant 1.000000e+00 : f32
    %386 = vector.broadcast %cst_145 : f32 to vector<8x128xf32>
    %387 = arith.addf %385, %386 : vector<8x128xf32>
    %cst_146 = arith.constant 5.000000e-01 : f32
    %388 = vector.broadcast %cst_146 : f32 to vector<8x128xf32>
    %389 = arith.mulf %388, %387 : vector<8x128xf32>
    %390 = vector.extract_strided_slice %350 {offsets = [0, 128], sizes = [8, 128], strides = [1, 1]} : vector<8x512xf32> to vector<8x128xf32>
    %cst_147 = arith.constant 5.000000e-01 : f32
    %391 = vector.broadcast %cst_147 : f32 to vector<8x128xf32>
    %392 = arith.mulf %391, %390 : vector<8x128xf32>
    %393 = math.tanh %392 : vector<8x128xf32>
    %cst_148 = arith.constant 1.000000e+00 : f32
    %394 = vector.broadcast %cst_148 : f32 to vector<8x128xf32>
    %395 = arith.addf %393, %394 : vector<8x128xf32>
    %cst_149 = arith.constant 5.000000e-01 : f32
    %396 = vector.broadcast %cst_149 : f32 to vector<8x128xf32>
    %397 = arith.mulf %396, %395 : vector<8x128xf32>
    %398 = vector.extract_strided_slice %350 {offsets = [0, 256], sizes = [8, 128], strides = [1, 1]} : vector<8x512xf32> to vector<8x128xf32>
    %399 = math.tanh %398 : vector<8x128xf32>
    %400 = vector.extract_strided_slice %350 {offsets = [0, 384], sizes = [8, 128], strides = [1, 1]} : vector<8x512xf32> to vector<8x128xf32>
    %cst_150 = arith.constant 5.000000e-01 : f32
    %401 = vector.broadcast %cst_150 : f32 to vector<8x128xf32>
    %402 = arith.mulf %401, %400 : vector<8x128xf32>
    %403 = math.tanh %402 : vector<8x128xf32>
    %cst_151 = arith.constant 1.000000e+00 : f32
    %404 = vector.broadcast %cst_151 : f32 to vector<8x128xf32>
    %405 = arith.addf %403, %404 : vector<8x128xf32>
    %cst_152 = arith.constant 5.000000e-01 : f32
    %406 = vector.broadcast %cst_152 : f32 to vector<8x128xf32>
    %407 = arith.mulf %406, %405 : vector<8x128xf32>
    %408 = arith.mulf %397, %334 : vector<8x128xf32>
    %409 = arith.mulf %389, %399 : vector<8x128xf32>
    %410 = arith.addf %408, %409 : vector<8x128xf32>
    %411 = math.tanh %410 : vector<8x128xf32>
    %412 = arith.mulf %407, %411 : vector<8x128xf32>
    %c6_i32 = arith.constant 6 : i32
    %c8_i32_153 = arith.constant 8 : i32
    %413 = arith.muli %c6_i32, %c8_i32_153 : i32
    %414 = tpu.assume_multiple %413, 8 : i32
    %415 = arith.index_cast %414 : i32 to index
    %c0_154 = arith.constant 0 : index
    %416 = vector.load %arg0[%415, %c0_154] : memref<64x512xf32, #tpu.memory_space<vmem>>, vector<8x512xf32>
    %c0_155 = arith.constant 0 : index
    %c0_156 = arith.constant 0 : index
    %417 = vector.load %arg2[%c0_155, %c0_156] : memref<128x512xf32, #tpu.memory_space<vmem>>, vector<128x512xf32>
    %cst_157 = arith.constant dense<0.000000e+00> : vector<8x512xf32>
    %418 = tpu.matmul %381, %417, %cst_157 {dimension_numbers = #tpu.dot_dimension_numbers<[1], [0], [0], [1], [0, 0, 1, 1], [], []>} : vector<8x128xf32>, vector<128x512xf32>, vector<8x512xf32> -> vector<8x512xf32>
    %419 = arith.addf %416, %418 : vector<8x512xf32>
    %c64_i32_158 = arith.constant 64 : i32
    %420 = tpu.dynamic_rotate %412 by %c64_i32_158 dim 1 : vector<8x128xf32>, i32 -> vector<8x128xf32>
    %421 = arith.addf %381, %420 : vector<8x128xf32>
    %c0_159 = arith.constant 0 : index
    %c0_160 = arith.constant 0 : index
    %422 = vector.load %arg3[%c0_159, %c0_160] : memref<128x512xf32, #tpu.memory_space<vmem>>, vector<128x512xf32>
    %cst_161 = arith.constant dense<0.000000e+00> : vector<8x512xf32>
    %423 = tpu.matmul %421, %422, %cst_161 {dimension_numbers = #tpu.dot_dimension_numbers<[1], [0], [0], [1], [0, 0, 1, 1], [], []>} : vector<8x128xf32>, vector<128x512xf32>, vector<8x512xf32> -> vector<8x512xf32>
    %c0_162 = arith.constant 0 : index
    %c0_163 = arith.constant 0 : index
    %424 = vector.load %arg4[%c0_162, %c0_163] : memref<1x512xf32, #tpu.memory_space<vmem>>, vector<1x512xf32>
    %425 = vector.broadcast %424 : vector<1x512xf32> to vector<8x512xf32>
    %426 = arith.addf %423, %425 : vector<8x512xf32>
    %427 = vector.extract_strided_slice %419 {offsets = [0, 0], sizes = [8, 128], strides = [1, 1]} : vector<8x512xf32> to vector<8x128xf32>
    %cst_164 = arith.constant 5.000000e-01 : f32
    %428 = vector.broadcast %cst_164 : f32 to vector<8x128xf32>
    %429 = arith.mulf %428, %427 : vector<8x128xf32>
    %430 = math.tanh %429 : vector<8x128xf32>
    %cst_165 = arith.constant 1.000000e+00 : f32
    %431 = vector.broadcast %cst_165 : f32 to vector<8x128xf32>
    %432 = arith.addf %430, %431 : vector<8x128xf32>
    %cst_166 = arith.constant 5.000000e-01 : f32
    %433 = vector.broadcast %cst_166 : f32 to vector<8x128xf32>
    %434 = arith.mulf %433, %432 : vector<8x128xf32>
    %435 = vector.extract_strided_slice %419 {offsets = [0, 128], sizes = [8, 128], strides = [1, 1]} : vector<8x512xf32> to vector<8x128xf32>
    %cst_167 = arith.constant 5.000000e-01 : f32
    %436 = vector.broadcast %cst_167 : f32 to vector<8x128xf32>
    %437 = arith.mulf %436, %435 : vector<8x128xf32>
    %438 = math.tanh %437 : vector<8x128xf32>
    %cst_168 = arith.constant 1.000000e+00 : f32
    %439 = vector.broadcast %cst_168 : f32 to vector<8x128xf32>
    %440 = arith.addf %438, %439 : vector<8x128xf32>
    %cst_169 = arith.constant 5.000000e-01 : f32
    %441 = vector.broadcast %cst_169 : f32 to vector<8x128xf32>
    %442 = arith.mulf %441, %440 : vector<8x128xf32>
    %443 = vector.extract_strided_slice %419 {offsets = [0, 256], sizes = [8, 128], strides = [1, 1]} : vector<8x512xf32> to vector<8x128xf32>
    %444 = math.tanh %443 : vector<8x128xf32>
    %445 = vector.extract_strided_slice %419 {offsets = [0, 384], sizes = [8, 128], strides = [1, 1]} : vector<8x512xf32> to vector<8x128xf32>
    %cst_170 = arith.constant 5.000000e-01 : f32
    %446 = vector.broadcast %cst_170 : f32 to vector<8x128xf32>
    %447 = arith.mulf %446, %445 : vector<8x128xf32>
    %448 = math.tanh %447 : vector<8x128xf32>
    %cst_171 = arith.constant 1.000000e+00 : f32
    %449 = vector.broadcast %cst_171 : f32 to vector<8x128xf32>
    %450 = arith.addf %448, %449 : vector<8x128xf32>
    %cst_172 = arith.constant 5.000000e-01 : f32
    %451 = vector.broadcast %cst_172 : f32 to vector<8x128xf32>
    %452 = arith.mulf %451, %450 : vector<8x128xf32>
    %453 = arith.mulf %442, %379 : vector<8x128xf32>
    %454 = arith.mulf %434, %444 : vector<8x128xf32>
    %455 = arith.addf %453, %454 : vector<8x128xf32>
    %456 = math.tanh %455 : vector<8x128xf32>
    %457 = arith.mulf %452, %456 : vector<8x128xf32>
    %458 = vector.extract_strided_slice %426 {offsets = [0, 0], sizes = [8, 128], strides = [1, 1]} : vector<8x512xf32> to vector<8x128xf32>
    %cst_173 = arith.constant 5.000000e-01 : f32
    %459 = vector.broadcast %cst_173 : f32 to vector<8x128xf32>
    %460 = arith.mulf %459, %458 : vector<8x128xf32>
    %461 = math.tanh %460 : vector<8x128xf32>
    %cst_174 = arith.constant 1.000000e+00 : f32
    %462 = vector.broadcast %cst_174 : f32 to vector<8x128xf32>
    %463 = arith.addf %461, %462 : vector<8x128xf32>
    %cst_175 = arith.constant 5.000000e-01 : f32
    %464 = vector.broadcast %cst_175 : f32 to vector<8x128xf32>
    %465 = arith.mulf %464, %463 : vector<8x128xf32>
    %466 = vector.extract_strided_slice %426 {offsets = [0, 128], sizes = [8, 128], strides = [1, 1]} : vector<8x512xf32> to vector<8x128xf32>
    %cst_176 = arith.constant 5.000000e-01 : f32
    %467 = vector.broadcast %cst_176 : f32 to vector<8x128xf32>
    %468 = arith.mulf %467, %466 : vector<8x128xf32>
    %469 = math.tanh %468 : vector<8x128xf32>
    %cst_177 = arith.constant 1.000000e+00 : f32
    %470 = vector.broadcast %cst_177 : f32 to vector<8x128xf32>
    %471 = arith.addf %469, %470 : vector<8x128xf32>
    %cst_178 = arith.constant 5.000000e-01 : f32
    %472 = vector.broadcast %cst_178 : f32 to vector<8x128xf32>
    %473 = arith.mulf %472, %471 : vector<8x128xf32>
    %474 = vector.extract_strided_slice %426 {offsets = [0, 256], sizes = [8, 128], strides = [1, 1]} : vector<8x512xf32> to vector<8x128xf32>
    %475 = math.tanh %474 : vector<8x128xf32>
    %476 = vector.extract_strided_slice %426 {offsets = [0, 384], sizes = [8, 128], strides = [1, 1]} : vector<8x512xf32> to vector<8x128xf32>
    %cst_179 = arith.constant 5.000000e-01 : f32
    %477 = vector.broadcast %cst_179 : f32 to vector<8x128xf32>
    %478 = arith.mulf %477, %476 : vector<8x128xf32>
    %479 = math.tanh %478 : vector<8x128xf32>
    %cst_180 = arith.constant 1.000000e+00 : f32
    %480 = vector.broadcast %cst_180 : f32 to vector<8x128xf32>
    %481 = arith.addf %479, %480 : vector<8x128xf32>
    %cst_181 = arith.constant 5.000000e-01 : f32
    %482 = vector.broadcast %cst_181 : f32 to vector<8x128xf32>
    %483 = arith.mulf %482, %481 : vector<8x128xf32>
    %484 = arith.mulf %473, %410 : vector<8x128xf32>
    %485 = arith.mulf %465, %475 : vector<8x128xf32>
    %486 = arith.addf %484, %485 : vector<8x128xf32>
    %487 = math.tanh %486 : vector<8x128xf32>
    %488 = arith.mulf %483, %487 : vector<8x128xf32>
    %c7_i32 = arith.constant 7 : i32
    %c8_i32_182 = arith.constant 8 : i32
    %489 = arith.muli %c7_i32, %c8_i32_182 : i32
    %490 = tpu.assume_multiple %489, 8 : i32
    %491 = arith.index_cast %490 : i32 to index
    %c0_183 = arith.constant 0 : index
    %492 = vector.load %arg0[%491, %c0_183] : memref<64x512xf32, #tpu.memory_space<vmem>>, vector<8x512xf32>
    %c0_184 = arith.constant 0 : index
    %c0_185 = arith.constant 0 : index
    %493 = vector.load %arg2[%c0_184, %c0_185] : memref<128x512xf32, #tpu.memory_space<vmem>>, vector<128x512xf32>
    %cst_186 = arith.constant dense<0.000000e+00> : vector<8x512xf32>
    %494 = tpu.matmul %457, %493, %cst_186 {dimension_numbers = #tpu.dot_dimension_numbers<[1], [0], [0], [1], [0, 0, 1, 1], [], []>} : vector<8x128xf32>, vector<128x512xf32>, vector<8x512xf32> -> vector<8x512xf32>
    %495 = arith.addf %492, %494 : vector<8x512xf32>
    %c64_i32_187 = arith.constant 64 : i32
    %496 = tpu.dynamic_rotate %488 by %c64_i32_187 dim 1 : vector<8x128xf32>, i32 -> vector<8x128xf32>
    %497 = arith.addf %457, %496 : vector<8x128xf32>
    %c0_188 = arith.constant 0 : index
    %c0_189 = arith.constant 0 : index
    %498 = vector.load %arg3[%c0_188, %c0_189] : memref<128x512xf32, #tpu.memory_space<vmem>>, vector<128x512xf32>
    %cst_190 = arith.constant dense<0.000000e+00> : vector<8x512xf32>
    %499 = tpu.matmul %497, %498, %cst_190 {dimension_numbers = #tpu.dot_dimension_numbers<[1], [0], [0], [1], [0, 0, 1, 1], [], []>} : vector<8x128xf32>, vector<128x512xf32>, vector<8x512xf32> -> vector<8x512xf32>
    %c0_191 = arith.constant 0 : index
    %c0_192 = arith.constant 0 : index
    %500 = vector.load %arg4[%c0_191, %c0_192] : memref<1x512xf32, #tpu.memory_space<vmem>>, vector<1x512xf32>
    %501 = vector.broadcast %500 : vector<1x512xf32> to vector<8x512xf32>
    %502 = arith.addf %499, %501 : vector<8x512xf32>
    %503 = vector.extract_strided_slice %495 {offsets = [0, 0], sizes = [8, 128], strides = [1, 1]} : vector<8x512xf32> to vector<8x128xf32>
    %cst_193 = arith.constant 5.000000e-01 : f32
    %504 = vector.broadcast %cst_193 : f32 to vector<8x128xf32>
    %505 = arith.mulf %504, %503 : vector<8x128xf32>
    %506 = math.tanh %505 : vector<8x128xf32>
    %cst_194 = arith.constant 1.000000e+00 : f32
    %507 = vector.broadcast %cst_194 : f32 to vector<8x128xf32>
    %508 = arith.addf %506, %507 : vector<8x128xf32>
    %cst_195 = arith.constant 5.000000e-01 : f32
    %509 = vector.broadcast %cst_195 : f32 to vector<8x128xf32>
    %510 = arith.mulf %509, %508 : vector<8x128xf32>
    %511 = vector.extract_strided_slice %495 {offsets = [0, 128], sizes = [8, 128], strides = [1, 1]} : vector<8x512xf32> to vector<8x128xf32>
    %cst_196 = arith.constant 5.000000e-01 : f32
    %512 = vector.broadcast %cst_196 : f32 to vector<8x128xf32>
    %513 = arith.mulf %512, %511 : vector<8x128xf32>
    %514 = math.tanh %513 : vector<8x128xf32>
    %cst_197 = arith.constant 1.000000e+00 : f32
    %515 = vector.broadcast %cst_197 : f32 to vector<8x128xf32>
    %516 = arith.addf %514, %515 : vector<8x128xf32>
    %cst_198 = arith.constant 5.000000e-01 : f32
    %517 = vector.broadcast %cst_198 : f32 to vector<8x128xf32>
    %518 = arith.mulf %517, %516 : vector<8x128xf32>
    %519 = vector.extract_strided_slice %495 {offsets = [0, 256], sizes = [8, 128], strides = [1, 1]} : vector<8x512xf32> to vector<8x128xf32>
    %520 = math.tanh %519 : vector<8x128xf32>
    %521 = vector.extract_strided_slice %495 {offsets = [0, 384], sizes = [8, 128], strides = [1, 1]} : vector<8x512xf32> to vector<8x128xf32>
    %cst_199 = arith.constant 5.000000e-01 : f32
    %522 = vector.broadcast %cst_199 : f32 to vector<8x128xf32>
    %523 = arith.mulf %522, %521 : vector<8x128xf32>
    %524 = math.tanh %523 : vector<8x128xf32>
    %cst_200 = arith.constant 1.000000e+00 : f32
    %525 = vector.broadcast %cst_200 : f32 to vector<8x128xf32>
    %526 = arith.addf %524, %525 : vector<8x128xf32>
    %cst_201 = arith.constant 5.000000e-01 : f32
    %527 = vector.broadcast %cst_201 : f32 to vector<8x128xf32>
    %528 = arith.mulf %527, %526 : vector<8x128xf32>
    %529 = arith.mulf %518, %455 : vector<8x128xf32>
    %530 = arith.mulf %510, %520 : vector<8x128xf32>
    %531 = arith.addf %529, %530 : vector<8x128xf32>
    %532 = math.tanh %531 : vector<8x128xf32>
    %533 = arith.mulf %528, %532 : vector<8x128xf32>
    %534 = vector.extract_strided_slice %502 {offsets = [0, 0], sizes = [8, 128], strides = [1, 1]} : vector<8x512xf32> to vector<8x128xf32>
    %cst_202 = arith.constant 5.000000e-01 : f32
    %535 = vector.broadcast %cst_202 : f32 to vector<8x128xf32>
    %536 = arith.mulf %535, %534 : vector<8x128xf32>
    %537 = math.tanh %536 : vector<8x128xf32>
    %cst_203 = arith.constant 1.000000e+00 : f32
    %538 = vector.broadcast %cst_203 : f32 to vector<8x128xf32>
    %539 = arith.addf %537, %538 : vector<8x128xf32>
    %cst_204 = arith.constant 5.000000e-01 : f32
    %540 = vector.broadcast %cst_204 : f32 to vector<8x128xf32>
    %541 = arith.mulf %540, %539 : vector<8x128xf32>
    %542 = vector.extract_strided_slice %502 {offsets = [0, 128], sizes = [8, 128], strides = [1, 1]} : vector<8x512xf32> to vector<8x128xf32>
    %cst_205 = arith.constant 5.000000e-01 : f32
    %543 = vector.broadcast %cst_205 : f32 to vector<8x128xf32>
    %544 = arith.mulf %543, %542 : vector<8x128xf32>
    %545 = math.tanh %544 : vector<8x128xf32>
    %cst_206 = arith.constant 1.000000e+00 : f32
    %546 = vector.broadcast %cst_206 : f32 to vector<8x128xf32>
    %547 = arith.addf %545, %546 : vector<8x128xf32>
    %cst_207 = arith.constant 5.000000e-01 : f32
    %548 = vector.broadcast %cst_207 : f32 to vector<8x128xf32>
    %549 = arith.mulf %548, %547 : vector<8x128xf32>
    %550 = vector.extract_strided_slice %502 {offsets = [0, 256], sizes = [8, 128], strides = [1, 1]} : vector<8x512xf32> to vector<8x128xf32>
    %551 = math.tanh %550 : vector<8x128xf32>
    %552 = vector.extract_strided_slice %502 {offsets = [0, 384], sizes = [8, 128], strides = [1, 1]} : vector<8x512xf32> to vector<8x128xf32>
    %cst_208 = arith.constant 5.000000e-01 : f32
    %553 = vector.broadcast %cst_208 : f32 to vector<8x128xf32>
    %554 = arith.mulf %553, %552 : vector<8x128xf32>
    %555 = math.tanh %554 : vector<8x128xf32>
    %cst_209 = arith.constant 1.000000e+00 : f32
    %556 = vector.broadcast %cst_209 : f32 to vector<8x128xf32>
    %557 = arith.addf %555, %556 : vector<8x128xf32>
    %cst_210 = arith.constant 5.000000e-01 : f32
    %558 = vector.broadcast %cst_210 : f32 to vector<8x128xf32>
    %559 = arith.mulf %558, %557 : vector<8x128xf32>
    %560 = arith.mulf %549, %486 : vector<8x128xf32>
    %561 = arith.mulf %541, %551 : vector<8x128xf32>
    %562 = arith.addf %560, %561 : vector<8x128xf32>
    %563 = math.tanh %562 : vector<8x128xf32>
    %564 = arith.mulf %559, %563 : vector<8x128xf32>
    %c7_i32_211 = arith.constant 7 : i32
    %c64_i32_212 = arith.constant 64 : i32
    %565 = tpu.dynamic_rotate %564 by %c64_i32_212 dim 1 : vector<8x128xf32>, i32 -> vector<8x128xf32>
    %566 = arith.addf %533, %565 : vector<8x128xf32>
    %c0_213 = arith.constant 0 : index
    %c0_214 = arith.constant 0 : index
    %567 = vector.load %arg3[%c0_213, %c0_214] : memref<128x512xf32, #tpu.memory_space<vmem>>, vector<128x512xf32>
    %cst_215 = arith.constant dense<0.000000e+00> : vector<8x512xf32>
    %568 = tpu.matmul %566, %567, %cst_215 {dimension_numbers = #tpu.dot_dimension_numbers<[1], [0], [0], [1], [0, 0, 1, 1], [], []>} : vector<8x128xf32>, vector<128x512xf32>, vector<8x512xf32> -> vector<8x512xf32>
    %c0_216 = arith.constant 0 : index
    %c0_217 = arith.constant 0 : index
    %569 = vector.load %arg4[%c0_216, %c0_217] : memref<1x512xf32, #tpu.memory_space<vmem>>, vector<1x512xf32>
    %570 = vector.broadcast %569 : vector<1x512xf32> to vector<8x512xf32>
    %571 = arith.addf %568, %570 : vector<8x512xf32>
    %572 = vector.extract_strided_slice %571 {offsets = [0, 0], sizes = [8, 128], strides = [1, 1]} : vector<8x512xf32> to vector<8x128xf32>
    %cst_218 = arith.constant 5.000000e-01 : f32
    %573 = vector.broadcast %cst_218 : f32 to vector<8x128xf32>
    %574 = arith.mulf %573, %572 : vector<8x128xf32>
    %575 = math.tanh %574 : vector<8x128xf32>
    %cst_219 = arith.constant 1.000000e+00 : f32
    %576 = vector.broadcast %cst_219 : f32 to vector<8x128xf32>
    %577 = arith.addf %575, %576 : vector<8x128xf32>
    %cst_220 = arith.constant 5.000000e-01 : f32
    %578 = vector.broadcast %cst_220 : f32 to vector<8x128xf32>
    %579 = arith.mulf %578, %577 : vector<8x128xf32>
    %580 = vector.extract_strided_slice %571 {offsets = [0, 128], sizes = [8, 128], strides = [1, 1]} : vector<8x512xf32> to vector<8x128xf32>
    %cst_221 = arith.constant 5.000000e-01 : f32
    %581 = vector.broadcast %cst_221 : f32 to vector<8x128xf32>
    %582 = arith.mulf %581, %580 : vector<8x128xf32>
    %583 = math.tanh %582 : vector<8x128xf32>
    %cst_222 = arith.constant 1.000000e+00 : f32
    %584 = vector.broadcast %cst_222 : f32 to vector<8x128xf32>
    %585 = arith.addf %583, %584 : vector<8x128xf32>
    %cst_223 = arith.constant 5.000000e-01 : f32
    %586 = vector.broadcast %cst_223 : f32 to vector<8x128xf32>
    %587 = arith.mulf %586, %585 : vector<8x128xf32>
    %588 = vector.extract_strided_slice %571 {offsets = [0, 256], sizes = [8, 128], strides = [1, 1]} : vector<8x512xf32> to vector<8x128xf32>
    %589 = math.tanh %588 : vector<8x128xf32>
    %590 = vector.extract_strided_slice %571 {offsets = [0, 384], sizes = [8, 128], strides = [1, 1]} : vector<8x512xf32> to vector<8x128xf32>
    %cst_224 = arith.constant 5.000000e-01 : f32
    %591 = vector.broadcast %cst_224 : f32 to vector<8x128xf32>
    %592 = arith.mulf %591, %590 : vector<8x128xf32>
    %593 = math.tanh %592 : vector<8x128xf32>
    %cst_225 = arith.constant 1.000000e+00 : f32
    %594 = vector.broadcast %cst_225 : f32 to vector<8x128xf32>
    %595 = arith.addf %593, %594 : vector<8x128xf32>
    %cst_226 = arith.constant 5.000000e-01 : f32
    %596 = vector.broadcast %cst_226 : f32 to vector<8x128xf32>
    %597 = arith.mulf %596, %595 : vector<8x128xf32>
    %598 = arith.mulf %587, %562 : vector<8x128xf32>
    %599 = arith.mulf %579, %589 : vector<8x128xf32>
    %600 = arith.addf %598, %599 : vector<8x128xf32>
    %601 = math.tanh %600 : vector<8x128xf32>
    %602 = arith.mulf %597, %601 : vector<8x128xf32>
    %c0_227 = arith.constant 0 : index
    %c0_228 = arith.constant 0 : index
    %603 = vector.load %arg5[%c0_227, %c0_228] : memref<128x16xf32, #tpu.memory_space<vmem>>, vector<128x16xf32>
    %cst_229 = arith.constant dense<0.000000e+00> : vector<8x16xf32>
    %604 = tpu.matmul %602, %603, %cst_229 {dimension_numbers = #tpu.dot_dimension_numbers<[1], [0], [0], [1], [0, 0, 1, 1], [], []>} : vector<8x128xf32>, vector<128x16xf32>, vector<8x16xf32> -> vector<8x16xf32>
    %c0_230 = arith.constant 0 : index
    %c0_231 = arith.constant 0 : index
    %605 = vector.load %arg6[%c0_230, %c0_231] : memref<1x16xf32, #tpu.memory_space<vmem>>, vector<1x16xf32>
    %606 = vector.broadcast %605 : vector<1x16xf32> to vector<8x16xf32>
    %607 = arith.addf %604, %606 : vector<8x16xf32>
    %cst_232 = arith.constant 5.000000e-01 : f32
    %608 = vector.broadcast %cst_232 : f32 to vector<8x16xf32>
    %609 = arith.mulf %608, %607 : vector<8x16xf32>
    %610 = math.tanh %609 : vector<8x16xf32>
    %cst_233 = arith.constant 1.000000e+00 : f32
    %611 = vector.broadcast %cst_233 : f32 to vector<8x16xf32>
    %612 = arith.addf %610, %611 : vector<8x16xf32>
    %cst_234 = arith.constant 5.000000e-01 : f32
    %613 = vector.broadcast %cst_234 : f32 to vector<8x16xf32>
    %614 = arith.mulf %613, %612 : vector<8x16xf32>
    %c0_235 = arith.constant 0 : index
    %c0_236 = arith.constant 0 : index
    %615 = vector.load %arg7[%c0_235, %c0_236] : memref<16x128xf32, #tpu.memory_space<vmem>>, vector<16x128xf32>
    %cst_237 = arith.constant dense<0.000000e+00> : vector<8x128xf32>
    %616 = tpu.matmul %614, %615, %cst_237 {dimension_numbers = #tpu.dot_dimension_numbers<[1], [0], [0], [1], [0, 0, 1, 1], [], []>} : vector<8x16xf32>, vector<16x128xf32>, vector<8x128xf32> -> vector<8x128xf32>
    %c0_238 = arith.constant 0 : index
    %c0_239 = arith.constant 0 : index
    %617 = vector.load %arg1[%c0_238, %c0_239] : memref<8x16xf32, #tpu.memory_space<vmem>>, vector<8x16xf32>
    %c0_240 = arith.constant 0 : index
    %c0_241 = arith.constant 0 : index
    %618 = vector.load %arg8[%c0_240, %c0_241] : memref<16x128xf32, #tpu.memory_space<vmem>>, vector<16x128xf32>
    %cst_242 = arith.constant dense<0.000000e+00> : vector<8x128xf32>
    %619 = tpu.matmul %617, %618, %cst_242 {dimension_numbers = #tpu.dot_dimension_numbers<[1], [0], [0], [1], [0, 0, 1, 1], [], []>} : vector<8x16xf32>, vector<16x128xf32>, vector<8x128xf32> -> vector<8x128xf32>
    %620 = arith.addf %616, %619 : vector<8x128xf32>
    %c0_243 = arith.constant 0 : index
    %c0_244 = arith.constant 0 : index
    %621 = vector.load %arg9[%c0_243, %c0_244] : memref<1x128xf32, #tpu.memory_space<vmem>>, vector<1x128xf32>
    %622 = vector.broadcast %621 : vector<1x128xf32> to vector<8x128xf32>
    %623 = arith.addf %620, %622 : vector<8x128xf32>
    %cst_245 = arith.constant 0.000000e+00 : f32
    %624 = vector.broadcast %cst_245 : f32 to vector<8x128xf32>
    %625 = arith.maximumf %623, %624 : vector<8x128xf32>
    %c0_246 = arith.constant 0 : index
    %c0_247 = arith.constant 0 : index
    %626 = vector.load %arg10[%c0_246, %c0_247] : memref<1x128xf32, #tpu.memory_space<vmem>>, vector<1x128xf32>
    %627 = vector.broadcast %626 : vector<1x128xf32> to vector<8x128xf32>
    %628 = arith.mulf %625, %627 : vector<8x128xf32>
    %cst_248 = arith.constant dense<0.000000e+00> : vector<8xf32>
    %629 = vector.multi_reduction <add>, %628, %cst_248 [1] : vector<8x128xf32> to vector<8xf32>
    %630 = vector.shape_cast %629 : vector<8xf32> to vector<8x1xf32>
    %c0_249 = arith.constant 0 : index
    %c0_250 = arith.constant 0 : index
    %631 = vector.load %arg11[%c0_249, %c0_250] : memref<1x1xf32, #tpu.memory_space<vmem>>, vector<1x1xf32>
    %632 = vector.broadcast %631 : vector<1x1xf32> to vector<8x1xf32>
    %633 = arith.addf %630, %632 : vector<8x1xf32>
    %cst_251 = arith.constant 5.000000e-01 : f32
    %634 = vector.broadcast %cst_251 : f32 to vector<8x1xf32>
    %635 = arith.mulf %634, %633 : vector<8x1xf32>
    %636 = math.tanh %635 : vector<8x1xf32>
    %cst_252 = arith.constant 1.000000e+00 : f32
    %637 = vector.broadcast %cst_252 : f32 to vector<8x1xf32>
    %638 = arith.addf %636, %637 : vector<8x1xf32>
    %cst_253 = arith.constant 5.000000e-01 : f32
    %639 = vector.broadcast %cst_253 : f32 to vector<8x1xf32>
    %640 = arith.mulf %639, %638 : vector<8x1xf32>
    %c0_254 = arith.constant 0 : index
    %c0_255 = arith.constant 0 : index
    %641 = vector.load %arg12[%c0_254, %c0_255] : memref<8x1xf32, #tpu.memory_space<vmem>>, vector<8x1xf32>
    tpu.vector_store %arg12[%c0_254, %c0_255], %640 {strides = array<i32>} : memref<8x1xf32, #tpu.memory_space<vmem>>, vector<8x1xf32>,
    return
  }
}

</mosaic_0001>

<bundles_post_ra>
// kernel: d_model_forward.1
= control target key start
LH: loop header
LB: loop body
LE: loop exit
PB: predicated region body
PF: predicated region fallthrough
CT: control target
= control target key end

     0   :  { %v2361_v0 = vmov 0.0   ;;  %s2362_s21 = smov 64   ;;  %vm1823_vm0 = vcmask 130048   ;;  %vm1892_vm1 = vcmask 7168   ;;  %s5442_s2 = inlined_call_operand.vmem [shape: f32[128,512], index: 2, kind: input, shape index: {}]   ;;  %s5443_s0 = inlined_call_operand.vmem [shape: f32[64,512], index: 0, kind: input, shape index: {}]   ;;  %s5444_s3 = inlined_call_operand.vmem [shape: f32[128,512], index: 3, kind: input, shape index: {}]   ;;  %s5445_s4 = inlined_call_operand.vmem [shape: f32[1,512], index: 4, kind: input, shape index: {}]   ;;  %s5446_s5 = inlined_call_operand.vmem [shape: f32[128,16], index: 5, kind: input, shape index: {}]   ;;  %s5447_s6 = inlined_call_operand.vmem [shape: f32[1,16], index: 6, kind: input, shape index: {}]   ;;  %s5448_s7 = inlined_call_operand.vmem [shape: f32[16,128], index: 7, kind: input, shape index: {}]   ;;  %s5449_s8 = inlined_call_operand.vmem [shape: f32[16,128], index: 8, kind: input, shape index: {}]   ;;  %s5450_s1 = inlined_call_operand.vmem [shape: f32[8,16], index: 1, kind: input, shape index: {}]   ;;  %s5451_s9 = inlined_call_operand.vmem [shape: f32[1,128], index: 9, kind: input, shape index: {}]   ;;  %s5452_s10 = inlined_call_operand.vmem [shape: f32[1,128], index: 10, kind: input, shape index: {}]   ;;  %s5453_s11 = inlined_call_operand.<no memory space> [shape: f32[1,1], index: 11, kind: input, shape index: {}]   ;;  %s5454_s12 = inlined_call_operand.vmem [shape: f32[8,1], index: 12, kind: output, shape index: {}]  }
   0x1   :  { %220 = vrot.lane.b32.xlu0 %v2361_v0, %s2362_s21  ;;  %v2432_v1 = vld [vmem:[%s5442_s2 + $0x1e0] sm:$0xff]  ;;  %v2437_v2 = vld [vmem:[%s5442_s2 + $0x1e8] sm:$0xff]  ;;  %v2442_v3 = vld [vmem:[%s5442_s2 + $0x1f0] sm:$0xff] }
   0x2   :  { %136 = vmatpush.msra.mxu0 %v2432_v1  ;;  %156 = vmatpush.msra.mxu1 %v2437_v2  ;;  %v2449_v4 = vld [vmem:[%s5442_s2 + $0x1c0] sm:$0xff]  ;;  %v2454_v5 = vld [vmem:[%s5442_s2 + $0x1c8] sm:$0xff]  ;;  %v2459_v6 = vld [vmem:[%s5442_s2 + $0x1d0] sm:$0xff] }
   0x3   :  { %176 = vmatpush.msra.mxu2 %v2442_v3  ;;  %v2465_v7 = vld [vmem:[%s5442_s2 + $0x1a0] sm:$0xff]  ;;  %v2470_v8 = vld [vmem:[%s5442_s2 + $0x1a8] sm:$0xff]  ;;  %v2477_v9 = vld [vmem:[%s5442_s2 + $0x1b0] sm:$0xff] }
   0x4   :  { %137 = vmatpush.msra.mxu0 %v2449_v4  ;;  %157 = vmatpush.msra.mxu1 %v2454_v5  ;;  %v2482_v10 = vld [vmem:[%s5442_s2 + $0x1f8] sm:$0xff]  ;;  %v2489_v11 = vld [vmem:[%s5442_s2 + $0x180] sm:$0xff]  ;;  %v2494_v12 = vld [vmem:[%s5442_s2 + $0x188] sm:$0xff] }
   0x5   :  { %177 = vmatpush.msra.mxu2 %v2459_v6  ;;  %196 = vmatpush.msra.mxu3 %v2482_v10  ;;  %v2499_v13 = vld [vmem:[%s5442_s2 + $0x1d8] sm:$0xff]  ;;  %v2506_v14 = vld [vmem:[%s5442_s2 + $0x190] sm:$0xff]  ;;  %v2518_v16 = vld [vmem:[%s5442_s2 + $0x160] sm:$0xff] }
   0x6   :  { %138 = vmatpush.msra.mxu0 %v2465_v7  ;;  %158 = vmatpush.msra.mxu1 %v2470_v8  ;;  %v2511_v15 = vld [vmem:[%s5442_s2 + $0x1b8] sm:$0xff]  ;;  %v2523_v17 = vld [vmem:[%s5442_s2 + $0x168] sm:$0xff]  ;;  %v2530_v18 = vld [vmem:[%s5442_s2 + $0x170] sm:$0xff] }
   0x7   :  { %178 = vmatpush.msra.mxu2 %v2477_v9  ;;  %197 = vmatpush.msra.mxu3 %v2499_v13  ;;  %v2535_v19 = vld [vmem:[%s5442_s2 + $0x198] sm:$0xff]  ;;  %v2542_v20 = vld [vmem:[%s5442_s2 + $0x140] sm:$0xff]  ;;  %v2547_v21 = vld [vmem:[%s5442_s2 + $0x148] sm:$0xff] }
   0x8   :  { %139 = vmatpush.msra.mxu0 %v2489_v11  ;;  %159 = vmatpush.msra.mxu1 %v2494_v12  ;;  %v2554_v22 = vld [vmem:[%s5442_s2 + $0x150] sm:$0xff]  ;;  %v2559_v23 = vld [vmem:[%s5442_s2 + $0x178] sm:$0xff]  ;;  %v2566_v24 = vld [vmem:[%s5442_s2 + $0x120] sm:$0xff] }
   0x9   :  { %179 = vmatpush.msra.mxu2 %v2506_v14  ;;  %198 = vmatpush.msra.mxu3 %v2511_v15  ;;  %v2571_v25 = vld [vmem:[%s5442_s2 + $0x128] sm:$0xff]  ;;  %v2578_v26 = vld [vmem:[%s5442_s2 + $0x130] sm:$0xff]  ;;  %v2583_v27 = vld [vmem:[%s5442_s2 + $0x158] sm:$0xff] }
   0xa   :  { %140 = vmatpush.msra.mxu0 %v2518_v16  ;;  %160 = vmatpush.msra.mxu1 %v2523_v17  ;;  %v2590_v28 = vld [vmem:[%s5442_s2 + $0x100] sm:$0xff]  ;;  %v2595_v29 = vld [vmem:[%s5442_s2 + $0x108] sm:$0xff]  ;;  %v2602_v30 = vld [vmem:[%s5442_s2 + $0x110] sm:$0xff] }
   0xb   :  { %180 = vmatpush.msra.mxu2 %v2530_v18  ;;  %199 = vmatpush.msra.mxu3 %v2535_v19  ;;  %v2607_v31 = vld [vmem:[%s5442_s2 + $0x138] sm:$0xff]  ;;  %v2614_v32 = vld [vmem:[%s5442_s2 + $0xe0] sm:$0xff]  ;;  %v2619_v33 = vld [vmem:[%s5442_s2 + $0xe8] sm:$0xff] }
   0xc   :  { %141 = vmatpush.msra.mxu0 %v2542_v20  ;;  %161 = vmatpush.msra.mxu1 %v2547_v21  ;;  %v2626_v34 = vld [vmem:[%s5442_s2 + $0xf0] sm:$0xff]  ;;  %v2631_v35 = vld [vmem:[%s5442_s2 + $0x118] sm:$0xff]  ;;  %v2638_v36 = vld [vmem:[%s5442_s2 + $0xc0] sm:$0xff] }
   0xd   :  { %181 = vmatpush.msra.mxu2 %v2554_v22  ;;  %200 = vmatpush.msra.mxu3 %v2559_v23  ;;  %v2643_v37 = vld [vmem:[%s5442_s2 + $0xc8] sm:$0xff]  ;;  %v2650_v38 = vld [vmem:[%s5442_s2 + $0xd0] sm:$0xff]  ;;  %v2655_v39 = vld [vmem:[%s5442_s2 + $0xf8] sm:$0xff] }
   0xe   :  { %142 = vmatpush.msra.mxu0 %v2566_v24  ;;  %162 = vmatpush.msra.mxu1 %v2571_v25  ;;  %v2662_v40 = vld [vmem:[%s5442_s2 + $0xa0] sm:$0xff]  ;;  %v2667_v41 = vld [vmem:[%s5442_s2 + $0xa8] sm:$0xff]  ;;  %v2674_v42 = vld [vmem:[%s5442_s2 + $0xb0] sm:$0xff] }
   0xf   :  { %182 = vmatpush.msra.mxu2 %v2578_v26  ;;  %201 = vmatpush.msra.mxu3 %v2583_v27  ;;  %5778 = vst [vmem:[#allocation3_spill] sm:$0xff] %v2662_v40  ;;  %v2679_v43 = vld [vmem:[%s5442_s2 + $0x80] sm:$0xff]  ;;  %v2684_v44 = vld [vmem:[%s5442_s2 + $0xd8] sm:$0xff]  ;;  %v2691_v45 = vld [vmem:[%s5442_s2 + $0x88] sm:$0xff] }
  0x10   :  { %143 = vmatpush.msra.mxu0 %v2590_v28  ;;  %163 = vmatpush.msra.mxu1 %v2595_v29  ;;  %5779 = vst [vmem:[#allocation4_spill] sm:$0xff] %v2667_v41  ;;  %v43_v46 = vld [vmem:[%s5443_s0] sm:$0xff]  ;;  %v44_v47 = vld [vmem:[%s5443_s0 + $0x8] sm:$0xff]  ;;  %v2704_v48 = vld [vmem:[%s5442_s2 + $0x90] sm:$0xff] }
  0x11   :  { %183 = vmatpush.msra.mxu2 %v2602_v30  ;;  %202 = vmatpush.msra.mxu3 %v2607_v31  ;;  %5780 = vst [vmem:[#allocation5_spill] sm:$0xff] %v2674_v42  ;;  %v2709_v49 = vld [vmem:[%s5442_s2 + $0x60] sm:$0xff]  ;;  %v2714_v50 = vld [vmem:[%s5442_s2 + $0xb8] sm:$0xff]  ;;  %v47_v51 = vmul.f32 0.5, %v43_v46  ;;  %v51_v52 = vmul.f32 0.5, %v44_v47  ;;  %v2721_v53 = vld [vmem:[%s5442_s2 + $0x68] sm:$0xff] }
  0x12   :  { %144 = vmatpush.msra.mxu0 %v2614_v32  ;;  %164 = vmatpush.msra.mxu1 %v2619_v33  ;;  %5781 = vst [vmem:[#allocation6_spill] sm:$0xff] %v2679_v43  ;;  %v45_v54 = vld [vmem:[%s5443_s0 + $0x10] sm:$0xff]  ;;  %v46_v55 = vld [vmem:[%s5443_s0 + $0x18] sm:$0xff]  ;;  %v2746_v58 = vld [vmem:[%s5442_s2 + $0x40] sm:$0xff] }
  0x13   :  { %184 = vmatpush.msra.mxu2 %v2626_v34  ;;  %203 = vmatpush.msra.mxu3 %v2631_v35  ;;  %5782 = vst [vmem:[#allocation7_spill] sm:$0xff] %v2684_v44  ;;  %v2734_v56 = vld [vmem:[%s5442_s2 + $0x70] sm:$0xff]  ;;  %v2739_v57 = vld [vmem:[%s5442_s2 + $0x98] sm:$0xff]  ;;  %1941 = vtanh.f32 %v47_v51  ;;  %v2751_v59 = vld [vmem:[%s5442_s2 + $0x48] sm:$0xff]  ;;  %v56_v62 = vmul.f32 0.5, %v46_v55 }
  0x14   :  { %145 = vmatpush.msra.mxu0 %v2638_v36  ;;  %165 = vmatpush.msra.mxu1 %v2643_v37  ;;  %5783 = vst [vmem:[#allocation8_spill] sm:$0xff] %v2691_v45  ;;  %1943 = vtanh.f32 %v51_v52  ;;  %v2758_v60 = vld [vmem:[%s5442_s2 + $0x50] sm:$0xff]  ;;  %v2763_v61 = vld [vmem:[%s5442_s2 + $0x78] sm:$0xff]  ;;  %v2770_v63 = vld [vmem:[%s5442_s2 + $0x20] sm:$0xff] }
  0x15   :  { %185 = vmatpush.msra.mxu2 %v2650_v38  ;;  %204 = vmatpush.msra.mxu3 %v2655_v39  ;;  %5784 = vst [vmem:[#allocation9_spill] sm:$0xff] %v2704_v48  ;;  %1945 = vtanh.f32 %v45_v54  ;;  %v2775_v0 = vld [vmem:[%s5442_s2 + $0x28] sm:$0xff]  ;;  %v2782_v46 = vld [vmem:[%s5442_s2 + $0x30] sm:$0xff]  ;;  %v2787_v47 = vld [vmem:[%s5442_s2 + $0x58] sm:$0xff] }
  0x16   :  { %146 = vmatpush.msra.mxu0 %v2662_v40  ;;  %166 = vmatpush.msra.mxu1 %v2667_v41  ;;  %5785 = vst [vmem:[#allocation10_spill] sm:$0xff] %v2709_v49  ;;  %v2794_v51 = vld [vmem:[%s5442_s2] sm:$0xff]  ;;  %v2799_v52 = vld [vmem:[%s5442_s2 + $0x8] sm:$0xff]  ;;  %v2806_v55 = vld [vmem:[%s5442_s2 + $0x10] sm:$0xff]  ;;  %1947 = vtanh.f32 %v56_v62 }
  0x17   :  { %5786 = vst [vmem:[#allocation11_spill] sm:$0xff] %v2714_v50  ;;  %186 = vmatpush.msra.mxu2 %v2674_v42  ;;  %205 = vmatpush.msra.mxu3 %v2684_v44  ;;  %v2823_v62 = vld [vmem:[%s5444_s3 + $0x1e8] sm:$0xff] }
  0x18   :  { %147 = vmatpush.msra.mxu0 %v2679_v43  ;;  %167 = vmatpush.msra.mxu1 %v2691_v45  ;;  %5787 = vst [vmem:[#allocation12_spill] sm:$0xff] %v2734_v56 }
  0x19   :  { %5788 = vst [vmem:[#allocation13_spill] sm:$0xff] %v2739_v57  ;;  %187 = vmatpush.msra.mxu2 %v2704_v48  ;;  %206 = vmatpush.msra.mxu3 %v2714_v50  ;;  %v1942_v54 = vpop.eup %1941 }
  0x1a   :  { %5789 = vst [vmem:[#allocation14_spill] sm:$0xff] %v2746_v58  ;;  %148 = vmatpush.msra.mxu0 %v2709_v49  ;;  %168 = vmatpush.msra.mxu1 %v2721_v53 }
  0x1b   :  { %5790 = vst [vmem:[#allocation15_spill] sm:$0xff] %v2751_v59  ;;  %188 = vmatpush.msra.mxu2 %v2734_v56  ;;  %207 = vmatpush.msra.mxu3 %v2739_v57 }
  0x1c   :  { %5791 = vst [vmem:[#allocation16_spill] sm:$0xff] %v2758_v60  ;;  %149 = vmatpush.msra.mxu0 %v2746_v58  ;;  %169 = vmatpush.msra.mxu1 %v2751_v59  ;;  %v1944_v59 = vpop.eup %1943  ;;  %v49_v58 = vadd.f32 1.0, %v1942_v54  ;;  %v2830_v54 = vld [vmem:[%s5442_s2 + $0x18] sm:$0xff] }
  0x1d   :  { %5792 = vst [vmem:[#allocation17_spill] sm:$0xff] %v2763_v61  ;;  %189 = vmatpush.msra.mxu2 %v2758_v60  ;;  %208 = vmatpush.msra.mxu3 %v2763_v61  ;;  %v2811_v60 = vld [vmem:[%s5442_s2 + $0x38] sm:$0xff]  ;;  %v53_v61 = vadd.f32 1.0, %v1944_v59  ;;  %v2847_v59 = vld [vmem:[%s5444_s3 + $0x1c0] sm:$0xff] }
  0x1e   :  { %5793 = vst [vmem:[#allocation18_spill] sm:$0xff] %v2770_v63  ;;  %150 = vmatpush.msra.mxu0 %v2770_v63  ;;  %170 = vmatpush.msra.mxu1 %v2775_v0  ;;  %v1946_v63 = vpop.eup %1945 }
  0x1f   :  { %5794 = vst [vmem:[#allocation19_spill] sm:$0xff] %v2775_v0  ;;  %190 = vmatpush.msra.mxu2 %v2782_v46  ;;  %209 = vmatpush.msra.mxu3 %v2787_v47  ;;  %v2818_v0 = vld [vmem:[%s5444_s3 + $0x1e0] sm:$0xff] }
  0x20   :  { %5795 = vst [vmem:[#allocation20_spill] sm:$0xff] %v2782_v46  ;;  %151 = vmatpush.msra.mxu0 %v2794_v51  ;;  %171 = vmatpush.msra.mxu1 %v2799_v52  ;;  %v2835_v46 = vld [vmem:[%s5444_s3 + $0x1f0] sm:$0xff] }
  0x21   :  { %5796 = vst [vmem:[#allocation21_spill] sm:$0xff] %v2787_v47  ;;  %191 = vmatpush.msra.mxu2 %v2806_v55  ;;  %v50_v47 = vmul.f32 0.5, %v49_v58  ;;  %210 = vmatpush.msra.mxu3 %v2811_v60  ;;  %v2854_v58 = vld [vmem:[%s5444_s3 + $0x1c8] sm:$0xff] }
  0x22   :  { %5797 = vst [vmem:[#allocation22_spill] sm:$0xff] %v2794_v51  ;;  %v54_v51 = vmul.f32 0.5, %v53_v61  ;;  %297 = vmatpush.msrb.mxu0 %v2818_v0  ;;  %317 = vmatpush.msrb.mxu1 %v2823_v62  ;;  %v2866_v61 = vld [vmem:[%s5444_s3 + $0x1d8] sm:$0xff] }
  0x23   :  { %5798 = vst [vmem:[#allocation23_spill] sm:$0xff] %v2799_v52  ;;  %v2842_v52 = vld [vmem:[%s5444_s3 + $0x1f8] sm:$0xff]  ;;  %211 = vmatpush.msra.mxu3 %v2830_v54  ;;  %337 = vmatpush.msrb.mxu2 %v2835_v46 }
  0x24   :  { %5799 = vst [vmem:[#allocation24_spill] sm:$0xff] %v2806_v55  ;;  %v2859_v55 = vld [vmem:[%s5444_s3 + $0x1d0] sm:$0xff]  ;;  %v60_v56 = vmul.f32 0.0, %v54_v51  ;;  %298 = vmatpush.msrb.mxu0 %v2847_v59  ;;  %318 = vmatpush.msrb.mxu1 %v2854_v58  ;;  %v2890_v51 = vld [vmem:[%s5444_s3 + $0x1b8] sm:$0xff] }
  0x25   :  { %5800 = vst [vmem:[#allocation25_spill] sm:$0xff] %v2811_v60  ;;  %v61_v60 = vmul.f32 %v1946_v63, %v50_v47  ;;  %357 = vmatpush.msrb.mxu3 %v2842_v52  ;;  %v2878_v63 = vld [vmem:[%s5444_s3 + $0x1a8] sm:$0xff]  ;;  %v2883_v47 = vld [vmem:[%s5444_s3 + $0x1b0] sm:$0xff]  ;;  %338 = vmatpush.msrb.mxu2 %v2859_v55 }
  0x26   :  { %5801 = vst [vmem:[#allocation26_spill] sm:$0xff] %v2818_v0  ;;  %v1948_v0 = vpop.eup %1947  ;;  %319 = vmatpush.msrb.mxu1 %v2878_v63 }
  0x27   :  { %5802 = vst [vmem:[#allocation27_spill] sm:$0xff] %v2823_v62  ;;  %v2871_v62 = vld [vmem:[%s5444_s3 + $0x1a0] sm:$0xff]  ;;  %358 = vmatpush.msrb.mxu3 %v2866_v61  ;;  %339 = vmatpush.msrb.mxu2 %v2883_v47 }
  0x28   :  { %5803 = vst [vmem:[#allocation28_spill] sm:$0xff] %v2830_v54  ;;  %299 = vmatpush.msrb.mxu0 %v2871_v62 }
  0x29   :  { %5804 = vst [vmem:[#allocation29_spill] sm:$0xff] %v2835_v46  ;;  %v58_v46 = vadd.f32 1.0, %v1948_v0  ;;  %359 = vmatpush.msrb.mxu3 %v2890_v51  ;;  %v2929_v0 = vld [vmem:[%s5444_s3 + $0x168] sm:$0xff] }
  0x2a   :  { %5805 = vst [vmem:[#allocation30_spill] sm:$0xff] %v2842_v52  ;;  %v2897_v52 = vadd.f32 %v61_v60, %v60_v56  ;;  %v2916_v56 = vld [vmem:[%s5444_s3 + $0x198] sm:$0xff]  ;;  %v2921_v60 = vld [vmem:[%s5444_s3 + $0x160] sm:$0xff] }
  0x2b   :  { %5806 = vst [vmem:[#allocation31_spill] sm:$0xff] %v2847_v59  ;;  %v2895_v59 = vld [vmem:[%s5444_s3 + $0x180] sm:$0xff]  ;;  %360 = vmatpush.msrb.mxu3 %v2916_v56 }
  0x2c   :  { %5807 = vst [vmem:[#allocation32_spill] sm:$0xff] %v2854_v58  ;;  %v2909_v58 = vld [vmem:[%s5444_s3 + $0x190] sm:$0xff]  ;;  %1949 = vtanh.f32 %v2897_v52  ;;  %300 = vmatpush.msrb.mxu0 %v2895_v59 }
  0x2d   :  { %5808 = vst [vmem:[#allocation33_spill] sm:$0xff] %v2859_v55  ;;  %v2904_v55 = vld [vmem:[%s5444_s3 + $0x188] sm:$0xff]  ;;  %340 = vmatpush.msrb.mxu2 %v2909_v58 }
  0x2e   :  { %5809 = vst [vmem:[#allocation34_spill] sm:$0xff] %v2866_v61  ;;  %320 = vmatpush.msrb.mxu1 %v2904_v55  ;;  %301 = vmatpush.msrb.mxu0 %v2921_v60 }
  0x2f   :  { %5810 = vst [vmem:[#allocation35_spill] sm:$0xff] %v2871_v62 }
  0x30   :  { %5811 = vst [vmem:[#allocation36_spill] sm:$0xff] %v2878_v63  ;;  %321 = vmatpush.msrb.mxu1 %v2929_v0 }
  0x31   :  { %5812 = vst [vmem:[#allocation37_spill] sm:$0xff] %v2883_v47  ;;  %v2934_v47 = vld [vmem:[%s5444_s3 + $0x170] sm:$0xff] }
  0x32   :  { %5813 = vst [vmem:[#allocation38_spill] sm:$0xff] %v2890_v51  ;;  %v59_v51 = vmul.f32 0.5, %v58_v46  ;;  %341 = vmatpush.msrb.mxu2 %v2934_v47  ;;  %v2977_v46 = vld [vmem:[%s5444_s3 + $0x128] sm:$0xff] }
  0x33   :  { %5814 = vst [vmem:[#allocation39_spill] sm:$0xff] %v2895_v59  ;;  %v2946_v59 = vld [vmem:[%s5444_s3 + $0x140] sm:$0xff] }
  0x34   :  { %5815 = vst [vmem:[#allocation40_spill] sm:$0xff] %v2897_v52  ;;  %v2941_v52 = vld [vmem:[%s5444_s3 + $0x178] sm:$0xff]  ;;  %302 = vmatpush.msrb.mxu0 %v2946_v59 }
  0x35   :  { %5816 = vst [vmem:[#allocation41_spill] sm:$0xff] %v2904_v55  ;;  %v2953_v55 = vld [vmem:[%s5444_s3 + $0x148] sm:$0xff]  ;;  %361 = vmatpush.msrb.mxu3 %v2941_v52 }
  0x36   :  { %5817 = vst [vmem:[#allocation42_spill] sm:$0xff] %v2909_v58  ;;  %v2958_v58 = vld [vmem:[%s5444_s3 + $0x150] sm:$0xff]  ;;  %322 = vmatpush.msrb.mxu1 %v2953_v55 }
  0x37   :  { %5818 = vst [vmem:[#allocation43_spill] sm:$0xff] %v2916_v56  ;;  %v2965_v56 = vld [vmem:[%s5444_s3 + $0x158] sm:$0xff]  ;;  %342 = vmatpush.msrb.mxu2 %v2958_v58 }
  0x38   :  { %5819 = vst [vmem:[#allocation44_spill] sm:$0xff] %v2921_v60  ;;  %v2970_v60 = vld [vmem:[%s5444_s3 + $0x120] sm:$0xff]  ;;  %362 = vmatpush.msrb.mxu3 %v2965_v56  ;;  %323 = vmatpush.msrb.mxu1 %v2977_v46 }
  0x39   :  { %5820 = vst [vmem:[#allocation45_spill] sm:$0xff] %v2929_v0  ;;  %v1950_v0 = vpop.eup %1949  ;;  %303 = vmatpush.msrb.mxu0 %v2970_v60 }
  0x3a   :  { %5821 = vst [vmem:[#allocation46_spill] sm:$0xff] %v2934_v47  ;;  %v2982_v47 = vld [vmem:[%s5444_s3 + $0x130] sm:$0xff]  ;;  %v2998_v63 = vmul.f32 %v1950_v0, %v59_v51  ;;  %v3019_v51 = vld [vmem:[%s5444_s3 + $0x118] sm:$0xff]  ;;  %v3024_v0 = vld [vmem:[%s5444_s3 + $0xe0] sm:$0xff] }
  0x3b   :  { %5822 = vst [vmem:[#allocation47_spill] sm:$0xff] %v2941_v52  ;;  %v2989_v52 = vld [vmem:[%s5444_s3 + $0x138] sm:$0xff]  ;;  %343 = vmatpush.msrb.mxu2 %v2982_v47 }
  0x3c   :  { %5823 = vst [vmem:[#allocation48_spill] sm:$0xff] %v2946_v59  ;;  %v2994_v59 = vld [vmem:[%s5444_s3 + $0x100] sm:$0xff]  ;;  %363 = vmatpush.msrb.mxu3 %v2989_v52  ;;  %152 = vmatmul.f32.vlgmr.msra.gmra.mxu0 %v2998_v63 }
  0x3d   :  { %5824 = vst [vmem:[#allocation49_spill] sm:$0xff] %v2953_v55  ;;  %304 = vmatpush.msrb.mxu0 %v2994_v59  ;;  %172 = vmatmul.f32.vlgmr.msra.gmra.mxu1 %v2998_v63 }
  0x3e   :  { %5825 = vst [vmem:[#allocation50_spill] sm:$0xff] %v2958_v58  ;;  %v3007_v58 = vld [vmem:[%s5444_s3 + $0x108] sm:$0xff]  ;;  %192 = vmatmul.f32.vlgmr.msra.gmra.mxu2 %v2998_v63  ;;  %212 = vmatmul.f32.vlgmr.msra.gmra.mxu3 %v2998_v63 }
  0x3f   :  { %5826 = vst [vmem:[#allocation51_spill] sm:$0xff] %v2965_v56  ;;  %v3012_v56 = vld [vmem:[%s5444_s3 + $0x110] sm:$0xff]  ;;  %324 = vmatpush.msrb.mxu1 %v3007_v58  ;;  %364 = vmatpush.msrb.mxu3 %v3019_v51 }
  0x40   :  { %5827 = vst [vmem:[#allocation52_spill] sm:$0xff] %v2970_v60  ;;  %344 = vmatpush.msrb.mxu2 %v3012_v56  ;;  %305 = vmatpush.msrb.mxu0 %v3024_v0 }
  0x41   :  { %5828 = vst [vmem:[#allocation53_spill] sm:$0xff] %v2977_v46  ;;  %v3048_v46 = vld [vmem:[%s5444_s3 + $0xc0] sm:$0xff] }
  0x42   :  { %5829 = vst [vmem:[#allocation54_spill] sm:$0xff] %v2982_v47  ;;  %v3043_v47 = vld [vmem:[%s5444_s3 + $0xf8] sm:$0xff]  ;;  %306 = vmatpush.msrb.mxu0 %v3048_v46 }
  0x43   :  { %5830 = vst [vmem:[#allocation55_spill] sm:$0xff] %v2989_v52  ;;  %v3036_v52 = vld [vmem:[%s5444_s3 + $0xf0] sm:$0xff]  ;;  %365 = vmatpush.msrb.mxu3 %v3043_v47 }
  0x44   :  { %5831 = vst [vmem:[#allocation56_spill] sm:$0xff] %v2994_v59  ;;  %v3031_v59 = vld [vmem:[%s5444_s3 + $0xe8] sm:$0xff]  ;;  %345 = vmatpush.msrb.mxu2 %v3036_v52 }
  0x45   :  { %5832 = vst [vmem:[#allocation57_spill] sm:$0xff] %v3007_v58  ;;  %v3055_v58 = vld [vmem:[%s5444_s3 + $0xc8] sm:$0xff]  ;;  %325 = vmatpush.msrb.mxu1 %v3031_v59 }
  0x46   :  { %5833 = vst [vmem:[#allocation58_spill] sm:$0xff] %v3012_v56  ;;  %v3060_v56 = vld [vmem:[%s5444_s3 + $0xd0] sm:$0xff] }
  0x47   :  { %5834 = vst [vmem:[#allocation59_spill] sm:$0xff] %v3019_v51  ;;  %v3067_v51 = vld [vmem:[%s5444_s3 + $0xd8] sm:$0xff]  ;;  %326 = vmatpush.msrb.mxu1 %v3055_v58  ;;  %346 = vmatpush.msrb.mxu2 %v3060_v56 }
  0x48   :  { %5835 = vst [vmem:[#allocation60_spill] sm:$0xff] %v3024_v0  ;;  %v3072_v0 = vld [vmem:[%s5444_s3 + $0xa0] sm:$0xff]  ;;  %366 = vmatpush.msrb.mxu3 %v3067_v51 }
  0x49   :  { %5836 = vst [vmem:[#allocation61_spill] sm:$0xff] %v3031_v59  ;;  %v3079_v59 = vld [vmem:[%s5444_s3 + $0xa8] sm:$0xff]  ;;  %307 = vmatpush.msrb.mxu0 %v3072_v0 }
  0x4a   :  { %5837 = vst [vmem:[#allocation62_spill] sm:$0xff] %v3036_v52  ;;  %v3084_v52 = vld [vmem:[%s5444_s3 + $0xb0] sm:$0xff]  ;;  %327 = vmatpush.msrb.mxu1 %v3079_v59 }
  0x4b   :  { %5838 = vst [vmem:[#allocation63_spill] sm:$0xff] %v3043_v47  ;;  %v3091_v47 = vld [vmem:[%s5444_s3 + $0xb8] sm:$0xff]  ;;  %347 = vmatpush.msrb.mxu2 %v3084_v52 }
  0x4c   :  { %5839 = vst [vmem:[#allocation64_spill] sm:$0xff] %v3048_v46  ;;  %v3096_v46 = vld [vmem:[%s5444_s3 + $0x80] sm:$0xff]  ;;  %367 = vmatpush.msrb.mxu3 %v3091_v47 }
  0x4d   :  { %5840 = vst [vmem:[#allocation65_spill] sm:$0xff] %v3055_v58  ;;  %v3103_v58 = vld [vmem:[%s5444_s3 + $0x88] sm:$0xff]  ;;  %308 = vmatpush.msrb.mxu0 %v3096_v46 }
  0x4e   :  { %5841 = vst [vmem:[#allocation66_spill] sm:$0xff] %v3060_v56  ;;  %v3108_v56 = vld [vmem:[%s5444_s3 + $0x90] sm:$0xff]  ;;  %328 = vmatpush.msrb.mxu1 %v3103_v58 }
  0x4f   :  { %5842 = vst [vmem:[#allocation67_spill] sm:$0xff] %v3067_v51  ;;  %v3115_v51 = vld [vmem:[%s5444_s3 + $0x98] sm:$0xff]  ;;  %348 = vmatpush.msrb.mxu2 %v3108_v56 }
  0x50   :  { %5843 = vst [vmem:[#allocation68_spill] sm:$0xff] %v3072_v0  ;;  %v3120_v0 = vld [vmem:[%s5444_s3 + $0x60] sm:$0xff]  ;;  %368 = vmatpush.msrb.mxu3 %v3115_v51 }
  0x51   :  { %5844 = vst [vmem:[#allocation69_spill] sm:$0xff] %v3079_v59  ;;  %v3127_v59 = vld [vmem:[%s5444_s3 + $0x68] sm:$0xff]  ;;  %309 = vmatpush.msrb.mxu0 %v3120_v0 }
  0x52   :  { %5845 = vst [vmem:[#allocation70_spill] sm:$0xff] %v3084_v52  ;;  %v3132_v52 = vld [vmem:[%s5444_s3 + $0x70] sm:$0xff]  ;;  %329 = vmatpush.msrb.mxu1 %v3127_v59 }
  0x53   :  { %5846 = vst [vmem:[#allocation71_spill] sm:$0xff] %v3091_v47  ;;  %v3139_v47 = vld [vmem:[%s5444_s3 + $0x78] sm:$0xff]  ;;  %349 = vmatpush.msrb.mxu2 %v3132_v52 }
  0x54   :  { %5847 = vst [vmem:[#allocation72_spill] sm:$0xff] %v3096_v46  ;;  %v3144_v46 = vld [vmem:[%s5444_s3 + $0x40] sm:$0xff]  ;;  %369 = vmatpush.msrb.mxu3 %v3139_v47 }
  0x55   :  { %5848 = vst [vmem:[#allocation73_spill] sm:$0xff] %v3103_v58  ;;  %v3151_v58 = vld [vmem:[%s5444_s3 + $0x48] sm:$0xff]  ;;  %310 = vmatpush.msrb.mxu0 %v3144_v46 }
  0x56   :  { %5849 = vst [vmem:[#allocation74_spill] sm:$0xff] %v3108_v56  ;;  %v3156_v56 = vld [vmem:[%s5444_s3 + $0x50] sm:$0xff]  ;;  %330 = vmatpush.msrb.mxu1 %v3151_v58 }
  0x57   :  { %5850 = vst [vmem:[#allocation75_spill] sm:$0xff] %v3115_v51  ;;  %v3163_v51 = vld [vmem:[%s5444_s3 + $0x58] sm:$0xff]  ;;  %350 = vmatpush.msrb.mxu2 %v3156_v56 }
  0x58   :  { %5851 = vst [vmem:[#allocation76_spill] sm:$0xff] %v3120_v0  ;;  %370 = vmatpush.msrb.mxu3 %v3163_v51 }
  0x59   :  { %5852 = vst [vmem:[#allocation77_spill] sm:$0xff] %v3127_v59  ;;  %v3173_v59 = vld [vmem:[%s5444_s3 + $0x20] sm:$0xff] }
  0x5a   :  { %5853 = vst [vmem:[#allocation78_spill] sm:$0xff] %v3132_v52  ;;  %v3178_v52 = vld [vmem:[%s5444_s3 + $0x28] sm:$0xff]  ;;  %311 = vmatpush.msrb.mxu0 %v3173_v59 }
  0x5b   :  { %5854 = vst [vmem:[#allocation79_spill] sm:$0xff] %v3139_v47  ;;  %331 = vmatpush.msrb.mxu1 %v3178_v52 }
  0x5c   :  { %5855 = vst [vmem:[#allocation80_spill] sm:$0xff] %v3144_v46  ;;  %v3183_v46 = vld [vmem:[%s5444_s3 + $0x30] sm:$0xff] }
  0x5d   :  { %5856 = vst [vmem:[#allocation81_spill] sm:$0xff] %v3151_v58  ;;  %v3200_v58 = vld [vmem:[%s5444_s3 + $0x8] sm:$0xff]  ;;  %351 = vmatpush.msrb.mxu2 %v3183_v46 }
  0x5e   :  { %5857 = vst [vmem:[#allocation82_spill] sm:$0xff] %v3156_v56  ;;  %v3195_v56 = vld [vmem:[%s5444_s3] sm:$0xff]  ;;  %332 = vmatpush.msrb.mxu1 %v3200_v58 }
  0x5f   :  { %5858 = vst [vmem:[#allocation83_spill] sm:$0xff] %v3163_v51  ;;  %v3190_v51 = vld [vmem:[%s5444_s3 + $0x38] sm:$0xff]  ;;  %312 = vmatpush.msrb.mxu0 %v3195_v56 }
  0x60   :  { %5859 = vst [vmem:[#allocation84_spill] sm:$0xff] %v3173_v59  ;;  %371 = vmatpush.msrb.mxu3 %v3190_v51  ;;  %v3212_v59 = vld [vmem:[%s5444_s3 + $0x18] sm:$0xff]  ;;  %440 = vmatpush.msra.mxu1 %v2437_v2 }
  0x61   :  { %5860 = vst [vmem:[#allocation85_spill] sm:$0xff] %v3178_v52  ;;  %v3207_v52 = vld [vmem:[%s5444_s3 + $0x10] sm:$0xff]  ;;  %420 = vmatpush.msra.mxu0 %v2432_v1 }
  0x62   :  { %5861 = vst [vmem:[#allocation86_spill] sm:$0xff] %v3183_v46  ;;  %352 = vmatpush.msrb.mxu2 %v3207_v52  ;;  %372 = vmatpush.msrb.mxu3 %v3212_v59 }
  0x63   :  { %5862 = vst [vmem:[#allocation87_spill] sm:$0xff] %v3190_v51  ;;  %421 = vmatpush.msra.mxu0 %v2449_v4  ;;  %441 = vmatpush.msra.mxu1 %v2454_v5 }
  0x64   :  { %5863 = vst [vmem:[#allocation88_spill] sm:$0xff] %v3195_v56  ;;  %460 = vmatpush.msra.mxu2 %v2442_v3  ;;  %480 = vmatpush.msra.mxu3 %v2482_v10 }
  0x65   :  { %5864 = vst [vmem:[#allocation89_spill] sm:$0xff] %v3200_v58  ;;  %422 = vmatpush.msra.mxu0 %v2465_v7  ;;  %442 = vmatpush.msra.mxu1 %v2470_v8 }
  0x66   :  { %5865 = vst [vmem:[#allocation90_spill] sm:$0xff] %v3207_v52  ;;  %461 = vmatpush.msra.mxu2 %v2459_v6  ;;  %481 = vmatpush.msra.mxu3 %v2499_v13 }
  0x67   :  { %5866 = vst [vmem:[#allocation91_spill] sm:$0xff] %v3212_v59  ;;  %423 = vmatpush.msra.mxu0 %v2489_v11  ;;  %443 = vmatpush.msra.mxu1 %v2494_v12 }
  0x68   :  { %462 = vmatpush.msra.mxu2 %v2477_v9  ;;  %482 = vmatpush.msra.mxu3 %v2511_v15 }
  0x69   :  { %424 = vmatpush.msra.mxu0 %v2518_v16  ;;  %444 = vmatpush.msra.mxu1 %v2523_v17 }
  0x6a   :  { %463 = vmatpush.msra.mxu2 %v2506_v14  ;;  %483 = vmatpush.msra.mxu3 %v2535_v19 }
  0x6b   :  { %425 = vmatpush.msra.mxu0 %v2542_v20  ;;  %445 = vmatpush.msra.mxu1 %v2547_v21 }
  0x6c   :  { %464 = vmatpush.msra.mxu2 %v2530_v18  ;;  %484 = vmatpush.msra.mxu3 %v2559_v23 }
  0x6d   :  { %426 = vmatpush.msra.mxu0 %v2566_v24  ;;  %446 = vmatpush.msra.mxu1 %v2571_v25 }
  0x6e   :  { %465 = vmatpush.msra.mxu2 %v2554_v22  ;;  %485 = vmatpush.msra.mxu3 %v2583_v27 }
  0x6f   :  { %427 = vmatpush.msra.mxu0 %v2590_v28  ;;  %447 = vmatpush.msra.mxu1 %v2595_v29 }
  0x70   :  { %466 = vmatpush.msra.mxu2 %v2578_v26  ;;  %486 = vmatpush.msra.mxu3 %v2607_v31 }
  0x71   :  { %428 = vmatpush.msra.mxu0 %v2614_v32  ;;  %448 = vmatpush.msra.mxu1 %v2619_v33 }
  0x72   :  { %467 = vmatpush.msra.mxu2 %v2602_v30  ;;  %487 = vmatpush.msra.mxu3 %v2631_v35 }
  0x73   :  { %429 = vmatpush.msra.mxu0 %v2638_v36  ;;  %449 = vmatpush.msra.mxu1 %v2643_v37 }
  0x74   :  { %468 = vmatpush.msra.mxu2 %v2626_v34  ;;  %488 = vmatpush.msra.mxu3 %v2655_v39 }
  0x75   :  { %430 = vmatpush.msra.mxu0 %v2662_v40  ;;  %450 = vmatpush.msra.mxu1 %v2667_v41  ;;  %v5868_v40 = vld [vmem:[#allocation17_spill] sm:$0xff]  ;;  %v221_v41 = vpop.permute.xlu0 %220 }
  0x76   :  { %469 = vmatpush.msra.mxu2 %v2650_v38  ;;  %489 = vmatpush.msra.mxu3 %v2684_v44  ;;  %v5867_v44 = vld [vmem:[#allocation12_spill] sm:$0xff] }
  0x77   :  { %431 = vmatpush.msra.mxu0 %v2679_v43  ;;  %451 = vmatpush.msra.mxu1 %v2691_v45  ;;  %v222_v43 = vadd.f32 %v221_v41, %v2998_v63  ;;  %v5871_v45 = vld [vmem:[#allocation16_spill] sm:$0xff]  ;;  %v5880_v63 = vld [vmem:[#allocation26_spill] sm:$0xff] }
  0x78   :  { %470 = vmatpush.msra.mxu2 %v2674_v42  ;;  %490 = vmatpush.msra.mxu3 %v2714_v50  ;;  %v5869_v42 = vld [vmem:[#allocation14_spill] sm:$0xff]  ;;  %v5870_v50 = vld [vmem:[#allocation15_spill] sm:$0xff]  ;;  %v5879_v41 = vld [vmem:[#allocation24_spill] sm:$0xff] }
  0x79   :  { %432 = vmatpush.msra.mxu0 %v2709_v49  ;;  %452 = vmatpush.msra.mxu1 %v2721_v53  ;;  %v5874_v49 = vld [vmem:[#allocation19_spill] sm:$0xff] }
  0x7a   :  { %471 = vmatpush.msra.mxu2 %v2704_v48  ;;  %491 = vmatpush.msra.mxu3 %v2739_v57  ;;  %v5872_v48 = vld [vmem:[#allocation21_spill] sm:$0xff]  ;;  %v5873_v57 = vld [vmem:[#allocation18_spill] sm:$0xff] }
  0x7b   :  { %433 = vmatpush.msra.mxu0 %v5869_v42  ;;  %453 = vmatpush.msra.mxu1 %v5870_v50  ;;  %v5877_v42 = vld [vmem:[#allocation23_spill] sm:$0xff]  ;;  %v5878_v50 = vld [vmem:[#allocation25_spill] sm:$0xff] }
  0x7c   :  { %472 = vmatpush.msra.mxu2 %v5867_v44  ;;  %492 = vmatpush.msra.mxu3 %v5868_v40  ;;  %v5875_v40 = vld [vmem:[#allocation20_spill] sm:$0xff]  ;;  %v5876_v44 = vld [vmem:[#allocation22_spill] sm:$0xff] }
  0x7d   :  { %434 = vmatpush.msra.mxu0 %v5873_v57  ;;  %454 = vmatpush.msra.mxu1 %v5874_v49  ;;  %v5881_v57 = vld [vmem:[#allocation27_spill] sm:$0xff]  ;;  %v5882_v49 = vld [vmem:[#allocation29_spill] sm:$0xff] }
  0x7e   :  { %473 = vmatpush.msra.mxu2 %v5871_v45  ;;  %493 = vmatpush.msra.mxu3 %v5872_v48  ;;  %v5883_v48 = vld [vmem:[#allocation30_spill] sm:$0xff] }
  0x7f   :  { %313 = vmatmul.f32.vlgmr.msrb.gmra.mxu0 %v222_v43  ;;  %333 = vmatmul.f32.vlgmr.msrb.gmra.mxu1 %v222_v43 }
  0x80   :  { %353 = vmatmul.f32.vlgmr.msrb.gmra.mxu2 %v222_v43  ;;  %373 = vmatmul.f32.vlgmr.msrb.gmra.mxu3 %v222_v43  ;;  %v5884_v43 = vld [vmem:[#allocation31_spill] sm:$0xff] }
  0x81   :  { %474 = vmatpush.msra.mxu2 %v5875_v40  ;;  %435 = vmatpush.msra.mxu0 %v5876_v44  ;;  %v5885_v40 = vld [vmem:[#allocation32_spill] sm:$0xff]  ;;  %v5886_v44 = vld [vmem:[#allocation33_spill] sm:$0xff] }
  0x82   :  { %455 = vmatpush.msra.mxu1 %v5877_v42  ;;  %494 = vmatpush.msra.mxu3 %v5878_v50 }
  0x83   :  { %475 = vmatpush.msra.mxu2 %v5879_v41  ;;  %507 = vmatpush.msrb.mxu0 %v5880_v63  ;;  %v5887_v41 = vld [vmem:[#allocation36_spill] sm:$0xff]  ;;  %v5888_v63 = vld [vmem:[#allocation37_spill] sm:$0xff] }
  0x84   :  { %495 = vmatpush.msra.mxu3 %v2830_v54  ;;  %527 = vmatpush.msrb.mxu1 %v5881_v57  ;;  %v5889_v54 = vld [vmem:[#allocation38_spill] sm:$0xff]  ;;  %v5890_v57 = vld [vmem:[#allocation39_spill] sm:$0xff] }
  0x85   :  { %547 = vmatpush.msrb.mxu2 %v5882_v49  ;;  %508 = vmatpush.msrb.mxu0 %v5884_v43  ;;  %v5891_v49 = vld [vmem:[#allocation41_spill] sm:$0xff]  ;;  %v5893_v43 = vld [vmem:[#allocation43_spill] sm:$0xff] }
  0x86   :  { %567 = vmatpush.msrb.mxu3 %v5883_v48  ;;  %528 = vmatpush.msrb.mxu1 %v5885_v40  ;;  %v5892_v48 = vld [vmem:[#allocation42_spill] sm:$0xff]  ;;  %v5894_v40 = vld [vmem:[#allocation44_spill] sm:$0xff] }
  0x87   :  { %548 = vmatpush.msrb.mxu2 %v5886_v44  ;;  %509 = vmatpush.msrb.mxu0 %v2871_v62  ;;  %v5895_v44 = vld [vmem:[#allocation45_spill] sm:$0xff]  ;;  %v5897_v62 = vld [vmem:[#allocation47_spill] sm:$0xff] }
  0x88   :  { %568 = vmatpush.msrb.mxu3 %v2866_v61  ;;  %529 = vmatpush.msrb.mxu1 %v5887_v41  ;;  %v5896_v61 = vld [vmem:[#allocation46_spill] sm:$0xff]  ;;  %v5898_v41 = vld [vmem:[#allocation48_spill] sm:$0xff] }
  0x89   :  { %549 = vmatpush.msrb.mxu2 %v5888_v63  ;;  %510 = vmatpush.msrb.mxu0 %v5890_v57  ;;  %v5900_v57 = vld [vmem:[#allocation51_spill] sm:$0xff] }
  0x8a   :  { %569 = vmatpush.msrb.mxu3 %v5889_v54  ;;  %530 = vmatpush.msrb.mxu1 %v5891_v49  ;;  %v5899_v54 = vld [vmem:[#allocation50_spill] sm:$0xff] }
  0x8b   :  { %550 = vmatpush.msrb.mxu2 %v5892_v48  ;;  %511 = vmatpush.msrb.mxu0 %v5894_v40  ;;  %v5901_v48 = vld [vmem:[#allocation53_spill] sm:$0xff]  ;;  %v5903_v40 = vld [vmem:[#allocation55_spill] sm:$0xff] }
  0x8c   :  { %570 = vmatpush.msrb.mxu3 %v5893_v43  ;;  %531 = vmatpush.msrb.mxu1 %v5895_v44  ;;  %v5902_v43 = vld [vmem:[#allocation54_spill] sm:$0xff]  ;;  %v5904_v44 = vld [vmem:[#allocation56_spill] sm:$0xff] }
  0x8d   :  { %551 = vmatpush.msrb.mxu2 %v5896_v61  ;;  %512 = vmatpush.msrb.mxu0 %v5898_v41  ;;  %v5905_v61 = vld [vmem:[#allocation57_spill] sm:$0xff]  ;;  %v5907_v41 = vld [vmem:[#allocation59_spill] sm:$0xff] }
  0x8e   :  { %571 = vmatpush.msrb.mxu3 %v5897_v62  ;;  %532 = vmatpush.msrb.mxu1 %v2953_v55  ;;  %v5906_v62 = vld [vmem:[#allocation58_spill] sm:$0xff]  ;;  %v5908_v55 = vld [vmem:[#allocation60_spill] sm:$0xff] }
  0x8f   :  { %552 = vmatpush.msrb.mxu2 %v5899_v54  ;;  %513 = vmatpush.msrb.mxu0 %v2970_v60  ;;  %v5909_v54 = vld [vmem:[#allocation61_spill] sm:$0xff]  ;;  %v5911_v60 = vld [vmem:[#allocation63_spill] sm:$0xff] }
  0x90   :  { %572 = vmatpush.msrb.mxu3 %v5900_v57  ;;  %533 = vmatpush.msrb.mxu1 %v5901_v48  ;;  %v5910_v57 = vld [vmem:[#allocation62_spill] sm:$0xff]  ;;  %v5912_v48 = vld [vmem:[#allocation64_spill] sm:$0xff] }
  0x91   :  { %553 = vmatpush.msrb.mxu2 %v5902_v43  ;;  %514 = vmatpush.msrb.mxu0 %v5904_v44  ;;  %v5913_v43 = vld [vmem:[#allocation65_spill] sm:$0xff]  ;;  %v5915_v44 = vld [vmem:[#allocation67_spill] sm:$0xff] }
  0x92   :  { %573 = vmatpush.msrb.mxu3 %v5903_v40  ;;  %534 = vmatpush.msrb.mxu1 %v5905_v61  ;;  %v5914_v40 = vld [vmem:[#allocation66_spill] sm:$0xff]  ;;  %v5916_v61 = vld [vmem:[#allocation68_spill] sm:$0xff] }
  0x93   :  { %554 = vmatpush.msrb.mxu2 %v5906_v62  ;;  %515 = vmatpush.msrb.mxu0 %v5908_v55  ;;  %v5917_v62 = vld [vmem:[#allocation69_spill] sm:$0xff]  ;;  %v5919_v55 = vld [vmem:[#allocation71_spill] sm:$0xff] }
  0x94   :  { %574 = vmatpush.msrb.mxu3 %v5907_v41  ;;  %535 = vmatpush.msrb.mxu1 %v5909_v54  ;;  %v5918_v41 = vld [vmem:[#allocation70_spill] sm:$0xff]  ;;  %v5920_v54 = vld [vmem:[#allocation72_spill] sm:$0xff] }
  0x95   :  { %555 = vmatpush.msrb.mxu2 %v5910_v57  ;;  %516 = vmatpush.msrb.mxu0 %v5912_v48  ;;  %v5921_v57 = vld [vmem:[#allocation73_spill] sm:$0xff]  ;;  %v5923_v48 = vld [vmem:[#allocation75_spill] sm:$0xff] }
  0x96   :  { %575 = vmatpush.msrb.mxu3 %v5911_v60  ;;  %536 = vmatpush.msrb.mxu1 %v5913_v43  ;;  %v5922_v60 = vld [vmem:[#allocation74_spill] sm:$0xff] }
  0x97   :  { %556 = vmatpush.msrb.mxu2 %v5914_v40  ;;  %517 = vmatpush.msrb.mxu0 %v5916_v61  ;;  %v5924_v40 = vld [vmem:[#allocation77_spill] sm:$0xff] }
  0x98   :  { %576 = vmatpush.msrb.mxu3 %v5915_v44  ;;  %537 = vmatpush.msrb.mxu1 %v5917_v62  ;;  %v5925_v44 = vld [vmem:[#allocation78_spill] sm:$0xff]  ;;  %v5926_v62 = vld [vmem:[#allocation80_spill] sm:$0xff] }
  0x99   :  { %557 = vmatpush.msrb.mxu2 %v5918_v41  ;;  %518 = vmatpush.msrb.mxu0 %v5920_v54  ;;  %v5927_v41 = vld [vmem:[#allocation81_spill] sm:$0xff]  ;;  %v5929_v54 = vld [vmem:[#allocation83_spill] sm:$0xff] }
  0x9a   :  { %577 = vmatpush.msrb.mxu3 %v5919_v55  ;;  %538 = vmatpush.msrb.mxu1 %v5921_v57  ;;  %v5928_v55 = vld [vmem:[#allocation82_spill] sm:$0xff]  ;;  %v5930_v57 = vld [vmem:[#allocation84_spill] sm:$0xff] }
  0x9b   :  { %558 = vmatpush.msrb.mxu2 %v5922_v60  ;;  %519 = vmatpush.msrb.mxu0 %v3120_v0  ;;  %v5931_v60 = vld [vmem:[#allocation85_spill] sm:$0xff]  ;;  %v5932_v0 = vld [vmem:[#allocation40_spill] sm:$0xff] }
  0x9c   :  { %578 = vmatpush.msrb.mxu3 %v5923_v48  ;;  %539 = vmatpush.msrb.mxu1 %v5924_v40 }
  0x9d   :  { %559 = vmatpush.msrb.mxu2 %v5925_v44  ;;  %520 = vmatpush.msrb.mxu0 %v5926_v62 }
  0x9e   :  { %579 = vmatpush.msrb.mxu3 %v3139_v47  ;;  %540 = vmatpush.msrb.mxu1 %v5927_v41 }
  0x9f   :  { %560 = vmatpush.msrb.mxu2 %v5928_v55  ;;  %521 = vmatpush.msrb.mxu0 %v5930_v57 }
  0xa0   :  { %580 = vmatpush.msrb.mxu3 %v5929_v54  ;;  %541 = vmatpush.msrb.mxu1 %v5931_v60  ;;  %v1905_v54 = vld [vmem:[%s5443_s0 + $0x20] sm:$0xff]  ;;  %v1906_v60 = vld [vmem:[%s5443_s0 + $0x28] sm:$0xff] }
  0xa1   :  { %561 = vmatpush.msrb.mxu2 %v3183_v46  ;;  %522 = vmatpush.msrb.mxu0 %v3195_v56 }
  0xa2   :  { %581 = vmatpush.msrb.mxu3 %v3190_v51  ;;  %542 = vmatpush.msrb.mxu1 %v3200_v58 }
  0xa3   :  { %562 = vmatpush.msrb.mxu2 %v3207_v52  ;;  %v1907_v52 = vld [vmem:[%s5443_s0 + $0x30] sm:$0xff] }
  0xa4   :  { %582 = vmatpush.msrb.mxu3 %v3212_v59  ;;  %v1908_v59 = vld [vmem:[%s5443_s0 + $0x38] sm:$0xff] }
  0xb9   :  { %v153_v57 = vpop.f32.mrf.mxu0 }
  0xba   :  { %v173_v46 = vpop.f32.mrf.mxu1  ;;  %v216_v55 = vadd.f32 %v1905_v54, %v153_v57 }
  0xbb   :  { %v217_v51 = vadd.f32 %v1906_v60, %v173_v46 }
  0xbc   :  { %v377_v41 = vmul.f32 0.5, %v216_v55 }
  0xbd   :  { %v381_v56 = vmul.f32 0.5, %v217_v51 }
  0xbe   :  { %1951 = vtanh.f32 %v377_v41 }
  0xbf   :  { %1953 = vtanh.f32 %v381_v56 }
  0xc1   :  { %v193_v58 = vpop.f32.mrf.mxu2  ;;  %v213_v62 = vpop.f32.mrf.mxu3 }
  0xc2   :  { %v218_v47 = vadd.f32 %v1907_v52, %v193_v58  ;;  %v219_v44 = vadd.f32 %v1908_v59, %v213_v62 }
  0xc4   :  { %1955 = vtanh.f32 %v218_v47  ;;  %v386_v40 = vmul.f32 0.5, %v219_v44  ;;  %v1952_v57 = vpop.eup %1951 }
  0xc5   :  { %v1954_v54 = vpop.eup %1953  ;;  %v379_v55 = vadd.f32 1.0, %v1952_v57 }
  0xc6   :  { %1957 = vtanh.f32 %v386_v40  ;;  %v383_v60 = vadd.f32 1.0, %v1954_v54  ;;  %v1909_v54 = vld [vmem:[%s5443_s0 + $0x40] sm:$0xff] }
  0xc7   :  { %v380_v46 = vmul.f32 0.5, %v379_v55 }
  0xc8   :  { %v384_v51 = vmul.f32 0.5, %v383_v60  ;;  %v1910_v60 = vld [vmem:[%s5443_s0 + $0x48] sm:$0xff] }
  0xca   :  { %v1956_v41 = vpop.eup %1955  ;;  %v390_v48 = vmul.f32 %v384_v51, %v5932_v0 }
  0xcb   :  { %v391_v61 = vmul.f32 %v1956_v41, %v380_v46 }
  0xcc   :  { %v1958_v43 = vpop.eup %1957 }
  0xcd   :  { %v3360_v49 = vadd.f32 %v391_v61, %v390_v48  ;;  %v388_v56 = vadd.f32 1.0, %v1958_v43 }
  0xcf   :  { %1959 = vtanh.f32 %v3360_v49  ;;  %v389_v52 = vmul.f32 0.5, %v388_v56 }
  0xd5   :  { %v1960_v62 = vpop.eup %1959 }
  0xd6   :  { %v3363_v44 = vmul.f32 %v1960_v62, %v389_v52  ;;  %v1911_v62 = vld [vmem:[%s5443_s0 + $0x50] sm:$0xff] }
  0xd8   :  { %436 = vmatmul.f32.vlgmr.msra.gmra.mxu0 %v3363_v44  ;;  %456 = vmatmul.f32.vlgmr.msra.gmra.mxu1 %v3363_v44 }
  0xd9   :  { %476 = vmatmul.f32.vlgmr.msra.gmra.mxu2 %v3363_v44  ;;  %496 = vmatmul.f32.vlgmr.msra.gmra.mxu3 %v3363_v44 }
  0xda   :  { %630 = vmatpush.msra.mxu0 %v2432_v1  ;;  %650 = vmatpush.msra.mxu1 %v2437_v2  ;;  %v5933_v1 = vld [vmem:[#allocation7_spill] sm:$0xff] }
  0xdb   :  { %670 = vmatpush.msra.mxu2 %v2442_v3  ;;  %690 = vmatpush.msra.mxu3 %v2482_v10  ;;  %v5934_v2 = vld [vmem:[#allocation3_spill] sm:$0xff]  ;;  %v5935_v3 = vld [vmem:[#allocation4_spill] sm:$0xff]  ;;  %v5942_v10 = vld [vmem:[#allocation10_spill] sm:$0xff] }
  0xdc   :  { %631 = vmatpush.msra.mxu0 %v2449_v4  ;;  %651 = vmatpush.msra.mxu1 %v2454_v5  ;;  %v5936_v4 = vld [vmem:[#allocation5_spill] sm:$0xff]  ;;  %v5937_v5 = vld [vmem:[#allocation11_spill] sm:$0xff] }
  0xdd   :  { %671 = vmatpush.msra.mxu2 %v2459_v6  ;;  %691 = vmatpush.msra.mxu3 %v2499_v13  ;;  %v5938_v6 = vld [vmem:[#allocation6_spill] sm:$0xff] }
  0xde   :  { %632 = vmatpush.msra.mxu0 %v2465_v7  ;;  %652 = vmatpush.msra.mxu1 %v2470_v8  ;;  %v5939_v7 = vld [vmem:[#allocation8_spill] sm:$0xff]  ;;  %v5940_v8 = vld [vmem:[#allocation9_spill] sm:$0xff]  ;;  %v5945_v13 = vld [vmem:[#allocation14_spill] sm:$0xff] }
  0xdf   :  { %672 = vmatpush.msra.mxu2 %v2477_v9  ;;  %692 = vmatpush.msra.mxu3 %v2511_v15  ;;  %v5941_v9 = vld [vmem:[#allocation13_spill] sm:$0xff] }
  0xe0   :  { %633 = vmatpush.msra.mxu0 %v2489_v11  ;;  %653 = vmatpush.msra.mxu1 %v2494_v12  ;;  %v5943_v11 = vld [vmem:[#allocation12_spill] sm:$0xff]  ;;  %v5944_v12 = vld [vmem:[#allocation17_spill] sm:$0xff] }
  0xe1   :  { %673 = vmatpush.msra.mxu2 %v2506_v14  ;;  %693 = vmatpush.msra.mxu3 %v2535_v19  ;;  %v5946_v14 = vld [vmem:[#allocation15_spill] sm:$0xff]  ;;  %v5947_v15 = vld [vmem:[#allocation21_spill] sm:$0xff]  ;;  %v5951_v19 = vld [vmem:[#allocation22_spill] sm:$0xff] }
  0xe2   :  { %634 = vmatpush.msra.mxu0 %v2518_v16  ;;  %654 = vmatpush.msra.mxu1 %v2523_v17  ;;  %v5948_v16 = vld [vmem:[#allocation18_spill] sm:$0xff]  ;;  %v5949_v17 = vld [vmem:[#allocation19_spill] sm:$0xff] }
  0xe3   :  { %674 = vmatpush.msra.mxu2 %v2530_v18  ;;  %694 = vmatpush.msra.mxu3 %v2559_v23  ;;  %v5950_v18 = vld [vmem:[#allocation20_spill] sm:$0xff] }
  0xe4   :  { %635 = vmatpush.msra.mxu0 %v2542_v20  ;;  %655 = vmatpush.msra.mxu1 %v2547_v21  ;;  %v287_v20 = vld [vmem:[%s5445_s4] sm:$0xf]  ;;  %v5952_v21 = vld [vmem:[#allocation24_spill] sm:$0xff] }
  0xe5   :  { %675 = vmatpush.msra.mxu2 %v2554_v22  ;;  %695 = vmatpush.msra.mxu3 %v2583_v27  ;;  %v5953_v22 = vld [vmem:[#allocation28_spill] sm:$0xff]  ;;  %v3436_v23 = vperm.slane %v287_v20, 0 }
  0xe6   :  { %636 = vmatpush.msra.mxu0 %v2566_v24  ;;  %656 = vmatpush.msra.mxu1 %v2571_v25  ;;  %v3438_v24 = vperm.slane %v287_v20, 1 }
  0xe7   :  { %676 = vmatpush.msra.mxu2 %v2578_v26  ;;  %696 = vmatpush.msra.mxu3 %v2607_v31  ;;  %5954 = vst [vmem:[#allocation16_spill] sm:$0xff] %v3436_v23  ;;  %v3442_v31 = vperm.slane %v287_v20, 2 }
  0xe8   :  { %637 = vmatpush.msra.mxu0 %v2590_v28  ;;  %657 = vmatpush.msra.mxu1 %v2595_v29  ;;  %5955 = vst [vmem:[#allocation23_spill] sm:$0xff] %v3438_v24 }
  0xe9   :  { %677 = vmatpush.msra.mxu2 %v2602_v30  ;;  %697 = vmatpush.msra.mxu3 %v2631_v35  ;;  %5956 = vst [vmem:[#allocation25_spill] sm:$0xff] %v3442_v31 }
  0xea   :  { %638 = vmatpush.msra.mxu0 %v2614_v32  ;;  %658 = vmatpush.msra.mxu1 %v2619_v33  ;;  %v3444_v32 = vperm.slane %v287_v20, 3 }
  0xeb   :  { %678 = vmatpush.msra.mxu2 %v2626_v34  ;;  %698 = vmatpush.msra.mxu3 %v2655_v39 }
  0xec   :  { %639 = vmatpush.msra.mxu0 %v2638_v36  ;;  %659 = vmatpush.msra.mxu1 %v2643_v37  ;;  %5957 = vst [vmem:[#allocation37_spill] sm:$0xff] %v3444_v32 }
  0xed   :  { %679 = vmatpush.msra.mxu2 %v2650_v38  ;;  %699 = vmatpush.msra.mxu3 %v5933_v1 }
  0xee   :  { %640 = vmatpush.msra.mxu0 %v5934_v2  ;;  %660 = vmatpush.msra.mxu1 %v5935_v3 }
  0xef   :  { %680 = vmatpush.msra.mxu2 %v5936_v4  ;;  %700 = vmatpush.msra.mxu3 %v5937_v5  ;;  %v1912_v5 = vld [vmem:[%s5443_s0 + $0x58] sm:$0xff] }
  0xf0   :  { %641 = vmatpush.msra.mxu0 %v5938_v6  ;;  %661 = vmatpush.msra.mxu1 %v5939_v7 }
  0xf1   :  { %681 = vmatpush.msra.mxu2 %v5940_v8  ;;  %701 = vmatpush.msra.mxu3 %v5941_v9 }
  0xf2   :  { %642 = vmatpush.msra.mxu0 %v5942_v10  ;;  %662 = vmatpush.msra.mxu1 %v2721_v53 }
  0xf3   :  { %682 = vmatpush.msra.mxu2 %v5943_v11  ;;  %702 = vmatpush.msra.mxu3 %v5944_v12 }
  0xf4   :  { %643 = vmatpush.msra.mxu0 %v5945_v13  ;;  %663 = vmatpush.msra.mxu1 %v5946_v14 }
  0xf5   :  { %683 = vmatpush.msra.mxu2 %v5871_v45  ;;  %703 = vmatpush.msra.mxu3 %v5947_v15 }
  0xf6   :  { %644 = vmatpush.msra.mxu0 %v5948_v16  ;;  %664 = vmatpush.msra.mxu1 %v5949_v17 }
  0xf7   :  { %684 = vmatpush.msra.mxu2 %v5950_v18  ;;  %704 = vmatpush.msra.mxu3 %v5878_v50 }
  0xf8   :  { %645 = vmatpush.msra.mxu0 %v5951_v19  ;;  %665 = vmatpush.msra.mxu1 %v5877_v42 }
  0xf9   :  { %685 = vmatpush.msra.mxu2 %v5952_v21  ;;  %705 = vmatpush.msra.mxu3 %v5953_v22  ;;  %v5958_v22 = vld [vmem:[#allocation26_spill] sm:$0xff] }
  0xfc   :  { %v314_v25 = vpop.f32.mrf.mxu0  ;;  %v334_v26 = vpop.f32.mrf.mxu1 }
  0xfd   :  { %v315_v27 = vadd.f32 %v314_v25, %v3436_v23  ;;  %v335_v28 = vadd.f32 %v334_v26, %v3438_v24  ;;  %v5959_v25 = vld [vmem:[#allocation27_spill] sm:$0xff]  ;;  %v5960_v26 = vld [vmem:[#allocation29_spill] sm:$0xff] }
  0xff   :  { %v395_v29 = vmul.f32 0.5, %v315_v27  ;;  %v399_v30 = vmul.f32 0.5, %v335_v28  ;;  %v5961_v27 = vld [vmem:[#allocation30_spill] sm:$0xff]  ;;  %v5962_v28 = vld [vmem:[#allocation31_spill] sm:$0xff] }
 0x101   :  { %1961 = vtanh.f32 %v395_v29  ;;  %v5963_v29 = vld [vmem:[#allocation32_spill] sm:$0xff] }
 0x102   :  { %1963 = vtanh.f32 %v399_v30  ;;  %v5964_v30 = vld [vmem:[#allocation33_spill] sm:$0xff] }
 0x103   :  { %v354_v33 = vpop.f32.mrf.mxu2  ;;  %v374_v34 = vpop.f32.mrf.mxu3 }
 0x104   :  { %v355_v35 = vadd.f32 %v354_v33, %v3442_v31  ;;  %v375_v36 = vadd.f32 %v374_v34, %v3444_v32  ;;  %v5966_v34 = vld [vmem:[#allocation35_spill] sm:$0xff] }
 0x106   :  { %1965 = vtanh.f32 %v355_v35  ;;  %v404_v37 = vmul.f32 0.5, %v375_v36  ;;  %v5967_v35 = vld [vmem:[#allocation36_spill] sm:$0xff]  ;;  %v5968_v36 = vld [vmem:[#allocation38_spill] sm:$0xff] }
 0x107   :  { %v1962_v38 = vpop.eup %1961 }
 0x108   :  { %v1964_v39 = vpop.eup %1963  ;;  %v397_v40 = vadd.f32 1.0, %v1962_v38  ;;  %1967 = vtanh.f32 %v404_v37  ;;  %v5969_v37 = vld [vmem:[#allocation39_spill] sm:$0xff]  ;;  %v5970_v38 = vld [vmem:[#allocation41_spill] sm:$0xff] }
 0x109   :  { %v401_v42 = vadd.f32 1.0, %v1964_v39  ;;  %v5971_v39 = vld [vmem:[#allocation42_spill] sm:$0xff] }
 0x10a   :  { %v398_v45 = vmul.f32 0.5, %v397_v40  ;;  %v5972_v40 = vld [vmem:[#allocation43_spill] sm:$0xff] }
 0x10b   :  { %v402_v48 = vmul.f32 0.5, %v401_v42  ;;  %v5973_v42 = vld [vmem:[#allocation44_spill] sm:$0xff] }
 0x10c   :  { %v1966_v50 = vpop.eup %1965 }
 0x10d   :  { %v408_v53 = vmul.f32 0.0, %v402_v48  ;;  %v409_v59 = vmul.f32 %v1966_v50, %v398_v45  ;;  %v5975_v45 = vld [vmem:[#allocation46_spill] sm:$0xff]  ;;  %v5976_v48 = vld [vmem:[#allocation47_spill] sm:$0xff]  ;;  %v5977_v50 = vld [vmem:[#allocation48_spill] sm:$0xff] }
 0x10e   :  { %v1968_v58 = vpop.eup %1967 }
 0x10f   :  { %v3448_v61 = vadd.f32 %v409_v59, %v408_v53  ;;  %v406_v47 = vadd.f32 1.0, %v1968_v58  ;;  %v5978_v53 = vld [vmem:[#allocation49_spill] sm:$0xff]  ;;  %v5979_v59 = vld [vmem:[#allocation50_spill] sm:$0xff]  ;;  %v5980_v58 = vld [vmem:[#allocation51_spill] sm:$0xff] }
 0x111   :  { %1969 = vtanh.f32 %v3448_v61  ;;  %v407_v0 = vmul.f32 0.5, %v406_v47  ;;  %v5981_v47 = vld [vmem:[#allocation52_spill] sm:$0xff] }
 0x117   :  { %v1970_v43 = vpop.eup %1969 }
 0x118   :  { %v412_v57 = vmul.f32 %v1970_v43, %v407_v0  ;;  %v5982_v0 = vld [vmem:[#allocation53_spill] sm:$0xff]  ;;  %v5983_v43 = vld [vmem:[#allocation54_spill] sm:$0xff] }
 0x11a   :  { %504 = vrot.lane.b32.xlu0 %v412_v57, %s2362_s21  ;;  %v5984_v57 = vld [vmem:[#allocation55_spill] sm:$0xff] }
 0x155   :  { %v437_v55 = vpop.f32.mrf.mxu0  ;;  %v457_v46 = vpop.f32.mrf.mxu1 }
 0x156   :  { %v500_v51 = vadd.f32 %v1909_v54, %v437_v55  ;;  %v501_v41 = vadd.f32 %v1910_v60, %v457_v46  ;;  %v5985_v54 = vld [vmem:[#allocation56_spill] sm:$0xff]  ;;  %v5986_v55 = vld [vmem:[#allocation57_spill] sm:$0xff]  ;;  %v5987_v60 = vld [vmem:[#allocation58_spill] sm:$0xff] }
 0x157   :  { %v5988_v46 = vld [vmem:[#allocation59_spill] sm:$0xff] }
 0x158   :  { %v587_v56 = vmul.f32 0.5, %v500_v51  ;;  %v591_v52 = vmul.f32 0.5, %v501_v41  ;;  %v5989_v51 = vld [vmem:[#allocation60_spill] sm:$0xff]  ;;  %v5990_v41 = vld [vmem:[#allocation61_spill] sm:$0xff] }
 0x15a   :  { %1971 = vtanh.f32 %v587_v56  ;;  %v5991_v56 = vld [vmem:[#allocation62_spill] sm:$0xff] }
 0x15b   :  { %1973 = vtanh.f32 %v591_v52  ;;  %v5992_v52 = vld [vmem:[#allocation63_spill] sm:$0xff] }
 0x15c   :  { %v477_v1 = vpop.f32.mrf.mxu2  ;;  %v497_v6 = vpop.f32.mrf.mxu3 }
 0x15d   :  { %v502_v2 = vadd.f32 %v1911_v62, %v477_v1  ;;  %v503_v9 = vadd.f32 %v1912_v5, %v497_v6  ;;  %v5993_v62 = vld [vmem:[#allocation64_spill] sm:$0xff]  ;;  %v5994_v1 = vld [vmem:[#allocation65_spill] sm:$0xff]  ;;  %v5999_v6 = vld [vmem:[#allocation70_spill] sm:$0xff] }
 0x15e   :  { %v5998_v5 = vld [vmem:[#allocation69_spill] sm:$0xff] }
 0x15f   :  { %1975 = vtanh.f32 %v502_v2  ;;  %v596_v12 = vmul.f32 0.5, %v503_v9  ;;  %v5995_v2 = vld [vmem:[#allocation66_spill] sm:$0xff]  ;;  %v6002_v9 = vld [vmem:[#allocation73_spill] sm:$0xff] }
 0x160   :  { %v1972_v3 = vpop.eup %1971 }
 0x161   :  { %v1974_v4 = vpop.eup %1973  ;;  %v589_v7 = vadd.f32 1.0, %v1972_v3  ;;  %1977 = vtanh.f32 %v596_v12  ;;  %v5996_v3 = vld [vmem:[#allocation67_spill] sm:$0xff]  ;;  %v6005_v12 = vld [vmem:[#allocation76_spill] sm:$0xff] }
 0x162   :  { %v593_v8 = vadd.f32 1.0, %v1974_v4  ;;  %v5997_v4 = vld [vmem:[#allocation68_spill] sm:$0xff] }
 0x163   :  { %v590_v10 = vmul.f32 0.5, %v589_v7  ;;  %v6000_v7 = vld [vmem:[#allocation71_spill] sm:$0xff] }
 0x164   :  { %v594_v11 = vmul.f32 0.5, %v593_v8  ;;  %v6001_v8 = vld [vmem:[#allocation72_spill] sm:$0xff] }
 0x165   :  { %v1976_v13 = vpop.eup %1975 }
 0x166   :  { %v600_v14 = vmul.f32 %v594_v11, %v3360_v49  ;;  %v601_v15 = vmul.f32 %v1976_v13, %v590_v10  ;;  %v6003_v10 = vld [vmem:[#allocation74_spill] sm:$0xff]  ;;  %v6004_v11 = vld [vmem:[#allocation75_spill] sm:$0xff]  ;;  %v6006_v13 = vld [vmem:[#allocation77_spill] sm:$0xff] }
 0x167   :  { %v1978_v17 = vpop.eup %1977 }
 0x168   :  { %v3465_v16 = vadd.f32 %v601_v15, %v600_v14  ;;  %v598_v19 = vadd.f32 1.0, %v1978_v17  ;;  %v6007_v14 = vld [vmem:[#allocation78_spill] sm:$0xff]  ;;  %v6008_v15 = vld [vmem:[#allocation79_spill] sm:$0xff]  ;;  %v6009_v17 = vld [vmem:[#allocation80_spill] sm:$0xff] }
 0x16a   :  { %1979 = vtanh.f32 %v3465_v16  ;;  %v599_v21 = vmul.f32 0.5, %v598_v19  ;;  %v6011_v19 = vld [vmem:[#allocation82_spill] sm:$0xff] }
 0x170   :  { %v1980_v49 = vpop.eup %1979 }
 0x171   :  { %v3477_v33 = vmul.f32 %v1980_v49, %v599_v21  ;;  %v6013_v21 = vld [vmem:[#allocation84_spill] sm:$0xff]  ;;  %v6016_v49 = vld [vmem:[#allocation87_spill] sm:$0xff] }
 0x18c   :  { %v505_v18 = vpop.permute.xlu0 %504 }
 0x18d   :  { %v506_v20 = vadd.f32 %v505_v18, %v3363_v44  ;;  %v5965_v44 = vld [vmem:[#allocation34_spill] sm:$0xff]  ;;  %v6010_v18 = vld [vmem:[#allocation81_spill] sm:$0xff] }
 0x18f   :  { %523 = vmatmul.f32.vlgmr.msrb.gmra.mxu0 %v506_v20  ;;  %543 = vmatmul.f32.vlgmr.msrb.gmra.mxu1 %v506_v20 }
 0x190   :  { %563 = vmatmul.f32.vlgmr.msrb.gmra.mxu2 %v506_v20  ;;  %583 = vmatmul.f32.vlgmr.msrb.gmra.mxu3 %v506_v20  ;;  %v6012_v20 = vld [vmem:[#allocation83_spill] sm:$0xff] }
 0x191   :  { %717 = vmatpush.msrb.mxu0 %v5958_v22  ;;  %737 = vmatpush.msrb.mxu1 %v5959_v25  ;;  %v6014_v22 = vld [vmem:[#allocation85_spill] sm:$0xff]  ;;  %v6015_v25 = vld [vmem:[#allocation86_spill] sm:$0xff] }
 0x192   :  { %757 = vmatpush.msrb.mxu2 %v5960_v26  ;;  %777 = vmatpush.msrb.mxu3 %v5961_v27  ;;  %v6017_v26 = vld [vmem:[#allocation88_spill] sm:$0xff]  ;;  %v6018_v27 = vld [vmem:[#allocation89_spill] sm:$0xff] }
 0x193   :  { %718 = vmatpush.msrb.mxu0 %v5962_v28  ;;  %738 = vmatpush.msrb.mxu1 %v5963_v29  ;;  %v6019_v28 = vld [vmem:[#allocation90_spill] sm:$0xff]  ;;  %v6020_v29 = vld [vmem:[#allocation91_spill] sm:$0xff] }
 0x194   :  { %758 = vmatpush.msrb.mxu2 %v5964_v30  ;;  %778 = vmatpush.msrb.mxu3 %v5965_v44  ;;  %v3542_v30 = vld [vmem:[%s5442_s2 + $0x1e0] sm:$0xff]  ;;  %v3548_v44 = vld [vmem:[%s5442_s2 + $0x1e8] sm:$0xff] }
 0x195   :  { %719 = vmatpush.msrb.mxu0 %v5966_v34  ;;  %739 = vmatpush.msrb.mxu1 %v5967_v35  ;;  %v3554_v34 = vld [vmem:[%s5442_s2 + $0x1f0] sm:$0xff]  ;;  %v3560_v35 = vld [vmem:[%s5442_s2 + $0x1f8] sm:$0xff] }
 0x196   :  { %759 = vmatpush.msrb.mxu2 %v5888_v63  ;;  %779 = vmatpush.msrb.mxu3 %v5968_v36  ;;  %v5974_v63 = vld [vmem:[#allocation45_spill] sm:$0xff]  ;;  %v3566_v36 = vld [vmem:[%s5442_s2 + $0x1c0] sm:$0xff] }
 0x197   :  { %646 = vmatmul.f32.vlgmr.msra.gmra.mxu0 %v3477_v33  ;;  %666 = vmatmul.f32.vlgmr.msra.gmra.mxu1 %v3477_v33 }
 0x198   :  { %686 = vmatmul.f32.vlgmr.msra.gmra.mxu2 %v3477_v33  ;;  %706 = vmatmul.f32.vlgmr.msra.gmra.mxu3 %v3477_v33 }
 0x199   :  { %720 = vmatpush.msrb.mxu0 %v5969_v37  ;;  %740 = vmatpush.msrb.mxu1 %v5970_v38  ;;  %v3572_v37 = vld [vmem:[%s5442_s2 + $0x1c8] sm:$0xff]  ;;  %v3578_v38 = vld [vmem:[%s5442_s2 + $0x1d0] sm:$0xff] }
 0x19a   :  { %760 = vmatpush.msrb.mxu2 %v5971_v39  ;;  %780 = vmatpush.msrb.mxu3 %v5972_v40  ;;  %v3584_v39 = vld [vmem:[%s5442_s2 + $0x1d8] sm:$0xff]  ;;  %v3590_v40 = vld [vmem:[%s5442_s2 + $0x1a0] sm:$0xff] }
 0x19b   :  { %721 = vmatpush.msrb.mxu0 %v5973_v42  ;;  %741 = vmatpush.msrb.mxu1 %v5974_v63  ;;  %v3596_v42 = vld [vmem:[%s5442_s2 + $0x1a8] sm:$0xff]  ;;  %v3602_v63 = vld [vmem:[%s5442_s2 + $0x1b0] sm:$0xff] }
 0x19c   :  { %761 = vmatpush.msrb.mxu2 %v5975_v45  ;;  %781 = vmatpush.msrb.mxu3 %v5976_v48  ;;  %v3608_v45 = vld [vmem:[%s5442_s2 + $0x1b8] sm:$0xff]  ;;  %v3614_v48 = vld [vmem:[%s5442_s2 + $0x180] sm:$0xff] }
 0x19d   :  { %722 = vmatpush.msrb.mxu0 %v5977_v50  ;;  %742 = vmatpush.msrb.mxu1 %v5978_v53  ;;  %v3620_v50 = vld [vmem:[%s5442_s2 + $0x188] sm:$0xff]  ;;  %v3626_v53 = vld [vmem:[%s5442_s2 + $0x190] sm:$0xff] }
 0x19e   :  { %762 = vmatpush.msrb.mxu2 %v5979_v59  ;;  %782 = vmatpush.msrb.mxu3 %v5980_v58  ;;  %v3632_v59 = vld [vmem:[%s5442_s2 + $0x198] sm:$0xff]  ;;  %v3638_v58 = vld [vmem:[%s5442_s2 + $0x160] sm:$0xff] }
 0x19f   :  { %723 = vmatpush.msrb.mxu0 %v5981_v47  ;;  %743 = vmatpush.msrb.mxu1 %v5982_v0  ;;  %v3644_v47 = vld [vmem:[%s5442_s2 + $0x168] sm:$0xff]  ;;  %v3650_v0 = vld [vmem:[%s5442_s2 + $0x170] sm:$0xff] }
 0x1a0   :  { %763 = vmatpush.msrb.mxu2 %v5983_v43  ;;  %783 = vmatpush.msrb.mxu3 %v5984_v57  ;;  %v3656_v43 = vld [vmem:[%s5442_s2 + $0x178] sm:$0xff]  ;;  %v3662_v57 = vld [vmem:[%s5442_s2 + $0x140] sm:$0xff] }
 0x1a1   :  { %724 = vmatpush.msrb.mxu0 %v5985_v54  ;;  %744 = vmatpush.msrb.mxu1 %v5986_v55  ;;  %v3668_v54 = vld [vmem:[%s5442_s2 + $0x148] sm:$0xff]  ;;  %v3674_v55 = vld [vmem:[%s5442_s2 + $0x150] sm:$0xff] }
 0x1a2   :  { %764 = vmatpush.msrb.mxu2 %v5987_v60  ;;  %784 = vmatpush.msrb.mxu3 %v5988_v46  ;;  %v3680_v60 = vld [vmem:[%s5442_s2 + $0x158] sm:$0xff]  ;;  %v3686_v46 = vld [vmem:[%s5442_s2 + $0x120] sm:$0xff] }
 0x1a3   :  { %725 = vmatpush.msrb.mxu0 %v5989_v51  ;;  %745 = vmatpush.msrb.mxu1 %v5990_v41  ;;  %v3692_v51 = vld [vmem:[%s5442_s2 + $0x128] sm:$0xff]  ;;  %v3698_v41 = vld [vmem:[%s5442_s2 + $0x130] sm:$0xff] }
 0x1a4   :  { %765 = vmatpush.msrb.mxu2 %v5991_v56  ;;  %785 = vmatpush.msrb.mxu3 %v5992_v52  ;;  %6021 = vst [vmem:[#allocation40_spill] sm:$0xff] %v3692_v51  ;;  %v3704_v56 = vld [vmem:[%s5442_s2 + $0x138] sm:$0xff]  ;;  %v3710_v52 = vld [vmem:[%s5442_s2 + $0x100] sm:$0xff] }
 0x1a5   :  { %726 = vmatpush.msrb.mxu0 %v5993_v62  ;;  %746 = vmatpush.msrb.mxu1 %v5994_v1  ;;  %6022 = vst [vmem:[#allocation7_spill] sm:$0xff] %v3698_v41  ;;  %v3716_v62 = vld [vmem:[%s5442_s2 + $0x108] sm:$0xff]  ;;  %v3722_v1 = vld [vmem:[%s5442_s2 + $0x110] sm:$0xff] }
 0x1a6   :  { %766 = vmatpush.msrb.mxu2 %v5995_v2  ;;  %786 = vmatpush.msrb.mxu3 %v5996_v3  ;;  %6023 = vst [vmem:[#allocation3_spill] sm:$0xff] %v3704_v56  ;;  %v3728_v2 = vld [vmem:[%s5442_s2 + $0x118] sm:$0xff]  ;;  %v3734_v3 = vld [vmem:[%s5442_s2 + $0xe0] sm:$0xff] }
 0x1a7   :  { %727 = vmatpush.msrb.mxu0 %v5997_v4  ;;  %747 = vmatpush.msrb.mxu1 %v5998_v5  ;;  %6024 = vst [vmem:[#allocation4_spill] sm:$0xff] %v3710_v52  ;;  %v3740_v4 = vld [vmem:[%s5442_s2 + $0xe8] sm:$0xff]  ;;  %v3746_v5 = vld [vmem:[%s5442_s2 + $0xf0] sm:$0xff] }
 0x1a8   :  { %767 = vmatpush.msrb.mxu2 %v5999_v6  ;;  %787 = vmatpush.msrb.mxu3 %v6000_v7  ;;  %6025 = vst [vmem:[#allocation5_spill] sm:$0xff] %v3716_v62  ;;  %v3752_v6 = vld [vmem:[%s5442_s2 + $0xf8] sm:$0xff]  ;;  %v3758_v7 = vld [vmem:[%s5442_s2 + $0xc0] sm:$0xff] }
 0x1a9   :  { %728 = vmatpush.msrb.mxu0 %v6001_v8  ;;  %748 = vmatpush.msrb.mxu1 %v6002_v9  ;;  %6026 = vst [vmem:[#allocation11_spill] sm:$0xff] %v3722_v1  ;;  %v3764_v8 = vld [vmem:[%s5442_s2 + $0xc8] sm:$0xff]  ;;  %v3770_v9 = vld [vmem:[%s5442_s2 + $0xd0] sm:$0xff] }
 0x1aa   :  { %768 = vmatpush.msrb.mxu2 %v6003_v10  ;;  %788 = vmatpush.msrb.mxu3 %v6004_v11  ;;  %6027 = vst [vmem:[#allocation6_spill] sm:$0xff] %v3728_v2  ;;  %v3776_v10 = vld [vmem:[%s5442_s2 + $0xd8] sm:$0xff]  ;;  %v3782_v11 = vld [vmem:[%s5442_s2 + $0xa0] sm:$0xff] }
 0x1ab   :  { %729 = vmatpush.msrb.mxu0 %v6005_v12  ;;  %749 = vmatpush.msrb.mxu1 %v6006_v13  ;;  %6028 = vst [vmem:[#allocation8_spill] sm:$0xff] %v3734_v3  ;;  %v3788_v12 = vld [vmem:[%s5442_s2 + $0xa8] sm:$0xff]  ;;  %v3794_v13 = vld [vmem:[%s5442_s2 + $0xb0] sm:$0xff] }
 0x1ac   :  { %769 = vmatpush.msrb.mxu2 %v6007_v14  ;;  %789 = vmatpush.msrb.mxu3 %v6008_v15  ;;  %6029 = vst [vmem:[#allocation9_spill] sm:$0xff] %v3740_v4  ;;  %v3800_v14 = vld [vmem:[%s5442_s2 + $0xb8] sm:$0xff]  ;;  %v3806_v15 = vld [vmem:[%s5442_s2 + $0x80] sm:$0xff] }
 0x1ad   :  { %730 = vmatpush.msrb.mxu0 %v6009_v17  ;;  %750 = vmatpush.msrb.mxu1 %v6010_v18  ;;  %6030 = vst [vmem:[#allocation13_spill] sm:$0xff] %v3746_v5  ;;  %v3812_v17 = vld [vmem:[%s5442_s2 + $0x88] sm:$0xff]  ;;  %v3818_v18 = vld [vmem:[%s5442_s2 + $0x90] sm:$0xff] }
 0x1ae   :  { %770 = vmatpush.msrb.mxu2 %v6011_v19  ;;  %790 = vmatpush.msrb.mxu3 %v6012_v20  ;;  %6031 = vst [vmem:[#allocation10_spill] sm:$0xff] %v3752_v6  ;;  %v3824_v19 = vld [vmem:[%s5442_s2 + $0x98] sm:$0xff]  ;;  %v3830_v20 = vld [vmem:[%s5442_s2 + $0x60] sm:$0xff] }
 0x1af   :  { %731 = vmatpush.msrb.mxu0 %v6013_v21  ;;  %751 = vmatpush.msrb.mxu1 %v6014_v22  ;;  %6032 = vst [vmem:[#allocation12_spill] sm:$0xff] %v3758_v7  ;;  %v3836_v21 = vld [vmem:[%s5442_s2 + $0x68] sm:$0xff]  ;;  %v3842_v22 = vld [vmem:[%s5442_s2 + $0x70] sm:$0xff] }
 0x1b0   :  { %771 = vmatpush.msrb.mxu2 %v6015_v25  ;;  %791 = vmatpush.msrb.mxu3 %v6016_v49  ;;  %6033 = vst [vmem:[#allocation17_spill] sm:$0xff] %v3764_v8  ;;  %v3848_v25 = vld [vmem:[%s5442_s2 + $0x78] sm:$0xff]  ;;  %v3854_v49 = vld [vmem:[%s5442_s2 + $0x40] sm:$0xff] }
 0x1b1   :  { %732 = vmatpush.msrb.mxu0 %v6017_v26  ;;  %752 = vmatpush.msrb.mxu1 %v6018_v27  ;;  %6034 = vst [vmem:[#allocation14_spill] sm:$0xff] %v3770_v9  ;;  %v3860_v26 = vld [vmem:[%s5442_s2 + $0x48] sm:$0xff]  ;;  %v3866_v27 = vld [vmem:[%s5442_s2 + $0x50] sm:$0xff] }
 0x1b2   :  { %772 = vmatpush.msrb.mxu2 %v6019_v28  ;;  %792 = vmatpush.msrb.mxu3 %v6020_v29  ;;  %6035 = vst [vmem:[#allocation15_spill] sm:$0xff] %v3776_v10  ;;  %v3872_v28 = vld [vmem:[%s5442_s2 + $0x58] sm:$0xff]  ;;  %v3878_v29 = vld [vmem:[%s5442_s2 + $0x20] sm:$0xff] }
 0x1b3   :  { %840 = vmatpush.msra.mxu0 %v3542_v30  ;;  %860 = vmatpush.msra.mxu1 %v3548_v44  ;;  %6036 = vst [vmem:[#allocation21_spill] sm:$0xff] %v3782_v11 }
 0x1b4   :  { %880 = vmatpush.msra.mxu2 %v3554_v34  ;;  %900 = vmatpush.msra.mxu3 %v3560_v35  ;;  %6037 = vst [vmem:[#allocation18_spill] sm:$0xff] %v3788_v12 }
 0x1b5   :  { %841 = vmatpush.msra.mxu0 %v3566_v36  ;;  %861 = vmatpush.msra.mxu1 %v3572_v37  ;;  %6038 = vst [vmem:[#allocation19_spill] sm:$0xff] %v3794_v13 }
 0x1b6   :  { %881 = vmatpush.msra.mxu2 %v3578_v38  ;;  %901 = vmatpush.msra.mxu3 %v3584_v39  ;;  %6039 = vst [vmem:[#allocation20_spill] sm:$0xff] %v3800_v14 }
 0x1b7   :  { %842 = vmatpush.msra.mxu0 %v3590_v40  ;;  %862 = vmatpush.msra.mxu1 %v3596_v42  ;;  %6040 = vst [vmem:[#allocation22_spill] sm:$0xff] %v3806_v15 }
 0x1b8   :  { %882 = vmatpush.msra.mxu2 %v3602_v63  ;;  %902 = vmatpush.msra.mxu3 %v3608_v45  ;;  %6041 = vst [vmem:[#allocation24_spill] sm:$0xff] %v3812_v17 }
 0x1b9   :  { %843 = vmatpush.msra.mxu0 %v3614_v48  ;;  %863 = vmatpush.msra.mxu1 %v3620_v50  ;;  %6042 = vst [vmem:[#allocation28_spill] sm:$0xff] %v3818_v18 }
 0x1ba   :  { %883 = vmatpush.msra.mxu2 %v3626_v53  ;;  %903 = vmatpush.msra.mxu3 %v3632_v59  ;;  %6043 = vst [vmem:[#allocation26_spill] sm:$0xff] %v3824_v19 }
 0x1bb   :  { %844 = vmatpush.msra.mxu0 %v3638_v58  ;;  %864 = vmatpush.msra.mxu1 %v3644_v47  ;;  %6044 = vst [vmem:[#allocation27_spill] sm:$0xff] %v3830_v20 }
 0x1bc   :  { %884 = vmatpush.msra.mxu2 %v3650_v0  ;;  %904 = vmatpush.msra.mxu3 %v3656_v43  ;;  %6045 = vst [vmem:[#allocation29_spill] sm:$0xff] %v3836_v21 }
 0x1bd   :  { %845 = vmatpush.msra.mxu0 %v3662_v57  ;;  %865 = vmatpush.msra.mxu1 %v3668_v54  ;;  %6046 = vst [vmem:[#allocation30_spill] sm:$0xff] %v3842_v22 }
 0x1be   :  { %885 = vmatpush.msra.mxu2 %v3674_v55  ;;  %905 = vmatpush.msra.mxu3 %v3680_v60  ;;  %6047 = vst [vmem:[#allocation31_spill] sm:$0xff] %v3848_v25 }
 0x1bf   :  { %846 = vmatpush.msra.mxu0 %v3686_v46  ;;  %866 = vmatpush.msra.mxu1 %v3692_v51  ;;  %6048 = vst [vmem:[#allocation32_spill] sm:$0xff] %v3854_v49 }
 0x1c0   :  { %886 = vmatpush.msra.mxu2 %v3698_v41  ;;  %906 = vmatpush.msra.mxu3 %v3704_v56  ;;  %6049 = vst [vmem:[#allocation33_spill] sm:$0xff] %v3860_v26 }
 0x1c1   :  { %847 = vmatpush.msra.mxu0 %v3710_v52  ;;  %867 = vmatpush.msra.mxu1 %v3716_v62  ;;  %6050 = vst [vmem:[#allocation34_spill] sm:$0xff] %v3866_v27 }
 0x1c2   :  { %887 = vmatpush.msra.mxu2 %v3722_v1  ;;  %907 = vmatpush.msra.mxu3 %v3728_v2  ;;  %6051 = vst [vmem:[#allocation35_spill] sm:$0xff] %v3872_v28 }
 0x1c3   :  { %848 = vmatpush.msra.mxu0 %v3734_v3  ;;  %868 = vmatpush.msra.mxu1 %v3740_v4  ;;  %6052 = vst [vmem:[#allocation36_spill] sm:$0xff] %v3878_v29 }
 0x1c4   :  { %888 = vmatpush.msra.mxu2 %v3746_v5  ;;  %908 = vmatpush.msra.mxu3 %v3752_v6 }
 0x1c5   :  { %849 = vmatpush.msra.mxu0 %v3758_v7  ;;  %869 = vmatpush.msra.mxu1 %v3764_v8 }
 0x1c6   :  { %889 = vmatpush.msra.mxu2 %v3770_v9  ;;  %909 = vmatpush.msra.mxu3 %v3776_v10 }
 0x1c7   :  { %850 = vmatpush.msra.mxu0 %v3782_v11  ;;  %870 = vmatpush.msra.mxu1 %v3788_v12 }
 0x1c8   :  { %890 = vmatpush.msra.mxu2 %v3794_v13  ;;  %910 = vmatpush.msra.mxu3 %v3800_v14 }
 0x1c9   :  { %851 = vmatpush.msra.mxu0 %v3806_v15  ;;  %871 = vmatpush.msra.mxu1 %v3812_v17 }
 0x1ca   :  { %891 = vmatpush.msra.mxu2 %v3818_v18  ;;  %911 = vmatpush.msra.mxu3 %v3824_v19 }
 0x1cb   :  { %852 = vmatpush.msra.mxu0 %v3830_v20  ;;  %872 = vmatpush.msra.mxu1 %v3836_v21 }
 0x1cc   :  { %892 = vmatpush.msra.mxu2 %v3842_v22  ;;  %912 = vmatpush.msra.mxu3 %v3848_v25 }
 0x1cd   :  { %853 = vmatpush.msra.mxu0 %v3854_v49  ;;  %873 = vmatpush.msra.mxu1 %v3860_v26  ;;  %v3884_v26 = vld [vmem:[%s5442_s2 + $0x28] sm:$0xff] }
 0x1ce   :  { %893 = vmatpush.msra.mxu2 %v3866_v27  ;;  %913 = vmatpush.msra.mxu3 %v3872_v28  ;;  %6053 = vst [vmem:[#allocation38_spill] sm:$0xff] %v3884_v26  ;;  %v3890_v27 = vld [vmem:[%s5442_s2 + $0x30] sm:$0xff]  ;;  %v3896_v28 = vld [vmem:[%s5442_s2 + $0x38] sm:$0xff] }
 0x1cf   :  { %854 = vmatpush.msra.mxu0 %v3878_v29  ;;  %874 = vmatpush.msra.mxu1 %v3884_v26  ;;  %6054 = vst [vmem:[#allocation39_spill] sm:$0xff] %v3890_v27  ;;  %v3902_v29 = vld [vmem:[%s5442_s2] sm:$0xff]  ;;  %v3908_v26 = vld [vmem:[%s5442_s2 + $0x8] sm:$0xff] }
 0x1d0   :  { %894 = vmatpush.msra.mxu2 %v3890_v27  ;;  %6055 = vst [vmem:[#allocation41_spill] sm:$0xff] %v3896_v28  ;;  %914 = vmatpush.msra.mxu3 %v3896_v28  ;;  %v3914_v27 = vld [vmem:[%s5442_s2 + $0x10] sm:$0xff]  ;;  %v3920_v28 = vld [vmem:[%s5442_s2 + $0x18] sm:$0xff] }
 0x1d1   :  { %6056 = vst [vmem:[#allocation42_spill] sm:$0xff] %v3902_v29  ;;  %855 = vmatpush.msra.mxu0 %v3902_v29  ;;  %875 = vmatpush.msra.mxu1 %v3908_v26 }
 0x1d2   :  { %6057 = vst [vmem:[#allocation43_spill] sm:$0xff] %v3908_v26  ;;  %895 = vmatpush.msra.mxu2 %v3914_v27  ;;  %915 = vmatpush.msra.mxu3 %v3920_v28 }
 0x1d3   :  { %6058 = vst [vmem:[#allocation44_spill] sm:$0xff] %v3914_v27 }
 0x1d4   :  { %6059 = vst [vmem:[#allocation45_spill] sm:$0xff] %v3920_v28 }
 0x20c   :  { %v524_v29 = vpop.f32.mrf.mxu0  ;;  %v544_v49 = vpop.f32.mrf.mxu1 }
 0x20d   :  { %v525_v25 = vadd.f32 %v524_v29, %v3436_v23  ;;  %v545_v26 = vadd.f32 %v544_v49, %v3438_v24 }
 0x20f   :  { %v605_v22 = vmul.f32 0.5, %v525_v25  ;;  %v609_v21 = vmul.f32 0.5, %v545_v26 }
 0x211   :  { %1981 = vtanh.f32 %v605_v22 }
 0x212   :  { %1983 = vtanh.f32 %v609_v21 }
 0x213   :  { %v564_v20 = vpop.f32.mrf.mxu2  ;;  %v584_v19 = vpop.f32.mrf.mxu3 }
 0x214   :  { %v565_v27 = vadd.f32 %v564_v20, %v3442_v31  ;;  %v585_v18 = vadd.f32 %v584_v19, %v3444_v32 }
 0x216   :  { %1985 = vtanh.f32 %v565_v27  ;;  %v614_v17 = vmul.f32 0.5, %v585_v18 }
 0x217   :  { %v1982_v15 = vpop.eup %1981 }
 0x218   :  { %v1984_v28 = vpop.eup %1983  ;;  %v607_v14 = vadd.f32 1.0, %v1982_v15  ;;  %1987 = vtanh.f32 %v614_v17 }
 0x219   :  { %v611_v13 = vadd.f32 1.0, %v1984_v28 }
 0x21a   :  { %v608_v29 = vmul.f32 0.5, %v607_v14  ;;  %v1913_v14 = vld [vmem:[%s5443_s0 + $0x60] sm:$0xff] }
 0x21b   :  { %v612_v23 = vmul.f32 0.5, %v611_v13  ;;  %v647_v13 = vpop.f32.mrf.mxu0 }
 0x21c   :  { %v1986_v49 = vpop.eup %1985  ;;  %v710_v15 = vadd.f32 %v1913_v14, %v647_v13 }
 0x21d   :  { %v618_v25 = vmul.f32 %v612_v23, %v3448_v61  ;;  %v619_v22 = vmul.f32 %v1986_v49, %v608_v29  ;;  %v1914_v23 = vld [vmem:[%s5443_s0 + $0x68] sm:$0xff]  ;;  %v667_v61 = vpop.f32.mrf.mxu1  ;;  %v1915_v49 = vld [vmem:[%s5443_s0 + $0x70] sm:$0xff] }
 0x21e   :  { %v1988_v21 = vpop.eup %1987  ;;  %v711_v17 = vadd.f32 %v1914_v23, %v667_v61  ;;  %v797_v28 = vmul.f32 0.5, %v710_v15 }
 0x21f   :  { %v3928_v26 = vadd.f32 %v619_v22, %v618_v25  ;;  %v616_v20 = vadd.f32 1.0, %v1988_v21  ;;  %v687_v25 = vpop.f32.mrf.mxu2 }
 0x220   :  { %v801_v29 = vmul.f32 0.5, %v711_v17  ;;  %v712_v22 = vadd.f32 %v1915_v49, %v687_v25 }
 0x221   :  { %6060 = vst [vmem:[#allocation46_spill] sm:$0xff] %v3928_v26  ;;  %1989 = vtanh.f32 %v3928_v26  ;;  %v617_v19 = vmul.f32 0.5, %v616_v20 }
 0x222   :  { %1991 = vtanh.f32 %v797_v28 }
 0x223   :  { %1993 = vtanh.f32 %v801_v29 }
 0x224   :  { %1995 = vtanh.f32 %v712_v22 }
 0x227   :  { %v1990_v27 = vpop.eup %1989 }
 0x228   :  { %v622_v18 = vmul.f32 %v1990_v27, %v617_v19  ;;  %v1992_v21 = vpop.eup %1991  ;;  %v1916_v19 = vld [vmem:[%s5443_s0 + $0x78] sm:$0xff]  ;;  %v707_v27 = vpop.f32.mrf.mxu3 }
 0x229   :  { %v1994_v20 = vpop.eup %1993  ;;  %v713_v13 = vadd.f32 %v1916_v19, %v707_v27  ;;  %v3976_v27 = vld [vmem:[%s5444_s3 + $0x1c0] sm:$0xff] }
 0x22a   :  { %714 = vrot.lane.b32.xlu1 %v622_v18, %s2362_s21  ;;  %v799_v18 = vadd.f32 1.0, %v1992_v21  ;;  %v803_v14 = vadd.f32 1.0, %v1994_v20  ;;  %v1996_v15 = vpop.eup %1995  ;;  %v3952_v21 = vld [vmem:[%s5444_s3 + $0x1e0] sm:$0xff]  ;;  %v3964_v20 = vld [vmem:[%s5444_s3 + $0x1f0] sm:$0xff] }
 0x22b   :  { %v806_v17 = vmul.f32 0.5, %v713_v13 }
 0x22c   :  { %v800_v23 = vmul.f32 0.5, %v799_v18  ;;  %v804_v61 = vmul.f32 0.5, %v803_v14  ;;  %v3982_v18 = vld [vmem:[%s5444_s3 + $0x1c8] sm:$0xff]  ;;  %v3988_v14 = vld [vmem:[%s5444_s3 + $0x1d0] sm:$0xff] }
 0x22d   :  { %1997 = vtanh.f32 %v806_v17  ;;  %v4020_v17 = vld [vmem:[%s5444_s3 + $0x1b8] sm:$0xff] }
 0x22e   :  { %v810_v28 = vmul.f32 %v804_v61, %v3465_v16  ;;  %v811_v29 = vmul.f32 %v1996_v15, %v800_v23  ;;  %v3958_v16 = vld [vmem:[%s5444_s3 + $0x1e8] sm:$0xff]  ;;  %v4002_v23 = vld [vmem:[%s5444_s3 + $0x1a0] sm:$0xff]  ;;  %v4014_v15 = vld [vmem:[%s5444_s3 + $0x1b0] sm:$0xff] }
 0x22f   :  { %v4008_v61 = vld [vmem:[%s5444_s3 + $0x1a8] sm:$0xff] }
 0x230   :  { %v3945_v49 = vadd.f32 %v811_v29, %v810_v28  ;;  %v4030_v28 = vld [vmem:[%s5444_s3 + $0x180] sm:$0xff]  ;;  %v4036_v29 = vld [vmem:[%s5444_s3 + $0x188] sm:$0xff] }
 0x232   :  { %1999 = vtanh.f32 %v3945_v49 }
 0x233   :  { %v1998_v25 = vpop.eup %1997 }
 0x234   :  { %v808_v32 = vadd.f32 1.0, %v1998_v25  ;;  %v4042_v25 = vld [vmem:[%s5444_s3 + $0x190] sm:$0xff] }
 0x235   :  { %6061 = vst [vmem:[#allocation47_spill] sm:$0xff] %v4042_v25 }
 0x236   :  { %v809_v19 = vmul.f32 0.5, %v808_v32  ;;  %v3994_v32 = vld [vmem:[%s5444_s3 + $0x1d8] sm:$0xff] }
 0x29c   :  { %v715_v22 = vpop.permute.xlu1 %714 }
 0x29d   :  { %v716_v26 = vadd.f32 %v715_v22, %v3477_v33  ;;  %v2000_v33 = vpop.eup %1999  ;;  %v4048_v22 = vld [vmem:[%s5444_s3 + $0x198] sm:$0xff] }
 0x29e   :  { %v3997_v13 = vmul.f32 %v2000_v33, %v809_v19  ;;  %6062 = vst [vmem:[#allocation48_spill] sm:$0xff] %v4048_v22  ;;  %v4054_v33 = vld [vmem:[%s5444_s3 + $0x160] sm:$0xff]  ;;  %v4060_v19 = vld [vmem:[%s5444_s3 + $0x168] sm:$0xff] }
 0x29f   :  { %733 = vmatmul.f32.vlgmr.msrb.gmra.mxu0 %v716_v26  ;;  %753 = vmatmul.f32.vlgmr.msrb.gmra.mxu1 %v716_v26  ;;  %6063 = vst [vmem:[#allocation49_spill] sm:$0xff] %v4054_v33 }
 0x2a0   :  { %773 = vmatmul.f32.vlgmr.msrb.gmra.mxu2 %v716_v26  ;;  %793 = vmatmul.f32.vlgmr.msrb.gmra.mxu3 %v716_v26  ;;  %v3970_v26 = vld [vmem:[%s5444_s3 + $0x1f8] sm:$0xff]  ;;  %6064 = vst [vmem:[#allocation50_spill] sm:$0xff] %v4060_v19 }
 0x2a1   :  { %927 = vmatpush.msrb.mxu0 %v3952_v21  ;;  %947 = vmatpush.msrb.mxu1 %v3958_v16 }
 0x2a2   :  { %967 = vmatpush.msrb.mxu2 %v3964_v20  ;;  %987 = vmatpush.msrb.mxu3 %v3970_v26 }
 0x2a3   :  { %928 = vmatpush.msrb.mxu0 %v3976_v27  ;;  %948 = vmatpush.msrb.mxu1 %v3982_v18 }
 0x2a4   :  { %968 = vmatpush.msrb.mxu2 %v3988_v14  ;;  %988 = vmatpush.msrb.mxu3 %v3994_v32 }
 0x2a5   :  { %929 = vmatpush.msrb.mxu0 %v4002_v23  ;;  %949 = vmatpush.msrb.mxu1 %v4008_v61 }
 0x2a6   :  { %969 = vmatpush.msrb.mxu2 %v4014_v15  ;;  %989 = vmatpush.msrb.mxu3 %v4020_v17 }
 0x2a7   :  { %856 = vmatmul.f32.vlgmr.msra.gmra.mxu0 %v3997_v13  ;;  %876 = vmatmul.f32.vlgmr.msra.gmra.mxu1 %v3997_v13 }
 0x2a8   :  { %896 = vmatmul.f32.vlgmr.msra.gmra.mxu2 %v3997_v13  ;;  %916 = vmatmul.f32.vlgmr.msra.gmra.mxu3 %v3997_v13 }
 0x2a9   :  { %930 = vmatpush.msrb.mxu0 %v4030_v28  ;;  %950 = vmatpush.msrb.mxu1 %v4036_v29 }
 0x2aa   :  { %970 = vmatpush.msrb.mxu2 %v4042_v25  ;;  %990 = vmatpush.msrb.mxu3 %v4048_v22  ;;  %v4066_v25 = vld [vmem:[%s5444_s3 + $0x170] sm:$0xff]  ;;  %v4072_v22 = vld [vmem:[%s5444_s3 + $0x178] sm:$0xff] }
 0x2ab   :  { %931 = vmatpush.msrb.mxu0 %v4054_v33  ;;  %951 = vmatpush.msrb.mxu1 %v4060_v19  ;;  %6065 = vst [vmem:[#allocation51_spill] sm:$0xff] %v4066_v25  ;;  %v4078_v33 = vld [vmem:[%s5444_s3 + $0x140] sm:$0xff]  ;;  %v4084_v19 = vld [vmem:[%s5444_s3 + $0x148] sm:$0xff] }
 0x2ac   :  { %971 = vmatpush.msrb.mxu2 %v4066_v25  ;;  %6066 = vst [vmem:[#allocation52_spill] sm:$0xff] %v4072_v22  ;;  %991 = vmatpush.msrb.mxu3 %v4072_v22  ;;  %v4090_v25 = vld [vmem:[%s5444_s3 + $0x150] sm:$0xff]  ;;  %v4096_v22 = vld [vmem:[%s5444_s3 + $0x158] sm:$0xff] }
 0x2ad   :  { %6067 = vst [vmem:[#allocation53_spill] sm:$0xff] %v4078_v33  ;;  %932 = vmatpush.msrb.mxu0 %v4078_v33  ;;  %952 = vmatpush.msrb.mxu1 %v4084_v19  ;;  %v4102_v33 = vld [vmem:[%s5444_s3 + $0x120] sm:$0xff] }
 0x2ae   :  { %6068 = vst [vmem:[#allocation54_spill] sm:$0xff] %v4084_v19  ;;  %972 = vmatpush.msrb.mxu2 %v4090_v25  ;;  %992 = vmatpush.msrb.mxu3 %v4096_v22  ;;  %v4108_v19 = vld [vmem:[%s5444_s3 + $0x128] sm:$0xff] }
 0x2af   :  { %6069 = vst [vmem:[#allocation55_spill] sm:$0xff] %v4090_v25  ;;  %933 = vmatpush.msrb.mxu0 %v4102_v33  ;;  %953 = vmatpush.msrb.mxu1 %v4108_v19  ;;  %v4114_v25 = vld [vmem:[%s5444_s3 + $0x130] sm:$0xff] }
 0x2b0   :  { %6070 = vst [vmem:[#allocation56_spill] sm:$0xff] %v4096_v22  ;;  %973 = vmatpush.msrb.mxu2 %v4114_v25  ;;  %v4120_v22 = vld [vmem:[%s5444_s3 + $0x138] sm:$0xff] }
 0x2b1   :  { %6071 = vst [vmem:[#allocation57_spill] sm:$0xff] %v4102_v33  ;;  %993 = vmatpush.msrb.mxu3 %v4120_v22  ;;  %v4126_v33 = vld [vmem:[%s5444_s3 + $0x100] sm:$0xff] }
 0x2b2   :  { %6072 = vst [vmem:[#allocation58_spill] sm:$0xff] %v4108_v19  ;;  %934 = vmatpush.msrb.mxu0 %v4126_v33  ;;  %v4132_v19 = vld [vmem:[%s5444_s3 + $0x108] sm:$0xff] }
 0x2b3   :  { %6073 = vst [vmem:[#allocation59_spill] sm:$0xff] %v4114_v25  ;;  %954 = vmatpush.msrb.mxu1 %v4132_v19  ;;  %v4138_v25 = vld [vmem:[%s5444_s3 + $0x110] sm:$0xff] }
 0x2b4   :  { %6074 = vst [vmem:[#allocation60_spill] sm:$0xff] %v4120_v22  ;;  %974 = vmatpush.msrb.mxu2 %v4138_v25  ;;  %v4144_v22 = vld [vmem:[%s5444_s3 + $0x118] sm:$0xff] }
 0x2b5   :  { %6075 = vst [vmem:[#allocation61_spill] sm:$0xff] %v4126_v33  ;;  %994 = vmatpush.msrb.mxu3 %v4144_v22  ;;  %v4150_v33 = vld [vmem:[%s5444_s3 + $0xe0] sm:$0xff] }
 0x2b6   :  { %6076 = vst [vmem:[#allocation62_spill] sm:$0xff] %v4132_v19  ;;  %935 = vmatpush.msrb.mxu0 %v4150_v33  ;;  %v4156_v19 = vld [vmem:[%s5444_s3 + $0xe8] sm:$0xff] }
 0x2b7   :  { %6077 = vst [vmem:[#allocation63_spill] sm:$0xff] %v4138_v25  ;;  %955 = vmatpush.msrb.mxu1 %v4156_v19  ;;  %v4162_v25 = vld [vmem:[%s5444_s3 + $0xf0] sm:$0xff] }
 0x2b8   :  { %6078 = vst [vmem:[#allocation64_spill] sm:$0xff] %v4144_v22  ;;  %975 = vmatpush.msrb.mxu2 %v4162_v25  ;;  %v4168_v22 = vld [vmem:[%s5444_s3 + $0xf8] sm:$0xff] }
 0x2b9   :  { %6079 = vst [vmem:[#allocation65_spill] sm:$0xff] %v4150_v33  ;;  %995 = vmatpush.msrb.mxu3 %v4168_v22  ;;  %v4174_v33 = vld [vmem:[%s5444_s3 + $0xc0] sm:$0xff] }
 0x2ba   :  { %6080 = vst [vmem:[#allocation66_spill] sm:$0xff] %v4156_v19  ;;  %936 = vmatpush.msrb.mxu0 %v4174_v33  ;;  %v4180_v19 = vld [vmem:[%s5444_s3 + $0xc8] sm:$0xff] }
 0x2bb   :  { %6081 = vst [vmem:[#allocation67_spill] sm:$0xff] %v4162_v25  ;;  %956 = vmatpush.msrb.mxu1 %v4180_v19  ;;  %v4186_v25 = vld [vmem:[%s5444_s3 + $0xd0] sm:$0xff] }
 0x2bc   :  { %6082 = vst [vmem:[#allocation68_spill] sm:$0xff] %v4168_v22  ;;  %976 = vmatpush.msrb.mxu2 %v4186_v25  ;;  %v4192_v22 = vld [vmem:[%s5444_s3 + $0xd8] sm:$0xff] }
 0x2bd   :  { %6083 = vst [vmem:[#allocation69_spill] sm:$0xff] %v4174_v33  ;;  %996 = vmatpush.msrb.mxu3 %v4192_v22  ;;  %v4198_v33 = vld [vmem:[%s5444_s3 + $0xa0] sm:$0xff] }
 0x2be   :  { %6084 = vst [vmem:[#allocation70_spill] sm:$0xff] %v4180_v19  ;;  %937 = vmatpush.msrb.mxu0 %v4198_v33  ;;  %v4204_v19 = vld [vmem:[%s5444_s3 + $0xa8] sm:$0xff] }
 0x2bf   :  { %6085 = vst [vmem:[#allocation71_spill] sm:$0xff] %v4186_v25  ;;  %957 = vmatpush.msrb.mxu1 %v4204_v19  ;;  %v4210_v25 = vld [vmem:[%s5444_s3 + $0xb0] sm:$0xff] }
 0x2c0   :  { %6086 = vst [vmem:[#allocation72_spill] sm:$0xff] %v4192_v22  ;;  %977 = vmatpush.msrb.mxu2 %v4210_v25  ;;  %v4216_v22 = vld [vmem:[%s5444_s3 + $0xb8] sm:$0xff] }
 0x2c1   :  { %6087 = vst [vmem:[#allocation73_spill] sm:$0xff] %v4198_v33  ;;  %997 = vmatpush.msrb.mxu3 %v4216_v22  ;;  %v4222_v33 = vld [vmem:[%s5444_s3 + $0x80] sm:$0xff] }
 0x2c2   :  { %6088 = vst [vmem:[#allocation74_spill] sm:$0xff] %v4204_v19  ;;  %938 = vmatpush.msrb.mxu0 %v4222_v33  ;;  %v4228_v19 = vld [vmem:[%s5444_s3 + $0x88] sm:$0xff] }
 0x2c3   :  { %6089 = vst [vmem:[#allocation75_spill] sm:$0xff] %v4210_v25  ;;  %958 = vmatpush.msrb.mxu1 %v4228_v19  ;;  %v4234_v25 = vld [vmem:[%s5444_s3 + $0x90] sm:$0xff] }
 0x2c4   :  { %6090 = vst [vmem:[#allocation76_spill] sm:$0xff] %v4216_v22  ;;  %978 = vmatpush.msrb.mxu2 %v4234_v25  ;;  %v4240_v22 = vld [vmem:[%s5444_s3 + $0x98] sm:$0xff] }
 0x2c5   :  { %6091 = vst [vmem:[#allocation77_spill] sm:$0xff] %v4222_v33  ;;  %998 = vmatpush.msrb.mxu3 %v4240_v22  ;;  %v4246_v33 = vld [vmem:[%s5444_s3 + $0x60] sm:$0xff] }
 0x2c6   :  { %6092 = vst [vmem:[#allocation78_spill] sm:$0xff] %v4228_v19  ;;  %939 = vmatpush.msrb.mxu0 %v4246_v33  ;;  %v4252_v19 = vld [vmem:[%s5444_s3 + $0x68] sm:$0xff] }
 0x2c7   :  { %6093 = vst [vmem:[#allocation79_spill] sm:$0xff] %v4234_v25  ;;  %959 = vmatpush.msrb.mxu1 %v4252_v19  ;;  %v4258_v25 = vld [vmem:[%s5444_s3 + $0x70] sm:$0xff] }
 0x2c8   :  { %6094 = vst [vmem:[#allocation80_spill] sm:$0xff] %v4240_v22  ;;  %979 = vmatpush.msrb.mxu2 %v4258_v25  ;;  %v4264_v22 = vld [vmem:[%s5444_s3 + $0x78] sm:$0xff] }
 0x2c9   :  { %6095 = vst [vmem:[#allocation81_spill] sm:$0xff] %v4246_v33  ;;  %999 = vmatpush.msrb.mxu3 %v4264_v22  ;;  %v4270_v33 = vld [vmem:[%s5444_s3 + $0x40] sm:$0xff] }
 0x2ca   :  { %6096 = vst [vmem:[#allocation82_spill] sm:$0xff] %v4252_v19  ;;  %940 = vmatpush.msrb.mxu0 %v4270_v33  ;;  %v4276_v19 = vld [vmem:[%s5444_s3 + $0x48] sm:$0xff] }
 0x2cb   :  { %6097 = vst [vmem:[#allocation83_spill] sm:$0xff] %v4258_v25  ;;  %960 = vmatpush.msrb.mxu1 %v4276_v19  ;;  %v4282_v25 = vld [vmem:[%s5444_s3 + $0x50] sm:$0xff] }
 0x2cc   :  { %6098 = vst [vmem:[#allocation84_spill] sm:$0xff] %v4264_v22  ;;  %980 = vmatpush.msrb.mxu2 %v4282_v25  ;;  %v4288_v22 = vld [vmem:[%s5444_s3 + $0x58] sm:$0xff] }
 0x2cd   :  { %6099 = vst [vmem:[#allocation85_spill] sm:$0xff] %v4270_v33  ;;  %1000 = vmatpush.msrb.mxu3 %v4288_v22  ;;  %v4294_v33 = vld [vmem:[%s5444_s3 + $0x20] sm:$0xff] }
 0x2ce   :  { %6100 = vst [vmem:[#allocation86_spill] sm:$0xff] %v4276_v19  ;;  %941 = vmatpush.msrb.mxu0 %v4294_v33  ;;  %v4300_v19 = vld [vmem:[%s5444_s3 + $0x28] sm:$0xff] }
 0x2cf   :  { %6101 = vst [vmem:[#allocation87_spill] sm:$0xff] %v4282_v25  ;;  %961 = vmatpush.msrb.mxu1 %v4300_v19  ;;  %v4306_v25 = vld [vmem:[%s5444_s3 + $0x30] sm:$0xff] }
 0x2d0   :  { %6102 = vst [vmem:[#allocation88_spill] sm:$0xff] %v4288_v22  ;;  %981 = vmatpush.msrb.mxu2 %v4306_v25  ;;  %v4312_v22 = vld [vmem:[%s5444_s3 + $0x38] sm:$0xff] }
 0x2d1   :  { %6103 = vst [vmem:[#allocation89_spill] sm:$0xff] %v4294_v33  ;;  %1001 = vmatpush.msrb.mxu3 %v4312_v22  ;;  %v4318_v33 = vld [vmem:[%s5444_s3] sm:$0xff] }
 0x2d2   :  { %6104 = vst [vmem:[#allocation90_spill] sm:$0xff] %v4300_v19  ;;  %942 = vmatpush.msrb.mxu0 %v4318_v33  ;;  %v4324_v19 = vld [vmem:[%s5444_s3 + $0x8] sm:$0xff] }
 0x2d3   :  { %6105 = vst [vmem:[#allocation91_spill] sm:$0xff] %v4306_v25  ;;  %962 = vmatpush.msrb.mxu1 %v4324_v19  ;;  %v4330_v25 = vld [vmem:[%s5444_s3 + $0x10] sm:$0xff] }
 0x2d4   :  { %6106 = vst [vmem:[#allocation92_spill] sm:$0xff] %v4312_v22  ;;  %982 = vmatpush.msrb.mxu2 %v4330_v25  ;;  %v4336_v22 = vld [vmem:[%s5444_s3 + $0x18] sm:$0xff]  ;;  %1050 = vmatpush.msra.mxu0 %v3542_v30 }
 0x2d5   :  { %1002 = vmatpush.msrb.mxu3 %v4336_v22  ;;  %1070 = vmatpush.msra.mxu1 %v3548_v44 }
 0x2d6   :  { %1090 = vmatpush.msra.mxu2 %v3554_v34  ;;  %1051 = vmatpush.msra.mxu0 %v3566_v36 }
 0x2d7   :  { %1110 = vmatpush.msra.mxu3 %v3560_v35  ;;  %1071 = vmatpush.msra.mxu1 %v3572_v37 }
 0x2d8   :  { %1091 = vmatpush.msra.mxu2 %v3578_v38  ;;  %1052 = vmatpush.msra.mxu0 %v3590_v40 }
 0x2d9   :  { %1111 = vmatpush.msra.mxu3 %v3584_v39  ;;  %1072 = vmatpush.msra.mxu1 %v3596_v42 }
 0x2da   :  { %1092 = vmatpush.msra.mxu2 %v3602_v63  ;;  %1053 = vmatpush.msra.mxu0 %v3614_v48 }
 0x2db   :  { %1112 = vmatpush.msra.mxu3 %v3608_v45  ;;  %1073 = vmatpush.msra.mxu1 %v3620_v50 }
 0x2dc   :  { %1093 = vmatpush.msra.mxu2 %v3626_v53  ;;  %1054 = vmatpush.msra.mxu0 %v3638_v58 }
 0x2dd   :  { %1113 = vmatpush.msra.mxu3 %v3632_v59  ;;  %1074 = vmatpush.msra.mxu1 %v3644_v47 }
 0x2de   :  { %1094 = vmatpush.msra.mxu2 %v3650_v0  ;;  %1055 = vmatpush.msra.mxu0 %v3662_v57 }
 0x2df   :  { %1114 = vmatpush.msra.mxu3 %v3656_v43  ;;  %1075 = vmatpush.msra.mxu1 %v3668_v54 }
 0x2e0   :  { %1095 = vmatpush.msra.mxu2 %v3674_v55  ;;  %1056 = vmatpush.msra.mxu0 %v3686_v46 }
 0x2e1   :  { %1115 = vmatpush.msra.mxu3 %v3680_v60  ;;  %1076 = vmatpush.msra.mxu1 %v3692_v51 }
 0x2e2   :  { %1096 = vmatpush.msra.mxu2 %v3698_v41  ;;  %1057 = vmatpush.msra.mxu0 %v3710_v52  ;;  %v6130_v52 = vld [vmem:[#allocation37_spill] sm:$0xff] }
 0x2e3   :  { %1116 = vmatpush.msra.mxu3 %v3704_v56  ;;  %1077 = vmatpush.msra.mxu1 %v3716_v62 }
 0x2e4   :  { %1097 = vmatpush.msra.mxu2 %v3722_v1  ;;  %1058 = vmatpush.msra.mxu0 %v3734_v3  ;;  %v6108_v3 = vld [vmem:[#allocation20_spill] sm:$0xff] }
 0x2e5   :  { %1117 = vmatpush.msra.mxu3 %v3728_v2  ;;  %1078 = vmatpush.msra.mxu1 %v3740_v4  ;;  %v6107_v2 = vld [vmem:[#allocation19_spill] sm:$0xff]  ;;  %v6109_v4 = vld [vmem:[#allocation22_spill] sm:$0xff]  ;;  %v6129_v1 = vld [vmem:[#allocation16_spill] sm:$0xff] }
 0x2e6   :  { %1098 = vmatpush.msra.mxu2 %v3746_v5  ;;  %1059 = vmatpush.msra.mxu0 %v3758_v7  ;;  %v6110_v5 = vld [vmem:[#allocation24_spill] sm:$0xff]  ;;  %v6112_v7 = vld [vmem:[#allocation26_spill] sm:$0xff] }
 0x2e7   :  { %1118 = vmatpush.msra.mxu3 %v3752_v6  ;;  %1079 = vmatpush.msra.mxu1 %v3764_v8  ;;  %v6111_v6 = vld [vmem:[#allocation28_spill] sm:$0xff]  ;;  %v6113_v8 = vld [vmem:[#allocation27_spill] sm:$0xff] }
 0x2e8   :  { %1099 = vmatpush.msra.mxu2 %v3770_v9  ;;  %1060 = vmatpush.msra.mxu0 %v3782_v11  ;;  %v6114_v9 = vld [vmem:[#allocation29_spill] sm:$0xff]  ;;  %v6116_v11 = vld [vmem:[#allocation31_spill] sm:$0xff] }
 0x2e9   :  { %1119 = vmatpush.msra.mxu3 %v3776_v10  ;;  %1080 = vmatpush.msra.mxu1 %v3788_v12  ;;  %v6115_v10 = vld [vmem:[#allocation30_spill] sm:$0xff]  ;;  %v6117_v12 = vld [vmem:[#allocation32_spill] sm:$0xff] }
 0x2ea   :  { %1100 = vmatpush.msra.mxu2 %v6107_v2  ;;  %1061 = vmatpush.msra.mxu0 %v6109_v4  ;;  %v6118_v2 = vld [vmem:[#allocation33_spill] sm:$0xff]  ;;  %v6120_v4 = vld [vmem:[#allocation35_spill] sm:$0xff] }
 0x2eb   :  { %1120 = vmatpush.msra.mxu3 %v6108_v3  ;;  %1081 = vmatpush.msra.mxu1 %v6110_v5  ;;  %v6119_v3 = vld [vmem:[#allocation34_spill] sm:$0xff]  ;;  %v6121_v5 = vld [vmem:[#allocation36_spill] sm:$0xff] }
 0x2ec   :  { %1101 = vmatpush.msra.mxu2 %v6111_v6  ;;  %1062 = vmatpush.msra.mxu0 %v6113_v8  ;;  %v6122_v6 = vld [vmem:[#allocation38_spill] sm:$0xff]  ;;  %v6124_v8 = vld [vmem:[#allocation41_spill] sm:$0xff] }
 0x2ed   :  { %1121 = vmatpush.msra.mxu3 %v6112_v7  ;;  %1082 = vmatpush.msra.mxu1 %v6114_v9  ;;  %v6123_v7 = vld [vmem:[#allocation39_spill] sm:$0xff]  ;;  %v6125_v9 = vld [vmem:[#allocation42_spill] sm:$0xff] }
 0x2ee   :  { %1102 = vmatpush.msra.mxu2 %v6115_v10  ;;  %1063 = vmatpush.msra.mxu0 %v6117_v12  ;;  %v6126_v10 = vld [vmem:[#allocation43_spill] sm:$0xff]  ;;  %v6128_v12 = vld [vmem:[#allocation45_spill] sm:$0xff] }
 0x2ef   :  { %1122 = vmatpush.msra.mxu3 %v6116_v11  ;;  %1083 = vmatpush.msra.mxu1 %v6118_v2  ;;  %v6127_v11 = vld [vmem:[#allocation44_spill] sm:$0xff] }
 0x2f0   :  { %1103 = vmatpush.msra.mxu2 %v6119_v3  ;;  %1064 = vmatpush.msra.mxu0 %v6121_v5 }
 0x2f1   :  { %1123 = vmatpush.msra.mxu3 %v6120_v4  ;;  %1084 = vmatpush.msra.mxu1 %v6122_v6 }
 0x2f2   :  { %1104 = vmatpush.msra.mxu2 %v6123_v7  ;;  %1065 = vmatpush.msra.mxu0 %v6125_v9 }
 0x2f3   :  { %1124 = vmatpush.msra.mxu3 %v6124_v8  ;;  %1085 = vmatpush.msra.mxu1 %v6126_v10 }
 0x2f4   :  { %1105 = vmatpush.msra.mxu2 %v6127_v11 }
 0x2f5   :  { %1125 = vmatpush.msra.mxu3 %v6128_v12 }
 0x31c   :  { %v734_v2 = vpop.f32.mrf.mxu0  ;;  %v754_v3 = vpop.f32.mrf.mxu1 }
 0x31d   :  { %v735_v4 = vadd.f32 %v734_v2, %v6129_v1  ;;  %v755_v5 = vadd.f32 %v754_v3, %v3438_v24 }
 0x31f   :  { %v815_v62 = vmul.f32 0.5, %v735_v4  ;;  %v819_v6 = vmul.f32 0.5, %v755_v5  ;;  %v6131_v4 = vld [vmem:[#allocation46_spill] sm:$0xff] }
 0x321   :  { %2001 = vtanh.f32 %v815_v62 }
 0x322   :  { %2003 = vtanh.f32 %v819_v6 }
 0x323   :  { %v774_v7 = vpop.f32.mrf.mxu2  ;;  %v794_v8 = vpop.f32.mrf.mxu3 }
 0x324   :  { %v775_v9 = vadd.f32 %v774_v7, %v3442_v31  ;;  %v795_v10 = vadd.f32 %v794_v8, %v6130_v52 }
 0x326   :  { %2005 = vtanh.f32 %v775_v9  ;;  %v824_v11 = vmul.f32 0.5, %v795_v10 }
 0x327   :  { %v2002_v56 = vpop.eup %2001 }
 0x328   :  { %v2004_v12 = vpop.eup %2003  ;;  %v817_v41 = vadd.f32 1.0, %v2002_v56  ;;  %2007 = vtanh.f32 %v824_v11  ;;  %v1918_v56 = vld [vmem:[%s5443_s0 + $0x88] sm:$0xff] }
 0x329   :  { %v821_v51 = vadd.f32 1.0, %v2004_v12 }
 0x32a   :  { %v818_v2 = vmul.f32 0.5, %v817_v41  ;;  %v1917_v41 = vld [vmem:[%s5443_s0 + $0x80] sm:$0xff] }
 0x32b   :  { %v822_v1 = vmul.f32 0.5, %v821_v51  ;;  %v857_v51 = vpop.f32.mrf.mxu0 }
 0x32c   :  { %v2006_v3 = vpop.eup %2005  ;;  %v920_v11 = vadd.f32 %v1917_v41, %v857_v51 }
 0x32d   :  { %v828_v5 = vmul.f32 %v822_v1, %v6131_v4  ;;  %v829_v62 = vmul.f32 %v2006_v3, %v818_v2  ;;  %v877_v1 = vpop.f32.mrf.mxu1  ;;  %v1919_v4 = vld [vmem:[%s5443_s0 + $0x90] sm:$0xff] }
 0x32e   :  { %v2008_v6 = vpop.eup %2007  ;;  %v921_v12 = vadd.f32 %v1918_v56, %v877_v1  ;;  %v1007_v2 = vmul.f32 0.5, %v920_v11 }
 0x32f   :  { %v4408_v24 = vadd.f32 %v829_v62, %v828_v5  ;;  %v826_v7 = vadd.f32 1.0, %v2008_v6  ;;  %v897_v5 = vpop.f32.mrf.mxu2 }
 0x330   :  { %v1011_v3 = vmul.f32 0.5, %v921_v12  ;;  %v922_v62 = vadd.f32 %v1919_v4, %v897_v5 }
 0x331   :  { %6132 = vst [vmem:[#allocation46_spill] sm:$0xff] %v4408_v24  ;;  %2009 = vtanh.f32 %v4408_v24  ;;  %v827_v8 = vmul.f32 0.5, %v826_v7 }
 0x332   :  { %2011 = vtanh.f32 %v1007_v2 }
 0x333   :  { %2013 = vtanh.f32 %v1011_v3 }
 0x334   :  { %2015 = vtanh.f32 %v922_v62 }
 0x337   :  { %v2010_v9 = vpop.eup %2009 }
 0x338   :  { %v832_v10 = vmul.f32 %v2010_v9, %v827_v8  ;;  %v2012_v6 = vpop.eup %2011  ;;  %v1920_v8 = vld [vmem:[%s5443_s0 + $0x98] sm:$0xff]  ;;  %v917_v9 = vpop.f32.mrf.mxu3 }
 0x339   :  { %v2014_v7 = vpop.eup %2013  ;;  %v923_v51 = vadd.f32 %v1920_v8, %v917_v9  ;;  %v6136_v8 = vld [vmem:[#allocation50_spill] sm:$0xff]  ;;  %v6137_v9 = vld [vmem:[#allocation51_spill] sm:$0xff] }
 0x33a   :  { %924 = vrot.lane.b32.xlu1 %v832_v10, %s2362_s21  ;;  %v1009_v10 = vadd.f32 1.0, %v2012_v6  ;;  %v1013_v41 = vadd.f32 1.0, %v2014_v7  ;;  %v2016_v11 = vpop.eup %2015  ;;  %v6135_v7 = vld [vmem:[#allocation49_spill] sm:$0xff] }
 0x33b   :  { %v1016_v12 = vmul.f32 0.5, %v923_v51  ;;  %v6140_v51 = vld [vmem:[#allocation54_spill] sm:$0xff] }
 0x33c   :  { %v1010_v56 = vmul.f32 0.5, %v1009_v10  ;;  %v1014_v1 = vmul.f32 0.5, %v1013_v41  ;;  %v6138_v10 = vld [vmem:[#allocation52_spill] sm:$0xff]  ;;  %v6139_v41 = vld [vmem:[#allocation53_spill] sm:$0xff] }
 0x33d   :  { %2017 = vtanh.f32 %v1016_v12  ;;  %v6144_v12 = vld [vmem:[#allocation58_spill] sm:$0xff] }
 0x33e   :  { %v1020_v2 = vmul.f32 %v1014_v1, %v3945_v49  ;;  %v1021_v3 = vmul.f32 %v2016_v11, %v1010_v56  ;;  %v6141_v56 = vld [vmem:[#allocation55_spill] sm:$0xff]  ;;  %v6142_v1 = vld [vmem:[#allocation56_spill] sm:$0xff]  ;;  %v6143_v11 = vld [vmem:[#allocation57_spill] sm:$0xff] }
 0x340   :  { %v4425_v4 = vadd.f32 %v1021_v3, %v1020_v2  ;;  %v6145_v2 = vld [vmem:[#allocation59_spill] sm:$0xff]  ;;  %v6146_v3 = vld [vmem:[#allocation60_spill] sm:$0xff] }
 0x342   :  { %2019 = vtanh.f32 %v4425_v4 }
 0x343   :  { %v2018_v5 = vpop.eup %2017 }
 0x344   :  { %v1018_v52 = vadd.f32 1.0, %v2018_v5  ;;  %v6147_v5 = vld [vmem:[#allocation61_spill] sm:$0xff] }
 0x346   :  { %v1019_v6 = vmul.f32 0.5, %v1018_v52  ;;  %v6134_v52 = vld [vmem:[#allocation48_spill] sm:$0xff] }
 0x348   :  { %v2020_v49 = vpop.eup %2019 }
 0x3ac   :  { %v925_v62 = vpop.permute.xlu1 %924 }
 0x3ad   :  { %v926_v24 = vadd.f32 %v925_v62, %v3997_v13  ;;  %v4437_v13 = vmul.f32 %v2020_v49, %v1019_v6  ;;  %v6148_v62 = vld [vmem:[#allocation62_spill] sm:$0xff]  ;;  %v6149_v49 = vld [vmem:[#allocation63_spill] sm:$0xff]  ;;  %v6150_v6 = vld [vmem:[#allocation64_spill] sm:$0xff] }
 0x3af   :  { %943 = vmatmul.f32.vlgmr.msrb.gmra.mxu0 %v926_v24  ;;  %963 = vmatmul.f32.vlgmr.msrb.gmra.mxu1 %v926_v24 }
 0x3b0   :  { %983 = vmatmul.f32.vlgmr.msrb.gmra.mxu2 %v926_v24  ;;  %1003 = vmatmul.f32.vlgmr.msrb.gmra.mxu3 %v926_v24  ;;  %v6133_v24 = vld [vmem:[#allocation47_spill] sm:$0xff] }
 0x3b1   :  { %1137 = vmatpush.msrb.mxu0 %v3952_v21  ;;  %1157 = vmatpush.msrb.mxu1 %v3958_v16 }
 0x3b2   :  { %1177 = vmatpush.msrb.mxu2 %v3964_v20  ;;  %1197 = vmatpush.msrb.mxu3 %v3970_v26 }
 0x3b3   :  { %1138 = vmatpush.msrb.mxu0 %v3976_v27  ;;  %1158 = vmatpush.msrb.mxu1 %v3982_v18 }
 0x3b4   :  { %1178 = vmatpush.msrb.mxu2 %v3988_v14  ;;  %1198 = vmatpush.msrb.mxu3 %v3994_v32 }
 0x3b5   :  { %1139 = vmatpush.msrb.mxu0 %v4002_v23  ;;  %1159 = vmatpush.msrb.mxu1 %v4008_v61 }
 0x3b6   :  { %1179 = vmatpush.msrb.mxu2 %v4014_v15  ;;  %1199 = vmatpush.msrb.mxu3 %v4020_v17 }
 0x3b7   :  { %1066 = vmatmul.f32.vlgmr.msra.gmra.mxu0 %v4437_v13  ;;  %1086 = vmatmul.f32.vlgmr.msra.gmra.mxu1 %v4437_v13 }
 0x3b8   :  { %1106 = vmatmul.f32.vlgmr.msra.gmra.mxu2 %v4437_v13  ;;  %1126 = vmatmul.f32.vlgmr.msra.gmra.mxu3 %v4437_v13 }
 0x3b9   :  { %1140 = vmatpush.msrb.mxu0 %v4030_v28  ;;  %1160 = vmatpush.msrb.mxu1 %v4036_v29 }
 0x3ba   :  { %1180 = vmatpush.msrb.mxu2 %v6133_v24  ;;  %1200 = vmatpush.msrb.mxu3 %v6134_v52 }
 0x3bb   :  { %1141 = vmatpush.msrb.mxu0 %v6135_v7  ;;  %1161 = vmatpush.msrb.mxu1 %v6136_v8 }
 0x3bc   :  { %1181 = vmatpush.msrb.mxu2 %v6137_v9  ;;  %1201 = vmatpush.msrb.mxu3 %v6138_v10 }
 0x3bd   :  { %1142 = vmatpush.msrb.mxu0 %v6139_v41  ;;  %1162 = vmatpush.msrb.mxu1 %v6140_v51  ;;  %v6151_v51 = vld [vmem:[#allocation65_spill] sm:$0xff] }
 0x3be   :  { %1182 = vmatpush.msrb.mxu2 %v6141_v56  ;;  %1202 = vmatpush.msrb.mxu3 %v6142_v1  ;;  %v6152_v56 = vld [vmem:[#allocation66_spill] sm:$0xff]  ;;  %v6153_v1 = vld [vmem:[#allocation67_spill] sm:$0xff] }
 0x3bf   :  { %1143 = vmatpush.msrb.mxu0 %v6143_v11  ;;  %1163 = vmatpush.msrb.mxu1 %v6144_v12  ;;  %v6154_v11 = vld [vmem:[#allocation68_spill] sm:$0xff]  ;;  %v6155_v12 = vld [vmem:[#allocation69_spill] sm:$0xff] }
 0x3c0   :  { %1183 = vmatpush.msrb.mxu2 %v6145_v2  ;;  %1203 = vmatpush.msrb.mxu3 %v6146_v3  ;;  %v6156_v2 = vld [vmem:[#allocation70_spill] sm:$0xff]  ;;  %v6157_v3 = vld [vmem:[#allocation71_spill] sm:$0xff] }
 0x3c1   :  { %1144 = vmatpush.msrb.mxu0 %v6147_v5  ;;  %1164 = vmatpush.msrb.mxu1 %v6148_v62  ;;  %v6158_v5 = vld [vmem:[#allocation72_spill] sm:$0xff]  ;;  %v6159_v62 = vld [vmem:[#allocation73_spill] sm:$0xff] }
 0x3c2   :  { %1184 = vmatpush.msrb.mxu2 %v6149_v49  ;;  %1204 = vmatpush.msrb.mxu3 %v6150_v6  ;;  %v6160_v49 = vld [vmem:[#allocation74_spill] sm:$0xff]  ;;  %v6161_v6 = vld [vmem:[#allocation75_spill] sm:$0xff] }
 0x3c3   :  { %1145 = vmatpush.msrb.mxu0 %v6151_v51  ;;  %1165 = vmatpush.msrb.mxu1 %v6152_v56  ;;  %v6162_v51 = vld [vmem:[#allocation76_spill] sm:$0xff]  ;;  %v6163_v56 = vld [vmem:[#allocation77_spill] sm:$0xff] }
 0x3c4   :  { %1185 = vmatpush.msrb.mxu2 %v6153_v1  ;;  %1205 = vmatpush.msrb.mxu3 %v6154_v11  ;;  %v6164_v1 = vld [vmem:[#allocation78_spill] sm:$0xff]  ;;  %v6165_v11 = vld [vmem:[#allocation79_spill] sm:$0xff] }
 0x3c5   :  { %1146 = vmatpush.msrb.mxu0 %v6155_v12  ;;  %1166 = vmatpush.msrb.mxu1 %v6156_v2  ;;  %v6166_v12 = vld [vmem:[#allocation80_spill] sm:$0xff]  ;;  %v6167_v2 = vld [vmem:[#allocation81_spill] sm:$0xff] }
 0x3c6   :  { %1186 = vmatpush.msrb.mxu2 %v6157_v3  ;;  %1206 = vmatpush.msrb.mxu3 %v6158_v5  ;;  %v6168_v3 = vld [vmem:[#allocation82_spill] sm:$0xff]  ;;  %v6169_v5 = vld [vmem:[#allocation83_spill] sm:$0xff] }
 0x3c7   :  { %1147 = vmatpush.msrb.mxu0 %v6159_v62  ;;  %1167 = vmatpush.msrb.mxu1 %v6160_v49  ;;  %v6170_v62 = vld [vmem:[#allocation84_spill] sm:$0xff]  ;;  %v6171_v49 = vld [vmem:[#allocation85_spill] sm:$0xff] }
 0x3c8   :  { %1187 = vmatpush.msrb.mxu2 %v6161_v6  ;;  %1207 = vmatpush.msrb.mxu3 %v6162_v51  ;;  %v6172_v6 = vld [vmem:[#allocation86_spill] sm:$0xff]  ;;  %v6173_v51 = vld [vmem:[#allocation87_spill] sm:$0xff] }
 0x3c9   :  { %1148 = vmatpush.msrb.mxu0 %v6163_v56  ;;  %1168 = vmatpush.msrb.mxu1 %v6164_v1  ;;  %v6174_v56 = vld [vmem:[#allocation88_spill] sm:$0xff]  ;;  %v6175_v1 = vld [vmem:[#allocation89_spill] sm:$0xff] }
 0x3ca   :  { %1188 = vmatpush.msrb.mxu2 %v6165_v11  ;;  %1208 = vmatpush.msrb.mxu3 %v6166_v12  ;;  %v6176_v11 = vld [vmem:[#allocation90_spill] sm:$0xff]  ;;  %v6177_v12 = vld [vmem:[#allocation91_spill] sm:$0xff] }
 0x3cb   :  { %1149 = vmatpush.msrb.mxu0 %v6167_v2  ;;  %1169 = vmatpush.msrb.mxu1 %v6168_v3  ;;  %v6178_v2 = vld [vmem:[#allocation92_spill] sm:$0xff] }
 0x3cc   :  { %1189 = vmatpush.msrb.mxu2 %v6169_v5  ;;  %1209 = vmatpush.msrb.mxu3 %v6170_v62 }
 0x3cd   :  { %1150 = vmatpush.msrb.mxu0 %v6171_v49  ;;  %1170 = vmatpush.msrb.mxu1 %v6172_v6 }
 0x3ce   :  { %1190 = vmatpush.msrb.mxu2 %v6173_v51  ;;  %1210 = vmatpush.msrb.mxu3 %v6174_v56 }
 0x3cf   :  { %1151 = vmatpush.msrb.mxu0 %v6175_v1  ;;  %1171 = vmatpush.msrb.mxu1 %v6176_v11 }
 0x3d0   :  { %1191 = vmatpush.msrb.mxu2 %v6177_v12  ;;  %1211 = vmatpush.msrb.mxu3 %v6178_v2 }
 0x3d1   :  { %1152 = vmatpush.msrb.mxu0 %v4318_v33  ;;  %1172 = vmatpush.msrb.mxu1 %v4324_v19 }
 0x3d2   :  { %1192 = vmatpush.msrb.mxu2 %v4330_v25  ;;  %1212 = vmatpush.msrb.mxu3 %v4336_v22 }
 0x3d3   :  { %1260 = vmatpush.msra.mxu0 %v3542_v30  ;;  %1280 = vmatpush.msra.mxu1 %v3548_v44  ;;  %v6179_v30 = vld [vmem:[#allocation40_spill] sm:$0xff]  ;;  %v6180_v44 = vld [vmem:[#allocation7_spill] sm:$0xff] }
 0x3d4   :  { %1300 = vmatpush.msra.mxu2 %v3554_v34  ;;  %1320 = vmatpush.msra.mxu3 %v3560_v35  ;;  %v6181_v34 = vld [vmem:[#allocation3_spill] sm:$0xff]  ;;  %v6182_v35 = vld [vmem:[#allocation4_spill] sm:$0xff] }
 0x3d5   :  { %1261 = vmatpush.msra.mxu0 %v3566_v36  ;;  %1281 = vmatpush.msra.mxu1 %v3572_v37  ;;  %v6183_v36 = vld [vmem:[#allocation5_spill] sm:$0xff]  ;;  %v6184_v37 = vld [vmem:[#allocation11_spill] sm:$0xff] }
 0x3d6   :  { %1301 = vmatpush.msra.mxu2 %v3578_v38  ;;  %1321 = vmatpush.msra.mxu3 %v3584_v39  ;;  %v6185_v38 = vld [vmem:[#allocation6_spill] sm:$0xff]  ;;  %v6186_v39 = vld [vmem:[#allocation8_spill] sm:$0xff] }
 0x3d7   :  { %1262 = vmatpush.msra.mxu0 %v3590_v40  ;;  %1282 = vmatpush.msra.mxu1 %v3596_v42  ;;  %v6187_v40 = vld [vmem:[#allocation9_spill] sm:$0xff] }
 0x3d8   :  { %1302 = vmatpush.msra.mxu2 %v3602_v63  ;;  %1322 = vmatpush.msra.mxu3 %v3608_v45  ;;  %v6188_v42 = vld [vmem:[#allocation13_spill] sm:$0xff]  ;;  %v6189_v63 = vld [vmem:[#allocation10_spill] sm:$0xff]  ;;  %v6190_v45 = vld [vmem:[#allocation12_spill] sm:$0xff] }
 0x3d9   :  { %1263 = vmatpush.msra.mxu0 %v3614_v48  ;;  %1283 = vmatpush.msra.mxu1 %v3620_v50  ;;  %v6191_v48 = vld [vmem:[#allocation17_spill] sm:$0xff]  ;;  %v6192_v50 = vld [vmem:[#allocation14_spill] sm:$0xff] }
 0x3da   :  { %1303 = vmatpush.msra.mxu2 %v3626_v53  ;;  %1323 = vmatpush.msra.mxu3 %v3632_v59  ;;  %v6193_v53 = vld [vmem:[#allocation15_spill] sm:$0xff]  ;;  %v6194_v59 = vld [vmem:[#allocation21_spill] sm:$0xff] }
 0x3db   :  { %1264 = vmatpush.msra.mxu0 %v3638_v58  ;;  %1284 = vmatpush.msra.mxu1 %v3644_v47  ;;  %v6195_v58 = vld [vmem:[#allocation18_spill] sm:$0xff]  ;;  %v6196_v47 = vld [vmem:[#allocation19_spill] sm:$0xff] }
 0x3dc   :  { %1304 = vmatpush.msra.mxu2 %v3650_v0  ;;  %1324 = vmatpush.msra.mxu3 %v3656_v43  ;;  %v6197_v0 = vld [vmem:[#allocation20_spill] sm:$0xff]  ;;  %v6198_v43 = vld [vmem:[#allocation22_spill] sm:$0xff] }
 0x3dd   :  { %1265 = vmatpush.msra.mxu0 %v3662_v57  ;;  %1285 = vmatpush.msra.mxu1 %v3668_v54  ;;  %v6199_v57 = vld [vmem:[#allocation24_spill] sm:$0xff] }
 0x3de   :  { %1305 = vmatpush.msra.mxu2 %v3674_v55  ;;  %1325 = vmatpush.msra.mxu3 %v3680_v60  ;;  %v6200_v54 = vld [vmem:[#allocation28_spill] sm:$0xff]  ;;  %v6201_v55 = vld [vmem:[#allocation26_spill] sm:$0xff]  ;;  %v6202_v60 = vld [vmem:[#allocation27_spill] sm:$0xff] }
 0x3df   :  { %1266 = vmatpush.msra.mxu0 %v3686_v46  ;;  %1286 = vmatpush.msra.mxu1 %v6179_v30  ;;  %v6203_v46 = vld [vmem:[#allocation29_spill] sm:$0xff]  ;;  %v6204_v30 = vld [vmem:[#allocation30_spill] sm:$0xff] }
 0x3e0   :  { %1306 = vmatpush.msra.mxu2 %v6180_v44  ;;  %1326 = vmatpush.msra.mxu3 %v6181_v34  ;;  %v6205_v44 = vld [vmem:[#allocation31_spill] sm:$0xff]  ;;  %v6206_v34 = vld [vmem:[#allocation32_spill] sm:$0xff] }
 0x3e1   :  { %1267 = vmatpush.msra.mxu0 %v6182_v35  ;;  %1287 = vmatpush.msra.mxu1 %v6183_v36  ;;  %v6207_v35 = vld [vmem:[#allocation33_spill] sm:$0xff]  ;;  %v6208_v36 = vld [vmem:[#allocation34_spill] sm:$0xff] }
 0x3e2   :  { %1307 = vmatpush.msra.mxu2 %v6184_v37  ;;  %1327 = vmatpush.msra.mxu3 %v6185_v38  ;;  %v6209_v37 = vld [vmem:[#allocation35_spill] sm:$0xff]  ;;  %v6210_v38 = vld [vmem:[#allocation36_spill] sm:$0xff] }
 0x3e3   :  { %1268 = vmatpush.msra.mxu0 %v6186_v39  ;;  %1288 = vmatpush.msra.mxu1 %v6187_v40  ;;  %v6211_v39 = vld [vmem:[#allocation38_spill] sm:$0xff]  ;;  %v6212_v40 = vld [vmem:[#allocation39_spill] sm:$0xff] }
 0x3e4   :  { %1308 = vmatpush.msra.mxu2 %v6188_v42  ;;  %1328 = vmatpush.msra.mxu3 %v6189_v63  ;;  %v6213_v42 = vld [vmem:[#allocation41_spill] sm:$0xff]  ;;  %v6214_v63 = vld [vmem:[#allocation42_spill] sm:$0xff] }
 0x3e5   :  { %1269 = vmatpush.msra.mxu0 %v6190_v45  ;;  %1289 = vmatpush.msra.mxu1 %v6191_v48  ;;  %v6215_v45 = vld [vmem:[#allocation43_spill] sm:$0xff]  ;;  %v6216_v48 = vld [vmem:[#allocation44_spill] sm:$0xff] }
 0x3e6   :  { %1309 = vmatpush.msra.mxu2 %v6192_v50  ;;  %1329 = vmatpush.msra.mxu3 %v6193_v53  ;;  %v6217_v50 = vld [vmem:[#allocation45_spill] sm:$0xff] }
 0x3e7   :  { %1270 = vmatpush.msra.mxu0 %v6194_v59  ;;  %1290 = vmatpush.msra.mxu1 %v6195_v58  ;;  %v6218_v58 = vld [vmem:[#allocation16_spill] sm:$0xff] }
 0x3e8   :  { %1310 = vmatpush.msra.mxu2 %v6196_v47  ;;  %1330 = vmatpush.msra.mxu3 %v6197_v0  ;;  %v6219_v0 = vld [vmem:[#allocation23_spill] sm:$0xff] }
 0x3e9   :  { %1271 = vmatpush.msra.mxu0 %v6198_v43  ;;  %1291 = vmatpush.msra.mxu1 %v6199_v57 }
 0x3ea   :  { %1311 = vmatpush.msra.mxu2 %v6200_v54  ;;  %1331 = vmatpush.msra.mxu3 %v6201_v55 }
 0x3eb   :  { %1272 = vmatpush.msra.mxu0 %v6202_v60  ;;  %1292 = vmatpush.msra.mxu1 %v6203_v46 }
 0x3ec   :  { %1312 = vmatpush.msra.mxu2 %v6204_v30  ;;  %1332 = vmatpush.msra.mxu3 %v6205_v44  ;;  %v6220_v30 = vld [vmem:[#allocation37_spill] sm:$0xff] }
 0x3ed   :  { %1273 = vmatpush.msra.mxu0 %v6206_v34  ;;  %1293 = vmatpush.msra.mxu1 %v6207_v35 }
 0x3ee   :  { %1313 = vmatpush.msra.mxu2 %v6208_v36  ;;  %1333 = vmatpush.msra.mxu3 %v6209_v37 }
 0x3ef   :  { %1274 = vmatpush.msra.mxu0 %v6210_v38  ;;  %1294 = vmatpush.msra.mxu1 %v6211_v39 }
 0x3f0   :  { %1314 = vmatpush.msra.mxu2 %v6212_v40  ;;  %1334 = vmatpush.msra.mxu3 %v6213_v42 }
 0x3f1   :  { %1275 = vmatpush.msra.mxu0 %v6214_v63  ;;  %1295 = vmatpush.msra.mxu1 %v6215_v45  ;;  %v6221_v63 = vld [vmem:[#allocation46_spill] sm:$0xff] }
 0x3f2   :  { %1315 = vmatpush.msra.mxu2 %v6216_v48  ;;  %1335 = vmatpush.msra.mxu3 %v6217_v50 }
 0x42c   :  { %v944_v53 = vpop.f32.mrf.mxu0  ;;  %v964_v59 = vpop.f32.mrf.mxu1 }
 0x42d   :  { %v945_v47 = vadd.f32 %v944_v53, %v6218_v58  ;;  %v965_v43 = vadd.f32 %v964_v59, %v6219_v0 }
 0x42f   :  { %v1025_v57 = vmul.f32 0.5, %v945_v47  ;;  %v1029_v54 = vmul.f32 0.5, %v965_v43 }
 0x431   :  { %2021 = vtanh.f32 %v1025_v57 }
 0x432   :  { %2023 = vtanh.f32 %v1029_v54  ;;  %v1921_v54 = vld [vmem:[%s5443_s0 + $0xa0] sm:$0xff] }
 0x433   :  { %v984_v55 = vpop.f32.mrf.mxu2  ;;  %v1004_v60 = vpop.f32.mrf.mxu3 }
 0x434   :  { %v985_v46 = vadd.f32 %v984_v55, %v3442_v31  ;;  %v1005_v44 = vadd.f32 %v1004_v60, %v6220_v30  ;;  %v1067_v55 = vpop.f32.mrf.mxu0  ;;  %v1922_v60 = vld [vmem:[%s5443_s0 + $0xa8] sm:$0xff] }
 0x436   :  { %2025 = vtanh.f32 %v985_v46  ;;  %v1034_v34 = vmul.f32 0.5, %v1005_v44  ;;  %v1087_v46 = vpop.f32.mrf.mxu1  ;;  %v1130_v44 = vadd.f32 %v1921_v54, %v1067_v55 }
 0x437   :  { %v2022_v35 = vpop.eup %2021 }
 0x438   :  { %v2024_v36 = vpop.eup %2023  ;;  %v1027_v37 = vadd.f32 1.0, %v2022_v35  ;;  %2027 = vtanh.f32 %v1034_v34  ;;  %v1131_v34 = vadd.f32 %v1922_v60, %v1087_v46  ;;  %v1217_v35 = vmul.f32 0.5, %v1130_v44 }
 0x439   :  { %v1031_v38 = vadd.f32 1.0, %v2024_v36 }
 0x43a   :  { %v1028_v39 = vmul.f32 0.5, %v1027_v37  ;;  %v1221_v36 = vmul.f32 0.5, %v1131_v34  ;;  %v1923_v37 = vld [vmem:[%s5443_s0 + $0xb0] sm:$0xff] }
 0x43b   :  { %v1032_v40 = vmul.f32 0.5, %v1031_v38  ;;  %v1107_v38 = vpop.f32.mrf.mxu2 }
 0x43c   :  { %v2026_v42 = vpop.eup %2025 }
 0x43d   :  { %v1038_v45 = vmul.f32 %v1032_v40, %v6221_v63  ;;  %v1039_v48 = vmul.f32 %v2026_v42, %v1028_v39  ;;  %v1132_v39 = vadd.f32 %v1923_v37, %v1107_v38  ;;  %v1924_v63 = vld [vmem:[%s5443_s0 + $0xb8] sm:$0xff]  ;;  %v6243_v38 = vld [vmem:[#allocation75_spill] sm:$0xff] }
 0x43e   :  { %v2028_v50 = vpop.eup %2027 }
 0x43f   :  { %v4568_v53 = vadd.f32 %v1039_v48, %v1038_v45  ;;  %v1036_v59 = vadd.f32 1.0, %v2028_v50  ;;  %v1127_v45 = vpop.f32.mrf.mxu3 }
 0x441   :  { %2029 = vtanh.f32 %v4568_v53  ;;  %v1037_v47 = vmul.f32 0.5, %v1036_v59  ;;  %v1133_v59 = vadd.f32 %v1924_v63, %v1127_v45  ;;  %v6247_v63 = vld [vmem:[#allocation79_spill] sm:$0xff]  ;;  %v6248_v45 = vld [vmem:[#allocation80_spill] sm:$0xff] }
 0x442   :  { %2031 = vtanh.f32 %v1217_v35 }
 0x443   :  { %2033 = vtanh.f32 %v1221_v36  ;;  %v1226_v54 = vmul.f32 0.5, %v1133_v59  ;;  %v2249_v59 = vld [vmem:[%s5442_s2 + $0x160] sm:$0xff] }
 0x444   :  { %2035 = vtanh.f32 %v1132_v39  ;;  %v6244_v39 = vld [vmem:[#allocation76_spill] sm:$0xff] }
 0x445   :  { %2037 = vtanh.f32 %v1226_v54  ;;  %v2253_v54 = vld [vmem:[%s5442_s2 + $0x140] sm:$0xff] }
 0x447   :  { %v2030_v43 = vpop.eup %2029 }
 0x448   :  { %v1042_v57 = vmul.f32 %v2030_v43, %v1037_v47  ;;  %v2032_v40 = vpop.eup %2031 }
 0x449   :  { %v2034_v42 = vpop.eup %2033  ;;  %v1219_v48 = vadd.f32 1.0, %v2032_v40  ;;  %v6245_v40 = vld [vmem:[#allocation77_spill] sm:$0xff] }
 0x44a   :  { %1134 = vrot.lane.b32.xlu2 %v1042_v57, %s2362_s21  ;;  %v1223_v50 = vadd.f32 1.0, %v2034_v42  ;;  %v2036_v57 = vpop.eup %2035  ;;  %v6246_v42 = vld [vmem:[#allocation78_spill] sm:$0xff] }
 0x44b   :  { %v1220_v47 = vmul.f32 0.5, %v1219_v48  ;;  %v2038_v44 = vpop.eup %2037  ;;  %v6249_v48 = vld [vmem:[#allocation81_spill] sm:$0xff] }
 0x44c   :  { %v1224_v43 = vmul.f32 0.5, %v1223_v50  ;;  %v1228_v36 = vadd.f32 1.0, %v2038_v44  ;;  %v2248_v50 = vld [vmem:[%s5442_s2 + $0x198] sm:$0xff] }
 0x44d   :  { %v1231_v60 = vmul.f32 %v2036_v57, %v1220_v47  ;;  %v2250_v47 = vld [vmem:[%s5442_s2 + $0x168] sm:$0xff]  ;;  %v2252_v57 = vld [vmem:[%s5442_s2 + $0x178] sm:$0xff] }
 0x44e   :  { %v1230_v55 = vmul.f32 %v1224_v43, %v4425_v4  ;;  %v1229_v37 = vmul.f32 0.5, %v1228_v36  ;;  %v2251_v43 = vld [vmem:[%s5442_s2 + $0x170] sm:$0xff]  ;;  %v2256_v44 = vld [vmem:[%s5442_s2 + $0x158] sm:$0xff] }
 0x44f   :  { %v2259_v36 = vld [vmem:[%s5442_s2 + $0x130] sm:$0xff] }
 0x450   :  { %v4585_v46 = vadd.f32 %v1231_v60, %v1230_v55  ;;  %v2254_v55 = vld [vmem:[%s5442_s2 + $0x148] sm:$0xff]  ;;  %v2255_v60 = vld [vmem:[%s5442_s2 + $0x150] sm:$0xff] }
 0x452   :  { %2039 = vtanh.f32 %v4585_v46 }
 0x458   :  { %v2040_v4 = vpop.eup %2039 }
 0x4a4   :  { %v1135_v34 = vpop.permute.xlu2 %1134 }
 0x4a5   :  { %v1136_v35 = vadd.f32 %v1135_v34, %v4437_v13  ;;  %v4597_v13 = vmul.f32 %v2040_v4, %v1229_v37  ;;  %v2257_v34 = vld [vmem:[%s5442_s2 + $0x120] sm:$0xff]  ;;  %v2260_v4 = vld [vmem:[%s5442_s2 + $0x138] sm:$0xff] }
 0x4a6   :  { %v2261_v37 = vld [vmem:[%s5442_s2 + $0x100] sm:$0xff] }
 0x4a7   :  { %1153 = vmatmul.f32.vlgmr.msrb.gmra.mxu0 %v1136_v35  ;;  %1173 = vmatmul.f32.vlgmr.msrb.gmra.mxu1 %v1136_v35 }
 0x4a8   :  { %1193 = vmatmul.f32.vlgmr.msrb.gmra.mxu2 %v1136_v35  ;;  %1213 = vmatmul.f32.vlgmr.msrb.gmra.mxu3 %v1136_v35  ;;  %v2258_v35 = vld [vmem:[%s5442_s2 + $0x128] sm:$0xff] }
 0x4a9   :  { %1347 = vmatpush.msrb.mxu0 %v3952_v21  ;;  %1367 = vmatpush.msrb.mxu1 %v3958_v16  ;;  %v6222_v21 = vld [vmem:[#allocation54_spill] sm:$0xff]  ;;  %v6223_v16 = vld [vmem:[#allocation55_spill] sm:$0xff] }
 0x4aa   :  { %1387 = vmatpush.msrb.mxu2 %v3964_v20  ;;  %1407 = vmatpush.msrb.mxu3 %v3970_v26  ;;  %v6224_v20 = vld [vmem:[#allocation56_spill] sm:$0xff]  ;;  %v6225_v26 = vld [vmem:[#allocation57_spill] sm:$0xff] }
 0x4ab   :  { %1348 = vmatpush.msrb.mxu0 %v3976_v27  ;;  %1368 = vmatpush.msrb.mxu1 %v3982_v18  ;;  %v6226_v27 = vld [vmem:[#allocation58_spill] sm:$0xff]  ;;  %v6227_v18 = vld [vmem:[#allocation59_spill] sm:$0xff] }
 0x4ac   :  { %1388 = vmatpush.msrb.mxu2 %v3988_v14  ;;  %1408 = vmatpush.msrb.mxu3 %v3994_v32  ;;  %v6228_v14 = vld [vmem:[#allocation60_spill] sm:$0xff]  ;;  %v6229_v32 = vld [vmem:[#allocation61_spill] sm:$0xff] }
 0x4ad   :  { %1349 = vmatpush.msrb.mxu0 %v4002_v23  ;;  %1369 = vmatpush.msrb.mxu1 %v4008_v61  ;;  %v6230_v23 = vld [vmem:[#allocation62_spill] sm:$0xff]  ;;  %v6231_v61 = vld [vmem:[#allocation63_spill] sm:$0xff] }
 0x4ae   :  { %1389 = vmatpush.msrb.mxu2 %v4014_v15  ;;  %1409 = vmatpush.msrb.mxu3 %v4020_v17  ;;  %v6232_v15 = vld [vmem:[#allocation64_spill] sm:$0xff]  ;;  %v6233_v17 = vld [vmem:[#allocation65_spill] sm:$0xff] }
 0x4af   :  { %1276 = vmatmul.f32.vlgmr.msra.gmra.mxu0 %v4597_v13  ;;  %1296 = vmatmul.f32.vlgmr.msra.gmra.mxu1 %v4597_v13 }
 0x4b0   :  { %1316 = vmatmul.f32.vlgmr.msra.gmra.mxu2 %v4597_v13  ;;  %1336 = vmatmul.f32.vlgmr.msra.gmra.mxu3 %v4597_v13 }
 0x4b1   :  { %1350 = vmatpush.msrb.mxu0 %v4030_v28  ;;  %1370 = vmatpush.msrb.mxu1 %v4036_v29  ;;  %v6234_v28 = vld [vmem:[#allocation66_spill] sm:$0xff]  ;;  %v6235_v29 = vld [vmem:[#allocation67_spill] sm:$0xff] }
 0x4b2   :  { %1390 = vmatpush.msrb.mxu2 %v6133_v24  ;;  %1410 = vmatpush.msrb.mxu3 %v6134_v52  ;;  %v6236_v24 = vld [vmem:[#allocation68_spill] sm:$0xff]  ;;  %v6237_v52 = vld [vmem:[#allocation69_spill] sm:$0xff] }
 0x4b3   :  { %1351 = vmatpush.msrb.mxu0 %v6135_v7  ;;  %1371 = vmatpush.msrb.mxu1 %v6136_v8  ;;  %v6238_v7 = vld [vmem:[#allocation70_spill] sm:$0xff]  ;;  %v6239_v8 = vld [vmem:[#allocation71_spill] sm:$0xff] }
 0x4b4   :  { %1391 = vmatpush.msrb.mxu2 %v6137_v9  ;;  %1411 = vmatpush.msrb.mxu3 %v6138_v10  ;;  %v6240_v9 = vld [vmem:[#allocation72_spill] sm:$0xff]  ;;  %v6241_v10 = vld [vmem:[#allocation73_spill] sm:$0xff] }
 0x4b5   :  { %1352 = vmatpush.msrb.mxu0 %v6139_v41  ;;  %1372 = vmatpush.msrb.mxu1 %v6222_v21  ;;  %v6242_v41 = vld [vmem:[#allocation74_spill] sm:$0xff]  ;;  %v2262_v21 = vld [vmem:[%s5442_s2 + $0x108] sm:$0xff] }
 0x4b6   :  { %1392 = vmatpush.msrb.mxu2 %v6223_v16  ;;  %1412 = vmatpush.msrb.mxu3 %v6224_v20  ;;  %v2263_v16 = vld [vmem:[%s5442_s2 + $0x110] sm:$0xff]  ;;  %v2264_v20 = vld [vmem:[%s5442_s2 + $0x118] sm:$0xff] }
 0x4b7   :  { %1353 = vmatpush.msrb.mxu0 %v6225_v26  ;;  %1373 = vmatpush.msrb.mxu1 %v6226_v27  ;;  %v2265_v26 = vld [vmem:[%s5442_s2 + $0xe0] sm:$0xff]  ;;  %v2266_v27 = vld [vmem:[%s5442_s2 + $0xe8] sm:$0xff] }
 0x4b8   :  { %1393 = vmatpush.msrb.mxu2 %v6227_v18  ;;  %1413 = vmatpush.msrb.mxu3 %v6228_v14  ;;  %v2267_v18 = vld [vmem:[%s5442_s2 + $0xf0] sm:$0xff]  ;;  %v2268_v14 = vld [vmem:[%s5442_s2 + $0xf8] sm:$0xff] }
 0x4b9   :  { %1354 = vmatpush.msrb.mxu0 %v6229_v32  ;;  %1374 = vmatpush.msrb.mxu1 %v6230_v23  ;;  %v2269_v32 = vld [vmem:[%s5442_s2 + $0xc0] sm:$0xff]  ;;  %v2270_v23 = vld [vmem:[%s5442_s2 + $0xc8] sm:$0xff] }
 0x4ba   :  { %1394 = vmatpush.msrb.mxu2 %v6231_v61  ;;  %1414 = vmatpush.msrb.mxu3 %v6232_v15  ;;  %v2271_v61 = vld [vmem:[%s5442_s2 + $0xd0] sm:$0xff]  ;;  %v2272_v15 = vld [vmem:[%s5442_s2 + $0xd8] sm:$0xff] }
 0x4bb   :  { %1355 = vmatpush.msrb.mxu0 %v6233_v17  ;;  %1375 = vmatpush.msrb.mxu1 %v6234_v28  ;;  %v2273_v17 = vld [vmem:[%s5442_s2 + $0xa0] sm:$0xff]  ;;  %v2274_v28 = vld [vmem:[%s5442_s2 + $0xa8] sm:$0xff] }
 0x4bc   :  { %1395 = vmatpush.msrb.mxu2 %v6235_v29  ;;  %1415 = vmatpush.msrb.mxu3 %v6236_v24  ;;  %v2275_v29 = vld [vmem:[%s5442_s2 + $0xb0] sm:$0xff]  ;;  %v2276_v24 = vld [vmem:[%s5442_s2 + $0xb8] sm:$0xff] }
 0x4bd   :  { %1356 = vmatpush.msrb.mxu0 %v6237_v52  ;;  %1376 = vmatpush.msrb.mxu1 %v6238_v7  ;;  %v2277_v52 = vld [vmem:[%s5442_s2 + $0x80] sm:$0xff]  ;;  %v2278_v7 = vld [vmem:[%s5442_s2 + $0x88] sm:$0xff] }
 0x4be   :  { %1396 = vmatpush.msrb.mxu2 %v6239_v8  ;;  %1416 = vmatpush.msrb.mxu3 %v6240_v9  ;;  %v2279_v8 = vld [vmem:[%s5442_s2 + $0x90] sm:$0xff]  ;;  %v2280_v9 = vld [vmem:[%s5442_s2 + $0x98] sm:$0xff] }
 0x4bf   :  { %1357 = vmatpush.msrb.mxu0 %v6241_v10  ;;  %1377 = vmatpush.msrb.mxu1 %v6242_v41  ;;  %v2281_v10 = vld [vmem:[%s5442_s2 + $0x60] sm:$0xff]  ;;  %v2282_v41 = vld [vmem:[%s5442_s2 + $0x68] sm:$0xff] }
 0x4c0   :  { %1397 = vmatpush.msrb.mxu2 %v6243_v38  ;;  %1417 = vmatpush.msrb.mxu3 %v6244_v39  ;;  %v2283_v38 = vld [vmem:[%s5442_s2 + $0x70] sm:$0xff]  ;;  %v2284_v39 = vld [vmem:[%s5442_s2 + $0x78] sm:$0xff] }
 0x4c1   :  { %1358 = vmatpush.msrb.mxu0 %v6245_v40  ;;  %1378 = vmatpush.msrb.mxu1 %v6246_v42  ;;  %v2285_v40 = vld [vmem:[%s5442_s2 + $0x40] sm:$0xff]  ;;  %v2286_v42 = vld [vmem:[%s5442_s2 + $0x48] sm:$0xff] }
 0x4c2   :  { %1398 = vmatpush.msrb.mxu2 %v6247_v63  ;;  %1418 = vmatpush.msrb.mxu3 %v6248_v45  ;;  %v2287_v63 = vld [vmem:[%s5442_s2 + $0x50] sm:$0xff]  ;;  %v2288_v45 = vld [vmem:[%s5442_s2 + $0x58] sm:$0xff] }
 0x4c3   :  { %1359 = vmatpush.msrb.mxu0 %v6249_v48  ;;  %1379 = vmatpush.msrb.mxu1 %v6168_v3  ;;  %v2243_v3 = vld [vmem:[%s5442_s2 + $0x1b0] sm:$0xff]  ;;  %v2289_v48 = vld [vmem:[%s5442_s2 + $0x20] sm:$0xff] }
 0x4c4   :  { %1399 = vmatpush.msrb.mxu2 %v6169_v5  ;;  %1419 = vmatpush.msrb.mxu3 %v6170_v62  ;;  %v2244_v5 = vld [vmem:[%s5442_s2 + $0x1b8] sm:$0xff]  ;;  %v2245_v62 = vld [vmem:[%s5442_s2 + $0x180] sm:$0xff] }
 0x4c5   :  { %1360 = vmatpush.msrb.mxu0 %v6171_v49  ;;  %1380 = vmatpush.msrb.mxu1 %v6172_v6  ;;  %v2246_v49 = vld [vmem:[%s5442_s2 + $0x188] sm:$0xff]  ;;  %v2247_v6 = vld [vmem:[%s5442_s2 + $0x190] sm:$0xff] }
 0x4c6   :  { %1400 = vmatpush.msrb.mxu2 %v6173_v51  ;;  %1420 = vmatpush.msrb.mxu3 %v6174_v56  ;;  %v2233_v51 = vld [vmem:[%s5442_s2 + $0x1e0] sm:$0xff]  ;;  %v2234_v56 = vld [vmem:[%s5442_s2 + $0x1e8] sm:$0xff] }
 0x4c7   :  { %1361 = vmatpush.msrb.mxu0 %v6175_v1  ;;  %1381 = vmatpush.msrb.mxu1 %v6176_v11  ;;  %v2239_v1 = vld [vmem:[%s5442_s2 + $0x1d0] sm:$0xff]  ;;  %v2240_v11 = vld [vmem:[%s5442_s2 + $0x1d8] sm:$0xff] }
 0x4c8   :  { %1401 = vmatpush.msrb.mxu2 %v6177_v12  ;;  %1421 = vmatpush.msrb.mxu3 %v6178_v2  ;;  %v2241_v12 = vld [vmem:[%s5442_s2 + $0x1a0] sm:$0xff]  ;;  %v2242_v2 = vld [vmem:[%s5442_s2 + $0x1a8] sm:$0xff] }
 0x4c9   :  { %1362 = vmatpush.msrb.mxu0 %v4318_v33  ;;  %1382 = vmatpush.msrb.mxu1 %v4324_v19  ;;  %v2235_v33 = vld [vmem:[%s5442_s2 + $0x1f0] sm:$0xff]  ;;  %v2238_v19 = vld [vmem:[%s5442_s2 + $0x1c8] sm:$0xff] }
 0x4ca   :  { %1402 = vmatpush.msrb.mxu2 %v4330_v25  ;;  %1422 = vmatpush.msrb.mxu3 %v4336_v22  ;;  %v2236_v25 = vld [vmem:[%s5442_s2 + $0x1f8] sm:$0xff]  ;;  %v2237_v22 = vld [vmem:[%s5442_s2 + $0x1c0] sm:$0xff] }
 0x4cb   :  { %1470 = vmatpush.msra.mxu0 %v2233_v51  ;;  %1490 = vmatpush.msra.mxu1 %v2234_v56  ;;  %v2290_v51 = vld [vmem:[%s5442_s2 + $0x28] sm:$0xff]  ;;  %v2291_v56 = vld [vmem:[%s5442_s2 + $0x30] sm:$0xff] }
 0x4cc   :  { %1510 = vmatpush.msra.mxu2 %v2235_v33  ;;  %1530 = vmatpush.msra.mxu3 %v2236_v25  ;;  %v2292_v33 = vld [vmem:[%s5442_s2 + $0x38] sm:$0xff]  ;;  %v2293_v25 = vld [vmem:[%s5442_s2] sm:$0xff] }
 0x4cd   :  { %1471 = vmatpush.msra.mxu0 %v2237_v22  ;;  %1491 = vmatpush.msra.mxu1 %v2238_v19  ;;  %v2294_v22 = vld [vmem:[%s5442_s2 + $0x8] sm:$0xff]  ;;  %v2295_v19 = vld [vmem:[%s5442_s2 + $0x10] sm:$0xff] }
 0x4ce   :  { %1511 = vmatpush.msra.mxu2 %v2239_v1  ;;  %1531 = vmatpush.msra.mxu3 %v2240_v11  ;;  %v2296_v1 = vld [vmem:[%s5442_s2 + $0x18] sm:$0xff] }
 0x4cf   :  { %1472 = vmatpush.msra.mxu0 %v2241_v12  ;;  %1492 = vmatpush.msra.mxu1 %v2242_v2 }
 0x4d0   :  { %1512 = vmatpush.msra.mxu2 %v2243_v3  ;;  %1532 = vmatpush.msra.mxu3 %v2244_v5 }
 0x4d1   :  { %1473 = vmatpush.msra.mxu0 %v2245_v62  ;;  %1493 = vmatpush.msra.mxu1 %v2246_v49 }
 0x4d2   :  { %1513 = vmatpush.msra.mxu2 %v2247_v6  ;;  %1533 = vmatpush.msra.mxu3 %v2248_v50 }
 0x4d3   :  { %1474 = vmatpush.msra.mxu0 %v2249_v59  ;;  %1494 = vmatpush.msra.mxu1 %v2250_v47 }
 0x4d4   :  { %1514 = vmatpush.msra.mxu2 %v2251_v43  ;;  %1534 = vmatpush.msra.mxu3 %v2252_v57 }
 0x4d5   :  { %1475 = vmatpush.msra.mxu0 %v2253_v54  ;;  %1495 = vmatpush.msra.mxu1 %v2254_v55 }
 0x4d6   :  { %1515 = vmatpush.msra.mxu2 %v2255_v60  ;;  %1535 = vmatpush.msra.mxu3 %v2256_v44 }
 0x4d7   :  { %1476 = vmatpush.msra.mxu0 %v2257_v34  ;;  %1496 = vmatpush.msra.mxu1 %v2258_v35 }
 0x4d8   :  { %1516 = vmatpush.msra.mxu2 %v2259_v36  ;;  %1536 = vmatpush.msra.mxu3 %v2260_v4 }
 0x4d9   :  { %1477 = vmatpush.msra.mxu0 %v2261_v37  ;;  %1497 = vmatpush.msra.mxu1 %v2262_v21 }
 0x4da   :  { %1517 = vmatpush.msra.mxu2 %v2263_v16  ;;  %1537 = vmatpush.msra.mxu3 %v2264_v20 }
 0x4db   :  { %1478 = vmatpush.msra.mxu0 %v2265_v26  ;;  %1498 = vmatpush.msra.mxu1 %v2266_v27  ;;  %v1925_v27 = vld [vmem:[%s5443_s0 + $0xc0] sm:$0xff] }
 0x4dc   :  { %1518 = vmatpush.msra.mxu2 %v2267_v18  ;;  %1538 = vmatpush.msra.mxu3 %v2268_v14 }
 0x4dd   :  { %1479 = vmatpush.msra.mxu0 %v2269_v32  ;;  %1499 = vmatpush.msra.mxu1 %v2270_v23 }
 0x4de   :  { %1519 = vmatpush.msra.mxu2 %v2271_v61  ;;  %1539 = vmatpush.msra.mxu3 %v2272_v15 }
 0x4df   :  { %1480 = vmatpush.msra.mxu0 %v2273_v17  ;;  %1500 = vmatpush.msra.mxu1 %v2274_v28  ;;  %v1927_v17 = vld [vmem:[%s5443_s0 + $0xd0] sm:$0xff] }
 0x4e0   :  { %1520 = vmatpush.msra.mxu2 %v2275_v29  ;;  %1540 = vmatpush.msra.mxu3 %v2276_v24 }
 0x4e1   :  { %1481 = vmatpush.msra.mxu0 %v2277_v52  ;;  %1501 = vmatpush.msra.mxu1 %v2278_v7  ;;  %v1928_v7 = vld [vmem:[%s5443_s0 + $0xd8] sm:$0xff] }
 0x4e2   :  { %1521 = vmatpush.msra.mxu2 %v2279_v8  ;;  %1541 = vmatpush.msra.mxu3 %v2280_v9 }
 0x4e3   :  { %1482 = vmatpush.msra.mxu0 %v2281_v10  ;;  %1502 = vmatpush.msra.mxu1 %v2282_v41 }
 0x4e4   :  { %1522 = vmatpush.msra.mxu2 %v2283_v38  ;;  %1542 = vmatpush.msra.mxu3 %v2284_v39 }
 0x4e5   :  { %1483 = vmatpush.msra.mxu0 %v2285_v40  ;;  %1503 = vmatpush.msra.mxu1 %v2286_v42 }
 0x4e6   :  { %1523 = vmatpush.msra.mxu2 %v2287_v63  ;;  %1543 = vmatpush.msra.mxu3 %v2288_v45 }
 0x4e7   :  { %1484 = vmatpush.msra.mxu0 %v2289_v48  ;;  %1504 = vmatpush.msra.mxu1 %v2290_v51 }
 0x4e8   :  { %1524 = vmatpush.msra.mxu2 %v2291_v56  ;;  %1544 = vmatpush.msra.mxu3 %v2292_v33 }
 0x4e9   :  { %1485 = vmatpush.msra.mxu0 %v2293_v25  ;;  %1505 = vmatpush.msra.mxu1 %v2294_v22  ;;  %v4880_v22 = vld [vmem:[%s5444_s3 + $0x1e0] sm:$0xff] }
 0x4ea   :  { %1525 = vmatpush.msra.mxu2 %v2295_v19  ;;  %1545 = vmatpush.msra.mxu3 %v2296_v1  ;;  %v4892_v19 = vld [vmem:[%s5444_s3 + $0x1f0] sm:$0xff]  ;;  %v4898_v1 = vld [vmem:[%s5444_s3 + $0x1f8] sm:$0xff] }
 0x524   :  { %v1154_v11 = vpop.f32.mrf.mxu0  ;;  %v1174_v12 = vpop.f32.mrf.mxu1 }
 0x525   :  { %v1155_v2 = vadd.f32 %v1154_v11, %v6218_v58  ;;  %v1175_v3 = vadd.f32 %v1174_v12, %v6219_v0  ;;  %v4904_v12 = vld [vmem:[%s5444_s3 + $0x1c0] sm:$0xff]  ;;  %v5258_v0 = vld [vmem:[%s5444_s3 + $0x10] sm:$0xff]  ;;  %v5264_v58 = vld [vmem:[%s5444_s3 + $0x18] sm:$0xff] }
 0x527   :  { %v1235_v5 = vmul.f32 0.5, %v1155_v2  ;;  %v1239_v62 = vmul.f32 0.5, %v1175_v3  ;;  %v4910_v2 = vld [vmem:[%s5444_s3 + $0x1c8] sm:$0xff]  ;;  %v4916_v3 = vld [vmem:[%s5444_s3 + $0x1d0] sm:$0xff] }
 0x529   :  { %2041 = vtanh.f32 %v1235_v5  ;;  %v4922_v5 = vld [vmem:[%s5444_s3 + $0x1d8] sm:$0xff] }
 0x52a   :  { %2043 = vtanh.f32 %v1239_v62 }
 0x52b   :  { %v1194_v49 = vpop.f32.mrf.mxu2  ;;  %v1214_v6 = vpop.f32.mrf.mxu3 }
 0x52c   :  { %v1195_v50 = vadd.f32 %v1194_v49, %v3442_v31  ;;  %v1215_v59 = vadd.f32 %v1214_v6, %v6220_v30  ;;  %v1277_v18 = vpop.f32.mrf.mxu0  ;;  %v1297_v14 = vpop.f32.mrf.mxu1  ;;  %v4930_v49 = vld [vmem:[%s5444_s3 + $0x1a0] sm:$0xff]  ;;  %v4936_v6 = vld [vmem:[%s5444_s3 + $0x1a8] sm:$0xff] }
 0x52d   :  { %v1340_v32 = vadd.f32 %v1925_v27, %v1277_v18  ;;  %v5048_v27 = vld [vmem:[%s5444_s3 + $0x138] sm:$0xff]  ;;  %v5054_v18 = vld [vmem:[%s5444_s3 + $0x100] sm:$0xff]  ;;  %v5252_v31 = vld [vmem:[%s5444_s3 + $0x8] sm:$0xff] }
 0x52e   :  { %2045 = vtanh.f32 %v1195_v50  ;;  %v1244_v47 = vmul.f32 0.5, %v1215_v59  ;;  %v4942_v50 = vld [vmem:[%s5444_s3 + $0x1b0] sm:$0xff]  ;;  %v4948_v59 = vld [vmem:[%s5444_s3 + $0x1b8] sm:$0xff]  ;;  %v5246_v30 = vld [vmem:[%s5444_s3] sm:$0xff] }
 0x52f   :  { %v2042_v43 = vpop.eup %2041  ;;  %v1427_v61 = vmul.f32 0.5, %v1340_v32  ;;  %v5072_v32 = vld [vmem:[%s5444_s3 + $0x118] sm:$0xff] }
 0x530   :  { %v2044_v57 = vpop.eup %2043  ;;  %v1237_v54 = vadd.f32 1.0, %v2042_v43  ;;  %2047 = vtanh.f32 %v1244_v47  ;;  %v4958_v47 = vld [vmem:[%s5444_s3 + $0x180] sm:$0xff]  ;;  %v4964_v43 = vld [vmem:[%s5444_s3 + $0x188] sm:$0xff] }
 0x531   :  { %v1241_v55 = vadd.f32 1.0, %v2044_v57  ;;  %v4970_v57 = vld [vmem:[%s5444_s3 + $0x190] sm:$0xff] }
 0x532   :  { %v1238_v60 = vmul.f32 0.5, %v1237_v54  ;;  %v4976_v54 = vld [vmem:[%s5444_s3 + $0x198] sm:$0xff] }
 0x533   :  { %v1242_v44 = vmul.f32 0.5, %v1241_v55  ;;  %v1317_v28 = vpop.f32.mrf.mxu2  ;;  %v1337_v8 = vpop.f32.mrf.mxu3  ;;  %v4982_v55 = vld [vmem:[%s5444_s3 + $0x160] sm:$0xff] }
 0x534   :  { %v2046_v34 = vpop.eup %2045  ;;  %v1342_v29 = vadd.f32 %v1927_v17, %v1317_v28  ;;  %v1343_v41 = vadd.f32 %v1928_v7, %v1337_v8  ;;  %v5096_v17 = vld [vmem:[%s5444_s3 + $0xf8] sm:$0xff]  ;;  %v5102_v28 = vld [vmem:[%s5444_s3 + $0xc0] sm:$0xff]  ;;  %v5132_v8 = vld [vmem:[%s5444_s3 + $0xa8] sm:$0xff] }
 0x535   :  { %v1248_v35 = vmul.f32 %v1242_v44, %v4568_v53  ;;  %v1249_v36 = vmul.f32 %v2046_v34, %v1238_v60  ;;  %v1926_v53 = vld [vmem:[%s5443_s0 + $0xc8] sm:$0xff]  ;;  %v4994_v44 = vld [vmem:[%s5444_s3 + $0x170] sm:$0xff]  ;;  %v5000_v34 = vld [vmem:[%s5444_s3 + $0x178] sm:$0xff] }
 0x536   :  { %v2048_v4 = vpop.eup %2047  ;;  %v1341_v23 = vadd.f32 %v1926_v53, %v1297_v14  ;;  %v1436_v42 = vmul.f32 0.5, %v1343_v41  ;;  %v4988_v60 = vld [vmem:[%s5444_s3 + $0x168] sm:$0xff]  ;;  %v5066_v14 = vld [vmem:[%s5444_s3 + $0x110] sm:$0xff]  ;;  %v5126_v7 = vld [vmem:[%s5444_s3 + $0xa0] sm:$0xff] }
 0x537   :  { %v4856_v37 = vadd.f32 %v1249_v36, %v1248_v35  ;;  %v1246_v21 = vadd.f32 1.0, %v2048_v4  ;;  %v5006_v35 = vld [vmem:[%s5444_s3 + $0x140] sm:$0xff]  ;;  %v5012_v36 = vld [vmem:[%s5444_s3 + $0x148] sm:$0xff]  ;;  %v5018_v4 = vld [vmem:[%s5444_s3 + $0x150] sm:$0xff] }
 0x538   :  { %v1431_v15 = vmul.f32 0.5, %v1341_v23  ;;  %v5060_v53 = vld [vmem:[%s5444_s3 + $0x108] sm:$0xff]  ;;  %v5078_v23 = vld [vmem:[%s5444_s3 + $0xe0] sm:$0xff] }
 0x539   :  { %6250 = vst [vmem:[#allocation47_spill] sm:$0xff] %v4856_v37  ;;  %2049 = vtanh.f32 %v4856_v37  ;;  %v1247_v16 = vmul.f32 0.5, %v1246_v21  ;;  %v5024_v21 = vld [vmem:[%s5444_s3 + $0x158] sm:$0xff]  ;;  %v5150_v41 = vld [vmem:[%s5444_s3 + $0x80] sm:$0xff] }
 0x53a   :  { %2051 = vtanh.f32 %v1427_v61  ;;  %v5084_v61 = vld [vmem:[%s5444_s3 + $0xe8] sm:$0xff]  ;;  %v5240_v37 = vld [vmem:[%s5444_s3 + $0x38] sm:$0xff] }
 0x53b   :  { %2053 = vtanh.f32 %v1431_v15  ;;  %v5090_v15 = vld [vmem:[%s5444_s3 + $0xf0] sm:$0xff] }
 0x53c   :  { %2055 = vtanh.f32 %v1342_v29  ;;  %v5108_v29 = vld [vmem:[%s5444_s3 + $0xc8] sm:$0xff] }
 0x53d   :  { %2057 = vtanh.f32 %v1436_v42  ;;  %v5174_v42 = vld [vmem:[%s5444_s3 + $0x60] sm:$0xff] }
 0x53f   :  { %v2050_v20 = vpop.eup %2049 }
 0x540   :  { %v1252_v26 = vmul.f32 %v2050_v20, %v1247_v16  ;;  %v2052_v24 = vpop.eup %2051  ;;  %v5030_v16 = vld [vmem:[%s5444_s3 + $0x120] sm:$0xff]  ;;  %v5036_v20 = vld [vmem:[%s5444_s3 + $0x128] sm:$0xff] }
 0x541   :  { %v2054_v52 = vpop.eup %2053  ;;  %v1429_v9 = vadd.f32 1.0, %v2052_v24  ;;  %v5114_v24 = vld [vmem:[%s5444_s3 + $0xd0] sm:$0xff] }
 0x542   :  { %1344 = vrot.lane.b32.xlu2 %v1252_v26, %s2362_s21  ;;  %v1433_v10 = vadd.f32 1.0, %v2054_v52  ;;  %v2056_v40 = vpop.eup %2055  ;;  %v5042_v26 = vld [vmem:[%s5444_s3 + $0x130] sm:$0xff]  ;;  %v5120_v52 = vld [vmem:[%s5444_s3 + $0xd8] sm:$0xff] }
 0x543   :  { %v1430_v38 = vmul.f32 0.5, %v1429_v9  ;;  %v2058_v51 = vpop.eup %2057  ;;  %v5138_v9 = vld [vmem:[%s5444_s3 + $0xb0] sm:$0xff] }
 0x544   :  { %v1434_v39 = vmul.f32 0.5, %v1433_v10  ;;  %v1438_v25 = vadd.f32 1.0, %v2058_v51  ;;  %v5144_v10 = vld [vmem:[%s5444_s3 + $0xb8] sm:$0xff] }
 0x545   :  { %v1441_v45 = vmul.f32 %v2056_v40, %v1430_v38  ;;  %v5156_v38 = vld [vmem:[%s5444_s3 + $0x88] sm:$0xff]  ;;  %v5168_v40 = vld [vmem:[%s5444_s3 + $0x98] sm:$0xff] }
 0x546   :  { %v1440_v63 = vmul.f32 %v1434_v39, %v4585_v46  ;;  %v4886_v46 = vld [vmem:[%s5444_s3 + $0x1e8] sm:$0xff]  ;;  %v1439_v11 = vmul.f32 0.5, %v1438_v25  ;;  %v5162_v39 = vld [vmem:[%s5444_s3 + $0x90] sm:$0xff]  ;;  %v5192_v51 = vld [vmem:[%s5444_s3 + $0x78] sm:$0xff] }
 0x547   :  { %v5210_v25 = vld [vmem:[%s5444_s3 + $0x50] sm:$0xff] }
 0x548   :  { %v4873_v48 = vadd.f32 %v1441_v45, %v1440_v63  ;;  %v5180_v63 = vld [vmem:[%s5444_s3 + $0x68] sm:$0xff]  ;;  %v5186_v45 = vld [vmem:[%s5444_s3 + $0x70] sm:$0xff] }
 0x54a   :  { %6251 = vst [vmem:[#allocation48_spill] sm:$0xff] %v4873_v48  ;;  %2059 = vtanh.f32 %v4873_v48  ;;  %v5228_v48 = vld [vmem:[%s5444_s3 + $0x28] sm:$0xff] }
 0x59c   :  { %v1345_v56 = vpop.permute.xlu2 %1344 }
 0x59d   :  { %v1346_v33 = vadd.f32 %v1345_v56, %v4597_v13  ;;  %v2060_v13 = vpop.eup %2059  ;;  %v5198_v56 = vld [vmem:[%s5444_s3 + $0x40] sm:$0xff] }
 0x59e   :  { %v4925_v62 = vmul.f32 %v2060_v13, %v1439_v11  ;;  %v5216_v13 = vld [vmem:[%s5444_s3 + $0x58] sm:$0xff]  ;;  %v5222_v11 = vld [vmem:[%s5444_s3 + $0x20] sm:$0xff] }
 0x59f   :  { %1363 = vmatmul.f32.vlgmr.msrb.gmra.mxu0 %v1346_v33  ;;  %1383 = vmatmul.f32.vlgmr.msrb.gmra.mxu1 %v1346_v33 }
 0x5a0   :  { %1403 = vmatmul.f32.vlgmr.msrb.gmra.mxu2 %v1346_v33  ;;  %1423 = vmatmul.f32.vlgmr.msrb.gmra.mxu3 %v1346_v33  ;;  %6252 = vst [vmem:[#allocation49_spill] sm:$0xff] %v4925_v62  ;;  %v5204_v33 = vld [vmem:[%s5444_s3 + $0x48] sm:$0xff] }
 0x5a1   :  { %1557 = vmatpush.msrb.mxu0 %v4880_v22  ;;  %1577 = vmatpush.msrb.mxu1 %v4886_v46 }
 0x5a2   :  { %1597 = vmatpush.msrb.mxu2 %v4892_v19  ;;  %1617 = vmatpush.msrb.mxu3 %v4898_v1 }
 0x5a3   :  { %1558 = vmatpush.msrb.mxu0 %v4904_v12  ;;  %1578 = vmatpush.msrb.mxu1 %v4910_v2 }
 0x5a4   :  { %1598 = vmatpush.msrb.mxu2 %v4916_v3  ;;  %1618 = vmatpush.msrb.mxu3 %v4922_v5 }
 0x5a5   :  { %1559 = vmatpush.msrb.mxu0 %v4930_v49  ;;  %1579 = vmatpush.msrb.mxu1 %v4936_v6 }
 0x5a6   :  { %1599 = vmatpush.msrb.mxu2 %v4942_v50  ;;  %1619 = vmatpush.msrb.mxu3 %v4948_v59 }
 0x5a7   :  { %1486 = vmatmul.f32.vlgmr.msra.gmra.mxu0 %v4925_v62  ;;  %1506 = vmatmul.f32.vlgmr.msra.gmra.mxu1 %v4925_v62 }
 0x5a8   :  { %1526 = vmatmul.f32.vlgmr.msra.gmra.mxu2 %v4925_v62  ;;  %1546 = vmatmul.f32.vlgmr.msra.gmra.mxu3 %v4925_v62  ;;  %v5234_v62 = vld [vmem:[%s5444_s3 + $0x30] sm:$0xff] }
 0x5a9   :  { %1560 = vmatpush.msrb.mxu0 %v4958_v47  ;;  %1580 = vmatpush.msrb.mxu1 %v4964_v43 }
 0x5aa   :  { %1600 = vmatpush.msrb.mxu2 %v4970_v57  ;;  %1620 = vmatpush.msrb.mxu3 %v4976_v54 }
 0x5ab   :  { %1561 = vmatpush.msrb.mxu0 %v4982_v55  ;;  %1581 = vmatpush.msrb.mxu1 %v4988_v60 }
 0x5ac   :  { %1601 = vmatpush.msrb.mxu2 %v4994_v44  ;;  %1621 = vmatpush.msrb.mxu3 %v5000_v34 }
 0x5ad   :  { %1562 = vmatpush.msrb.mxu0 %v5006_v35  ;;  %1582 = vmatpush.msrb.mxu1 %v5012_v36 }
 0x5ae   :  { %1602 = vmatpush.msrb.mxu2 %v5018_v4  ;;  %1622 = vmatpush.msrb.mxu3 %v5024_v21 }
 0x5af   :  { %1563 = vmatpush.msrb.mxu0 %v5030_v16  ;;  %1583 = vmatpush.msrb.mxu1 %v5036_v20 }
 0x5b0   :  { %1603 = vmatpush.msrb.mxu2 %v5042_v26  ;;  %1623 = vmatpush.msrb.mxu3 %v5048_v27 }
 0x5b1   :  { %1564 = vmatpush.msrb.mxu0 %v5054_v18  ;;  %1584 = vmatpush.msrb.mxu1 %v5060_v53 }
 0x5b2   :  { %1604 = vmatpush.msrb.mxu2 %v5066_v14  ;;  %1624 = vmatpush.msrb.mxu3 %v5072_v32 }
 0x5b3   :  { %1565 = vmatpush.msrb.mxu0 %v5078_v23  ;;  %1585 = vmatpush.msrb.mxu1 %v5084_v61 }
 0x5b4   :  { %1605 = vmatpush.msrb.mxu2 %v5090_v15  ;;  %1625 = vmatpush.msrb.mxu3 %v5096_v17 }
 0x5b5   :  { %1566 = vmatpush.msrb.mxu0 %v5102_v28  ;;  %1586 = vmatpush.msrb.mxu1 %v5108_v29 }
 0x5b6   :  { %1606 = vmatpush.msrb.mxu2 %v5114_v24  ;;  %1626 = vmatpush.msrb.mxu3 %v5120_v52 }
 0x5b7   :  { %1567 = vmatpush.msrb.mxu0 %v5126_v7  ;;  %1587 = vmatpush.msrb.mxu1 %v5132_v8 }
 0x5b8   :  { %1607 = vmatpush.msrb.mxu2 %v5138_v9  ;;  %1627 = vmatpush.msrb.mxu3 %v5144_v10 }
 0x5b9   :  { %1568 = vmatpush.msrb.mxu0 %v5150_v41  ;;  %1588 = vmatpush.msrb.mxu1 %v5156_v38 }
 0x5ba   :  { %1608 = vmatpush.msrb.mxu2 %v5162_v39  ;;  %1628 = vmatpush.msrb.mxu3 %v5168_v40 }
 0x5bb   :  { %1569 = vmatpush.msrb.mxu0 %v5174_v42  ;;  %1589 = vmatpush.msrb.mxu1 %v5180_v63 }
 0x5bc   :  { %1609 = vmatpush.msrb.mxu2 %v5186_v45  ;;  %1629 = vmatpush.msrb.mxu3 %v5192_v51 }
 0x5bd   :  { %1570 = vmatpush.msrb.mxu0 %v5198_v56  ;;  %1590 = vmatpush.msrb.mxu1 %v5204_v33 }
 0x5be   :  { %1610 = vmatpush.msrb.mxu2 %v5210_v25  ;;  %1630 = vmatpush.msrb.mxu3 %v5216_v13 }
 0x5bf   :  { %1571 = vmatpush.msrb.mxu0 %v5222_v11  ;;  %1591 = vmatpush.msrb.mxu1 %v5228_v48 }
 0x5c0   :  { %1611 = vmatpush.msrb.mxu2 %v5234_v62  ;;  %1631 = vmatpush.msrb.mxu3 %v5240_v37 }
 0x5c1   :  { %1572 = vmatpush.msrb.mxu0 %v5246_v30  ;;  %1592 = vmatpush.msrb.mxu1 %v5252_v31 }
 0x5c2   :  { %1612 = vmatpush.msrb.mxu2 %v5258_v0  ;;  %1632 = vmatpush.msrb.mxu3 %v5264_v58 }
 0x5c3   :  { %1676 = vmatpush.msra.mxu0 %v4880_v22  ;;  %1696 = vmatpush.msra.mxu1 %v4886_v46 }
 0x5c4   :  { %1716 = vmatpush.msra.mxu2 %v4892_v19  ;;  %1736 = vmatpush.msra.mxu3 %v4898_v1  ;;  %v6253_v19 = vld [vmem:[#allocation16_spill] sm:$0xff] }
 0x5c5   :  { %1677 = vmatpush.msra.mxu0 %v4904_v12  ;;  %1697 = vmatpush.msra.mxu1 %v4910_v2  ;;  %v6254_v12 = vld [vmem:[#allocation23_spill] sm:$0xff] }
 0x5c6   :  { %1717 = vmatpush.msra.mxu2 %v4916_v3  ;;  %1737 = vmatpush.msra.mxu3 %v4922_v5 }
 0x5c7   :  { %1678 = vmatpush.msra.mxu0 %v4930_v49  ;;  %1698 = vmatpush.msra.mxu1 %v4936_v6  ;;  %v6256_v49 = vld [vmem:[#allocation37_spill] sm:$0xff] }
 0x5c8   :  { %1718 = vmatpush.msra.mxu2 %v4942_v50  ;;  %1738 = vmatpush.msra.mxu3 %v4948_v59 }
 0x5c9   :  { %1679 = vmatpush.msra.mxu0 %v4958_v47  ;;  %1699 = vmatpush.msra.mxu1 %v4964_v43 }
 0x5ca   :  { %1719 = vmatpush.msra.mxu2 %v4970_v57  ;;  %1739 = vmatpush.msra.mxu3 %v4976_v54  ;;  %v6257_v54 = vld [vmem:[#allocation47_spill] sm:$0xff] }
 0x5cb   :  { %1680 = vmatpush.msra.mxu0 %v4982_v55  ;;  %1700 = vmatpush.msra.mxu1 %v4988_v60 }
 0x5cc   :  { %1720 = vmatpush.msra.mxu2 %v4994_v44  ;;  %1740 = vmatpush.msra.mxu3 %v5000_v34 }
 0x5cd   :  { %1681 = vmatpush.msra.mxu0 %v5006_v35  ;;  %1701 = vmatpush.msra.mxu1 %v5012_v36 }
 0x5ce   :  { %1721 = vmatpush.msra.mxu2 %v5018_v4  ;;  %1741 = vmatpush.msra.mxu3 %v5024_v21 }
 0x5cf   :  { %1682 = vmatpush.msra.mxu0 %v5030_v16  ;;  %1702 = vmatpush.msra.mxu1 %v5036_v20  ;;  %v6258_v20 = vld [vmem:[#allocation49_spill] sm:$0xff] }
 0x5d0   :  { %1722 = vmatpush.msra.mxu2 %v5042_v26  ;;  %1742 = vmatpush.msra.mxu3 %v5048_v27 }
 0x5d1   :  { %1683 = vmatpush.msra.mxu0 %v5054_v18  ;;  %1703 = vmatpush.msra.mxu1 %v5060_v53 }
 0x5d2   :  { %1723 = vmatpush.msra.mxu2 %v5066_v14  ;;  %1743 = vmatpush.msra.mxu3 %v5072_v32 }
 0x5d3   :  { %1684 = vmatpush.msra.mxu0 %v5078_v23  ;;  %1704 = vmatpush.msra.mxu1 %v5084_v61 }
 0x5d4   :  { %1724 = vmatpush.msra.mxu2 %v5090_v15  ;;  %1744 = vmatpush.msra.mxu3 %v5096_v17 }
 0x5d5   :  { %1685 = vmatpush.msra.mxu0 %v5102_v28  ;;  %1705 = vmatpush.msra.mxu1 %v5108_v29 }
 0x5d6   :  { %1725 = vmatpush.msra.mxu2 %v5114_v24  ;;  %1745 = vmatpush.msra.mxu3 %v5120_v52 }
 0x5d7   :  { %1686 = vmatpush.msra.mxu0 %v5126_v7  ;;  %1706 = vmatpush.msra.mxu1 %v5132_v8 }
 0x5d8   :  { %1726 = vmatpush.msra.mxu2 %v5138_v9  ;;  %1746 = vmatpush.msra.mxu3 %v5144_v10 }
 0x5d9   :  { %1687 = vmatpush.msra.mxu0 %v5150_v41  ;;  %1707 = vmatpush.msra.mxu1 %v5156_v38 }
 0x5da   :  { %1727 = vmatpush.msra.mxu2 %v5162_v39  ;;  %1747 = vmatpush.msra.mxu3 %v5168_v40 }
 0x5db   :  { %1688 = vmatpush.msra.mxu0 %v5174_v42  ;;  %1708 = vmatpush.msra.mxu1 %v5180_v63 }
 0x5dc   :  { %1728 = vmatpush.msra.mxu2 %v5186_v45  ;;  %1748 = vmatpush.msra.mxu3 %v5192_v51 }
 0x5dd   :  { %1689 = vmatpush.msra.mxu0 %v5198_v56  ;;  %1709 = vmatpush.msra.mxu1 %v5204_v33 }
 0x5de   :  { %1729 = vmatpush.msra.mxu2 %v5210_v25  ;;  %1749 = vmatpush.msra.mxu3 %v5216_v13 }
 0x5df   :  { %1690 = vmatpush.msra.mxu0 %v5222_v11  ;;  %1710 = vmatpush.msra.mxu1 %v5228_v48 }
 0x5e0   :  { %1730 = vmatpush.msra.mxu2 %v5234_v62  ;;  %1750 = vmatpush.msra.mxu3 %v5240_v37  ;;  %v6255_v62 = vld [vmem:[#allocation25_spill] sm:$0xff] }
 0x5e1   :  { %1691 = vmatpush.msra.mxu0 %v5246_v30  ;;  %1711 = vmatpush.msra.mxu1 %v5252_v31 }
 0x5e2   :  { %1731 = vmatpush.msra.mxu2 %v5258_v0  ;;  %1751 = vmatpush.msra.mxu3 %v5264_v58 }
 0x61c   :  { %v1364_v22 = vpop.f32.mrf.mxu0  ;;  %v1384_v46 = vpop.f32.mrf.mxu1 }
 0x61d   :  { %v1365_v1 = vadd.f32 %v1364_v22, %v6253_v19  ;;  %v1385_v2 = vadd.f32 %v1384_v46, %v6254_v12  ;;  %v1929_v22 = vld [vmem:[%s5443_s0 + $0xe0] sm:$0xff]  ;;  %v1930_v46 = vld [vmem:[%s5443_s0 + $0xe8] sm:$0xff] }
 0x61f   :  { %v1445_v3 = vmul.f32 0.5, %v1365_v1  ;;  %v1449_v48 = vmul.f32 0.5, %v1385_v2 }
 0x621   :  { %2061 = vtanh.f32 %v1445_v3 }
 0x622   :  { %2063 = vtanh.f32 %v1449_v48 }
 0x623   :  { %v1404_v5 = vpop.f32.mrf.mxu2  ;;  %v1424_v37 = vpop.f32.mrf.mxu3 }
 0x624   :  { %v1405_v30 = vadd.f32 %v1404_v5, %v6255_v62  ;;  %v1425_v31 = vadd.f32 %v1424_v37, %v6256_v49  ;;  %v1487_v27 = vpop.f32.mrf.mxu0  ;;  %v1507_v18 = vpop.f32.mrf.mxu1  ;;  %v1931_v5 = vld [vmem:[%s5443_s0 + $0xf0] sm:$0xff] }
 0x625   :  { %v1550_v1 = vadd.f32 %v1929_v22, %v1487_v27  ;;  %v1551_v2 = vadd.f32 %v1930_v46, %v1507_v18  ;;  %v1788_v27 = vld [vmem:[%s5446_s5 + $0x70] sm:$0xff]  ;;  %v1787_v18 = vld [vmem:[%s5446_s5 + $0x68] sm:$0xff] }
 0x626   :  { %2065 = vtanh.f32 %v1405_v30  ;;  %v1454_v0 = vmul.f32 0.5, %v1425_v31 }
 0x627   :  { %v2062_v6 = vpop.eup %2061  ;;  %v1637_v3 = vmul.f32 0.5, %v1550_v1  ;;  %v1641_v48 = vmul.f32 0.5, %v1551_v2 }
 0x628   :  { %v2064_v58 = vpop.eup %2063  ;;  %v1447_v50 = vadd.f32 1.0, %v2062_v6  ;;  %2067 = vtanh.f32 %v1454_v0  ;;  %v1789_v0 = vld [vmem:[%s5446_s5 + $0x78] sm:$0xff] }
 0x629   :  { %v1451_v59 = vadd.f32 1.0, %v2064_v58  ;;  %v1932_v6 = vld [vmem:[%s5443_s0 + $0xf8] sm:$0xff] }
 0x62a   :  { %v1448_v47 = vmul.f32 0.5, %v1447_v50 }
 0x62b   :  { %v1452_v43 = vmul.f32 0.5, %v1451_v59  ;;  %v1527_v53 = vpop.f32.mrf.mxu2  ;;  %v1547_v14 = vpop.f32.mrf.mxu3 }
 0x62c   :  { %v2066_v57 = vpop.eup %2065  ;;  %v1552_v37 = vadd.f32 %v1931_v5, %v1527_v53  ;;  %v1553_v59 = vadd.f32 %v1932_v6, %v1547_v14  ;;  %v1786_v53 = vld [vmem:[%s5446_s5 + $0x60] sm:$0xff]  ;;  %v1785_v14 = vld [vmem:[%s5446_s5 + $0x58] sm:$0xff] }
 0x62d   :  { %v1458_v55 = vmul.f32 %v1452_v43, %v6257_v54  ;;  %v1459_v60 = vmul.f32 %v2066_v57, %v1448_v47  ;;  %v1820_v6 = vld [vmem:[%s5450_s1] sm:$0xff] }
 0x62e   :  { %v2068_v44 = vpop.eup %2067  ;;  %v1646_v54 = vmul.f32 0.5, %v1553_v59 }
 0x62f   :  { %v1460_v34 = vadd.f32 %v1459_v60, %v1458_v55  ;;  %v1456_v35 = vadd.f32 1.0, %v2068_v44  ;;  %v6259_v55 = vld [vmem:[#allocation48_spill] sm:$0xff] }
 0x631   :  { %2069 = vtanh.f32 %v1460_v34  ;;  %v1457_v36 = vmul.f32 0.5, %v1456_v35 }
 0x637   :  { %v2070_v4 = vpop.eup %2069 }
 0x638   :  { %v1462_v21 = vmul.f32 %v2070_v4, %v1457_v36 }
 0x63a   :  { %1554 = vrot.lane.b32.xlu0 %v1462_v21, %s2362_s21 }
 0x6ac   :  { %v1555_v16 = vpop.permute.xlu0 %1554 }
 0x6ad   :  { %v1556_v26 = vadd.f32 %v1555_v16, %v6258_v20 }
 0x6af   :  { %1573 = vmatmul.f32.vlgmr.msrb.gmra.mxu0 %v1556_v26  ;;  %1593 = vmatmul.f32.vlgmr.msrb.gmra.mxu1 %v1556_v26 }
 0x6b0   :  { %1613 = vmatmul.f32.vlgmr.msrb.gmra.mxu2 %v1556_v26  ;;  %1633 = vmatmul.f32.vlgmr.msrb.gmra.mxu3 %v1556_v26 }
 0x6b1   :  { %1794 = vmatpush.msrb.mxu0 %v1789_v0  ;;  %v1821_v0 = vld [vmem:[%s5449_s8] sm:$0xff] }
 0x6b3   :  { %1795 = vmatpush.msrb.mxu0 %v1788_v27 }
 0x6b5   :  { %1796 = vmatpush.msrb.mxu0 %v1787_v18 }
 0x6b7   :  { %1797 = vmatpush.msrb.mxu0 %v1786_v53 }
 0x6b9   :  { %1798 = vmatpush.msrb.mxu0 %v1785_v14 }
 0x72c   :  { %v1574_v32 = vpop.f32.mrf.mxu0  ;;  %v1594_v23 = vpop.f32.mrf.mxu1 }
 0x72d   :  { %v1575_v61 = vadd.f32 %v1574_v32, %v6253_v19  ;;  %v1595_v15 = vadd.f32 %v1594_v23, %v6254_v12  ;;  %v1784_v32 = vld [vmem:[%s5446_s5 + $0x50] sm:$0xff]  ;;  %v1783_v23 = vld [vmem:[%s5446_s5 + $0x48] sm:$0xff] }
 0x72e   :  { %1799 = vmatpush.msrb.mxu0 %v1784_v32 }
 0x72f   :  { %v1655_v17 = vmul.f32 0.5, %v1575_v61  ;;  %v1659_v28 = vmul.f32 0.5, %v1595_v15  ;;  %v1782_v61 = vld [vmem:[%s5446_s5 + $0x40] sm:$0xff]  ;;  %v1781_v15 = vld [vmem:[%s5446_s5 + $0x38] sm:$0xff] }
 0x730   :  { %1800 = vmatpush.msrb.mxu0 %v1783_v23 }
 0x731   :  { %2071 = vtanh.f32 %v1655_v17  ;;  %v1780_v17 = vld [vmem:[%s5446_s5 + $0x30] sm:$0xff] }
 0x732   :  { %2073 = vtanh.f32 %v1659_v28  ;;  %1801 = vmatpush.msrb.mxu0 %v1782_v61  ;;  %v1779_v28 = vld [vmem:[%s5446_s5 + $0x28] sm:$0xff] }
 0x733   :  { %v1614_v29 = vpop.f32.mrf.mxu2  ;;  %v1634_v24 = vpop.f32.mrf.mxu3 }
 0x734   :  { %v1615_v52 = vadd.f32 %v1614_v29, %v6255_v62  ;;  %v1635_v7 = vadd.f32 %v1634_v24, %v6256_v49  ;;  %1802 = vmatpush.msrb.mxu0 %v1781_v15  ;;  %v1778_v29 = vld [vmem:[%s5446_s5 + $0x20] sm:$0xff]  ;;  %v1777_v24 = vld [vmem:[%s5446_s5 + $0x18] sm:$0xff] }
 0x736   :  { %2075 = vtanh.f32 %v1615_v52  ;;  %v1664_v8 = vmul.f32 0.5, %v1635_v7  ;;  %1803 = vmatpush.msrb.mxu0 %v1780_v17 }
 0x737   :  { %v2072_v9 = vpop.eup %2071 }
 0x738   :  { %v2074_v10 = vpop.eup %2073  ;;  %v1657_v41 = vadd.f32 1.0, %v2072_v9  ;;  %2077 = vtanh.f32 %v1664_v8  ;;  %1804 = vmatpush.msrb.mxu0 %v1779_v28  ;;  %v1776_v8 = vld [vmem:[%s5446_s5 + $0x10] sm:$0xff] }
 0x739   :  { %v1661_v38 = vadd.f32 1.0, %v2074_v10 }
 0x73a   :  { %v1658_v39 = vmul.f32 0.5, %v1657_v41  ;;  %1805 = vmatpush.msrb.mxu0 %v1778_v29  ;;  %v1775_v41 = vld [vmem:[%s5446_s5 + $0x8] sm:$0xff] }
 0x73b   :  { %v1662_v40 = vmul.f32 0.5, %v1661_v38 }
 0x73c   :  { %v2076_v42 = vpop.eup %2075  ;;  %1806 = vmatpush.msrb.mxu0 %v1777_v24 }
 0x73d   :  { %v1668_v63 = vmul.f32 %v1662_v40, %v1460_v34  ;;  %v1669_v45 = vmul.f32 %v2076_v42, %v1658_v39  ;;  %v1774_v40 = vld [vmem:[%s5446_s5] sm:$0xff] }
 0x73e   :  { %v2078_v51 = vpop.eup %2077  ;;  %1807 = vmatpush.msrb.mxu0 %v1776_v8 }
 0x73f   :  { %v5342_v56 = vadd.f32 %v1669_v45, %v1668_v63  ;;  %v1666_v33 = vadd.f32 1.0, %v2078_v51 }
 0x740   :  { %1808 = vmatpush.msrb.mxu0 %v1775_v41 }
 0x741   :  { %2079 = vtanh.f32 %v5342_v56  ;;  %v1667_v25 = vmul.f32 0.5, %v1666_v33 }
 0x742   :  { %2081 = vtanh.f32 %v1637_v3  ;;  %1809 = vmatpush.msrb.mxu0 %v1774_v40 }
 0x743   :  { %2083 = vtanh.f32 %v1641_v48 }
 0x744   :  { %2085 = vtanh.f32 %v1552_v37 }
 0x745   :  { %2087 = vtanh.f32 %v1646_v54 }
 0x747   :  { %v2080_v13 = vpop.eup %2079 }
 0x748   :  { %v1672_v11 = vmul.f32 %v2080_v13, %v1667_v25  ;;  %v2082_v30 = vpop.eup %2081 }
 0x749   :  { %v2084_v31 = vpop.eup %2083  ;;  %v1639_v58 = vadd.f32 1.0, %v2082_v30  ;;  %v1819_v30 = vld [vmem:[%s5448_s7 + $0x8] sm:$0xff] }
 0x74a   :  { %1673 = vrot.lane.b32.xlu1 %v1672_v11, %s2362_s21  ;;  %v1643_v50 = vadd.f32 1.0, %v2084_v31  ;;  %v2086_v57 = vpop.eup %2085  ;;  %v1818_v31 = vld [vmem:[%s5448_s7] sm:$0xff]  ;;  %1864 = vmatpush.msrb.mxu2 %v1819_v30 }
 0x74b   :  { %v1640_v47 = vmul.f32 0.5, %v1639_v58  ;;  %v2088_v35 = vpop.eup %2087  ;;  %v1937_v58 = vld [vmem:[%s5447_s6] ss:$0 sm:$0xff] }
 0x74c   :  { %v1644_v43 = vmul.f32 0.5, %v1643_v50  ;;  %v1648_v36 = vadd.f32 1.0, %v2088_v35  ;;  %1865 = vmatpush.msrb.mxu2 %v1818_v31 }
 0x74d   :  { %v1651_v44 = vmul.f32 %v2086_v57, %v1640_v47 }
 0x74e   :  { %v1650_v60 = vmul.f32 %v1644_v43, %v6259_v55  ;;  %v1649_v21 = vmul.f32 0.5, %v1648_v36  ;;  %v17_v55 = vstv %s5453_s11 }
 0x74f   :  { %18 = vst [vmem:[#allocation2] sm:$0x1] %v17_v55 }
 0x750   :  { %v1652_v34 = vadd.f32 %v1651_v44, %v1650_v60  ;;  %v1938_v44 = vld [vmem:[%s5451_s9] ss:$0 sm:$0xff] }
 0x752   :  { %2089 = vtanh.f32 %v1652_v34 }
 0x758   :  { %v2090_v4 = vpop.eup %2089 }
 0x759   :  { %v1654_v16 = vmul.f32 %v2090_v4, %v1649_v21  ;;  %v1939_v4 = vld [vmem:[%s5452_s10] ss:$0 sm:$0xff] }
 0x7bc   :  { %v1674_v20 = vpop.permute.xlu1 %1673 }
 0x7bd   :  { %v1675_v26 = vadd.f32 %v1674_v20, %v1654_v16  ;;  %v1940_v20 = vld [vmem:[#allocation2] ss:$0 sm:$0xff] }
 0x7bf   :  { %1692 = vmatmul.f32.vlgmr.msra.gmra.mxu0 %v1675_v26  ;;  %1712 = vmatmul.f32.vlgmr.msra.gmra.mxu1 %v1675_v26 }
 0x7c0   :  { %1732 = vmatmul.f32.vlgmr.msra.gmra.mxu2 %v1675_v26  ;;  %1752 = vmatmul.f32.vlgmr.msra.gmra.mxu3 %v1675_v26 }
 0x83c   :  { %v1693_v52 = vpop.f32.mrf.mxu0  ;;  %v1713_v7 = vpop.f32.mrf.mxu1 }
 0x83d   :  { %v1694_v9 = vadd.f32 %v1693_v52, %v6253_v19  ;;  %v1714_v10 = vadd.f32 %v1713_v7, %v6254_v12 }
 0x83f   :  { %v1756_v38 = vmul.f32 0.5, %v1694_v9  ;;  %v1760_v39 = vmul.f32 0.5, %v1714_v10 }
 0x841   :  { %2091 = vtanh.f32 %v1756_v38 }
 0x842   :  { %2093 = vtanh.f32 %v1760_v39 }
 0x843   :  { %v1733_v42 = vpop.f32.mrf.mxu2  ;;  %v1753_v63 = vpop.f32.mrf.mxu3 }
 0x844   :  { %v1734_v19 = vadd.f32 %v1733_v42, %v6255_v62  ;;  %v1754_v12 = vadd.f32 %v1753_v63, %v6256_v49 }
 0x846   :  { %2095 = vtanh.f32 %v1734_v19  ;;  %v1765_v45 = vmul.f32 0.5, %v1754_v12 }
 0x847   :  { %v2092_v51 = vpop.eup %2091 }
 0x848   :  { %v2094_v33 = vpop.eup %2093  ;;  %v1758_v25 = vadd.f32 1.0, %v2092_v51  ;;  %2097 = vtanh.f32 %v1765_v45 }
 0x849   :  { %v1762_v13 = vadd.f32 1.0, %v2094_v33 }
 0x84a   :  { %v1759_v11 = vmul.f32 0.5, %v1758_v25 }
 0x84b   :  { %v1763_v22 = vmul.f32 0.5, %v1762_v13 }
 0x84c   :  { %v2096_v46 = vpop.eup %2095 }
 0x84d   :  { %v1769_v1 = vmul.f32 %v1763_v22, %v5342_v56  ;;  %v1770_v2 = vmul.f32 %v2096_v46, %v1759_v11  ;;  %v1822_v56 = vld [vmem:[%s5449_s8 + $0x8] sm:$0xff] }
 0x84e   :  { %v2098_v3 = vpop.eup %2097  ;;  %1841 = vmatpush.msrb.mxu1 %v1822_v56 }
 0x84f   :  { %v1771_v48 = vadd.f32 %v1770_v2, %v1769_v1  ;;  %v1767_v5 = vadd.f32 1.0, %v2098_v3 }
 0x850   :  { %1842 = vmatpush.msrb.mxu1 %v1821_v0 }
 0x851   :  { %2099 = vtanh.f32 %v1771_v48  ;;  %v1768_v62 = vmul.f32 0.5, %v1767_v5  ;;  %1933 = vmatmul.msk.f32.vlgmr.msrb.gmra.mxu1 %vm1823_vm0, %v1820_v6 }
 0x857   :  { %v2100_v37 = vpop.eup %2099 }
 0x858   :  { %v1773_v49 = vmul.f32 %v2100_v37, %v1768_v62 }
 0x85a   :  { %1810 = vmatmul.f32.vlgmr.msrb.gmra.mxu0 %v1773_v49 }
 0x8ce   :  { %v1844_v60 = vpop.f32.mrf.mxu1 }
 0x8d7   :  { %v1811_v50 = vpop.f32.mrf.mxu0 }
 0x8d8   :  { %v1812_v59 = vadd.f32 %v1937_v58, %v1811_v50 }
 0x8da   :  { %v1814_v47 = vmul.f32 0.5, %v1812_v59 }
 0x8dc   :  { %2101 = vtanh.f32 %v1814_v47 }
 0x8e2   :  { %v2102_v43 = vpop.eup %2101 }
 0x8e3   :  { %v1816_v57 = vadd.f32 1.0, %v2102_v43 }
 0x8e5   :  { %v1817_v54 = vmul.f32 0.5, %v1816_v57 }
 0x8e7   :  { %1934 = vmatmul.msk.f32.vlgmr.msrb.gmra.mxu2 %vm1823_vm0, %v1817_v54 }
 0x96a   :  { %v1867_v34 = vpop.f32.mrf.mxu2 }
 0x96b   :  { %v1868_v35 = vadd.f32 %v1867_v34, %v1844_v60 }
 0x96d   :  { %v1874_v36 = vadd.f32 %v1938_v44, %v1868_v35 }
 0x96f   :  { %v1875_v21 = vmax.f32 %v1874_v36, 0.0 }
 0x971   :  { %v1880_v16 = vmul.f32 %v1939_v4, %v1875_v21 }
 0x973   :  { %1881 = vadd.xlane.f32.xlu2 %v1880_v16 }
 0x9e6   :  { %v1882_v26 = vpop.xlane.xlu2 %1881 }
 0x9e7   :  { %v1887_v27 = vadd.f32 %v1940_v20, %v1882_v26 }
 0x9e9   :  { %v1888_v18 = vmul.f32 0.5, %v1887_v27 }
 0x9eb   :  { %2103 = vtanh.f32 %v1888_v18 }
 0x9f1   :  { %v2104_v53 = vpop.eup %2103 }
 0x9f2   :  { %v1890_v14 = vadd.f32 1.0, %v2104_v53 }
 0x9f4   :  { %v1891_v32 = vmul.f32 0.5, %v1890_v14 }
 0x9f6   :  { %1893 = vst.msk [vmem:[%s5454_s12] sm:$0xff] %vm1892_vm1, %v1891_v32 }

</bundles_post_ra>
